<compile_context>
chip_gen: v6e
topology: v6e:2x2x1
jax: 0.10.0
libtpu: 0.0.40
codegen_flags: <defaults>
</compile_context>

<pallas_src>
import jax
import jax.numpy as jnp
from jax.experimental import pallas as pl
from jax.experimental.pallas import tpu as pltpu


# ----------------------------------------------------------------------------
# Kernel
# ----------------------------------------------------------------------------
def graph_block_kernel(x_ref, adj_ref,
                       wx_ref, bx_ref, w2_ref, b2_ref,
                       wg_ref, bg_ref, ws_ref, bs_ref,
                       out_ref):
    rows, L = x_ref.shape          # rows = Bt * N (flattened on the host)
    Bt, N, _ = adj_ref.shape
    mxu_dtype = wx_ref.dtype       # f32 or bf16 MXU operand dtype

    x2 = x_ref[...]                # (rows, L), already flat & in MXU dtype

    # ---------------- ResidualMLP:  [h1 | skip] = x @ [w1 | wsk] ------------
    xw = jnp.dot(x2, wx_ref[...], preferred_element_type=jnp.float32) + bx_ref[...]
    h = jax.nn.silu(xw[:, :L])                                       # f32
    h = jnp.dot(h.astype(mxu_dtype), w2_ref[...],
                preferred_element_type=jnp.float32) + b2_ref[...]
    y = h + xw[:, L:]                                                # (rows, L) f32
    y_m = y.astype(mxu_dtype)

    # ------------- DenseFiLMConv, graph branch: [hx | beta | gamma] ---------
    yg = jnp.dot(y_m, wg_ref[...], preferred_element_type=jnp.float32) + bg_ref[...]
    hx = yg[:, 0 * L:1 * L]            # lin(y)   (no bias)
    beta = yg[:, 1 * L:2 * L]
    gamma = yg[:, 2 * L:3 * L]

    # Neighborhood aggregation agg[b,i,:] = sum_j adj[b,i,j] * hx[b,j,:]
    # as an unrolled VPU MAC over the N neighbor columns (f32, no MXU).
    adj = adj_ref[...]                                  # (Bt, N, N) f32
    hx3 = hx.reshape(Bt, N, L)                          # f32, sublane-aligned
    agg3 = adj[:, :, 0:1] * hx3[:, 0:1, :]
    for j in range(1, N):
        agg3 = agg3 + adj[:, :, j:j + 1] * hx3[:, j:j + 1, :]
    agg = agg3.reshape(rows, L)

    # ------------- DenseFiLMConv, skip branch: [hs | beta_s | gamma_s] ------
    ys = jnp.dot(y_m, ws_ref[...], preferred_element_type=jnp.float32) + bs_ref[...]
    hs = ys[:, 0 * L:1 * L]            # lin_skip(y) (no bias)
    beta_s = ys[:, 1 * L:2 * L]
    gamma_s = ys[:, 2 * L:3 * L]

    out = jax.nn.silu(gamma_s * hs + beta_s) + jax.nn.silu(gamma * agg + beta)
    out_ref[...] = out.astype(out_ref.dtype)


# ----------------------------------------------------------------------------
# Host-side helpers
# ----------------------------------------------------------------------------
def _device_kind():
    try:
        return jax.devices()[0].device_kind.lower()
    except Exception:  # pragma: no cover
        return ""


def _num_tensorcores():
    """TensorCores a single Pallas grid is split across ("parallel" axes)."""
    kind = _device_kind()
    return 2 if any(t in kind for t in ("v7", "v4", "v5p")) else 1


def _vmem_clamp_bytes():
    """Upper bound on the requested scoped-VMEM limit (leave HW headroom)."""
    kind = _device_kind()
    return (48 << 20) if "v7" in kind else (96 << 20)   # 64 vs 128 MiB physical


def _choose_batch_tile(B, N, num_cores):
    """Batch tile so one grid step feeds the MXU ~256-512 rows, while keeping at
    least `num_cores` grid steps (each TensorCore gets work) when B allows."""
    target_rows = 512
    bt = max(1, min(B, target_rows // max(N, 1)))
    if num_cores > 1 and B >= num_cores:
        bt = min(bt, pl.cdiv(B, num_cores))
    return max(bt, 1)


def _fuse_params(params, mxu_dtype):
    """Concatenate weights that share an input into wide matrices."""
    (w1, b1, w2, b2, wsk, bsk, wlin, wlsk, wf, bf, wfs, bfs) = params
    L = w1.shape[0]
    f32 = jnp.float32
    wx = jnp.concatenate([w1, wsk], axis=1).astype(mxu_dtype)       # (L, 2L)
    bx = jnp.concatenate([b1, bsk], axis=1).astype(f32)             # (1, 2L)
    zero = jnp.zeros((1, L), f32)
    wg = jnp.concatenate([wlin, wf], axis=1).astype(mxu_dtype)      # (L, 3L)
    bg = jnp.concatenate([zero, bf.astype(f32)], axis=1)            # (1, 3L)
    ws = jnp.concatenate([wlsk, wfs], axis=1).astype(mxu_dtype)     # (L, 3L)
    bs = jnp.concatenate([zero, bfs.astype(f32)], axis=1)           # (1, 3L)
    return (wx, bx, w2.astype(mxu_dtype), b2.astype(f32), wg, bg, ws, bs)


def graph_block(x, adj, params, *, use_bf16=True, batch_tile=None):
    """x: (B, N, L), adj: (B, N, N) row-normalized, params: 12-tuple of weights."""
    B, N, L = x.shape
    mxu_dtype = jnp.bfloat16 if use_bf16 else jnp.float32
    itemsize = jnp.dtype(mxu_dtype).itemsize

    fused = _fuse_params(params, mxu_dtype)

    num_cores = _num_tensorcores()
    Bt = batch_tile if batch_tile is not None else _choose_batch_tile(B, N, num_cores)
    Bt = min(Bt, B)
    # Keep the flattened block row count sublane-aligned when possible.
    while (Bt * N) % 8 != 0 and Bt < B:
        Bt += 1

    grid_len = int(pl.cdiv(B, Bt))
    Bp = grid_len * Bt
    if Bp != B:                     # pad the last (partial) batch block
        pad = Bp - B
        x = jnp.pad(x, ((0, pad), (0, 0), (0, 0)))
        adj = jnp.pad(adj, ((0, pad), (0, 0), (0, 0)))

    # Host-side flatten: keeps the (possibly bf16) x tile a plain 2-D slab (no
    # in-kernel relayout) and the output lane-dense for unmasked stores.
    x2 = x.reshape(Bp * N, L).astype(mxu_dtype)
    adj_in = adj.astype(jnp.float32)          # VPU aggregation stays in f32

    rows = Bt * N
    x_spec = pl.BlockSpec((rows, L), lambda b: (b, 0))
    adj_spec = pl.BlockSpec((Bt, N, N), lambda b: (b, 0, 0))
    out_spec = pl.BlockSpec((rows, L), lambda b: (b, 0))
    # Weights/biases: full untiled blocks, grid-invariant index map (re-fetch skipped).
    param_specs = [pl.BlockSpec(p.shape, lambda b: (0, 0)) for p in fused]

    # ---- VMEM accounting (per grid step, no double counting) ----------------
    tile_bytes = 2 * (rows * L * itemsize        # x block (double-buffered)
                      + rows * L * 4             # out block
                      + Bt * N * N * 4)          # adj block
    param_bytes = 2 * sum(int(p.size) * p.dtype.itemsize for p in fused)
    interm_bytes = rows * 7 * L * 4              # xw(2L)+y(L)+branch(3L)+agg(L) f32
    need = tile_bytes + param_bytes + interm_bytes
    vmem_limit = int(min(max(2 * need, 32 << 20), _vmem_clamp_bytes()))

    # ---- Cost estimate: weight matmuls (2L + L + 3L + 3L = 9L) + aggregation
    flops = 2 * Bp * N * L * (9 * L) + 2 * Bp * N * N * L
    transcendentals = 3 * Bp * N * L                 # three silu applications
    bytes_accessed = int(x2.size * itemsize + adj_in.size * 4 + Bp * N * L * 4
                         + sum(int(p.size) * p.dtype.itemsize for p in fused))

    out2 = pl.pallas_call(
        graph_block_kernel,
        out_shape=jax.ShapeDtypeStruct((Bp * N, L), jnp.float32),
        grid_spec=pltpu.PrefetchScalarGridSpec(
            num_scalar_prefetch=0,
            grid=(grid_len,),
            in_specs=[x_spec, adj_spec] + param_specs,
            out_specs=out_spec,
        ),
        compiler_params=pltpu.CompilerParams(
            dimension_semantics=("parallel",),
            vmem_limit_bytes=vmem_limit),
        cost_estimate=pl.CostEstimate(
            flops=flops,
            transcendentals=transcendentals,
            bytes_accessed=bytes_accessed),
    )(x2, adj_in, *fused)

    out = out2.reshape(Bp, N, L)
    if Bp != B:
        out = out[:B]
    return out


# ----------------------------------------------------------------------------
# Synthetic parameters + pure-JAX reference
# ----------------------------------------------------------------------------
def init_params(key, layer_size):
    """Deterministic synthetic parameters (shapes implied by GraphBlock.__init__)."""
    L = layer_size
    keys = jax.random.split(key, 10)
    s = 1.0 / jnp.sqrt(jnp.float32(L))

    # ResidualMLP (n_layers=2: Linear(L,L) -> SiLU -> Linear(L,L), plus Linear skip)
    w1 = jax.random.normal(keys[0], (L, L), jnp.float32) * s
    b1 = jax.random.normal(keys[1], (1, L), jnp.float32) * 0.01
    w2 = jax.random.normal(keys[2], (L, L), jnp.float32) * s
    b2 = jax.random.normal(keys[3], (1, L), jnp.float32) * 0.01
    wsk = jax.random.normal(keys[4], (L, L), jnp.float32) * s
    bsk = jax.random.normal(keys[5], (1, L), jnp.float32) * 0.01

    # DenseFiLMConv: lin / lin_skip (no bias), film / film_skip -> 2L (beta|gamma)
    wlin = jax.random.normal(keys[6], (L, L), jnp.float32) * s
    wlsk = jax.random.normal(keys[7], (L, L), jnp.float32) * s
    wf = jax.random.normal(keys[8], (L, 2 * L), jnp.float32) * s
    bf = jnp.zeros((1, 2 * L), jnp.float32)
    wfs = jax.random.normal(keys[9], (L, 2 * L), jnp.float32) * s
    bfs = jnp.zeros((1, 2 * L), jnp.float32)

    return (w1, b1, w2, b2, wsk, bsk, wlin, wlsk, wf, bf, wfs, bfs)


def reference(x, adj, params):
    """Pure-JAX reference for sanity checking."""
    (w1, b1, w2, b2, wsk, bsk, wlin, wlsk, wf, bf, wfs, bfs) = params
    L = x.shape[-1]
    h = jax.nn.silu(x @ w1 + b1)
    y = (h @ w2 + b2) + (x @ wsk + bsk)

    film = y @ wf + bf
    beta, gamma = film[..., :L], film[..., L:]
    film_s = y @ wfs + bfs
    beta_s, gamma_s = film_s[..., :L], film_s[..., L:]

    hx = y @ wlin
    hs = y @ wlsk
    agg = jnp.einsum("bij,bjl->bil", adj, hx)
    return jax.nn.silu(gamma_s * hs + beta_s) + jax.nn.silu(gamma * agg + beta)


if __name__ == "__main__":
    B, N, L = 32, 8, 128   # batch of graphs, graph nodes, layer_size

    key = jax.random.PRNGKey(0)
    kx, ka, kp = jax.random.split(key, 3)

    x = jax.random.normal(kx, (B, N, L), jnp.float32)
    adj_raw = jax.random.uniform(ka, (B, N, N), jnp.float32)
    adj = adj_raw / jnp.sum(adj_raw, axis=-1, keepdims=True)   # row-normalized (mean agg)

    params = init_params(kp, L)
    ref = reference(x, adj, params)

    # f32-operand path: must match the f32 reference tightly.
    out = jax.block_until_ready(graph_block(x, adj, params, use_bf16=False))
    assert out.shape == (B, N, L)
    assert jnp.allclose(out, ref, atol=1e-4, rtol=1e-4), "f32 mismatch vs JAX reference"

    # Default bf16-operand path (MXU-native): loose tolerance vs the f32 reference.
    out_bf16 = jax.block_until_ready(graph_block(x, adj, params))
    max_err = float(jnp.max(jnp.abs(out_bf16 - ref)))
    assert max_err < 0.25, f"bf16 path diverged from reference: {max_err}"

    # Exercise the non-divisor / padded-last-block path.
    Bs = 5
    xs, adjs = x[:Bs], adj[:Bs]
    out_pad = jax.block_until_ready(graph_block(xs, adjs, params, batch_tile=4))
    ref_s = reference(xs, adjs, params)
    assert out_pad.shape == (Bs, N, L)
    assert float(jnp.max(jnp.abs(out_pad - ref_s))) < 0.25, "padded-block path diverged"

    print("KERNEL_OK")
</pallas_src>

<mosaic_0001>
module attributes {stable_mosaic.version = 11 : i64} {
  func.func @graph_block_kernel(%arg0: i32, %arg1: memref<256x128xf32, #tpu.memory_space<vmem>>, %arg2: memref<32x8x8xf32, #tpu.memory_space<vmem>>, %arg3: memref<128x256xf32, #tpu.memory_space<vmem>>, %arg4: memref<1x256xf32, #tpu.memory_space<vmem>>, %arg5: memref<128x128xf32, #tpu.memory_space<vmem>>, %arg6: memref<1x128xf32, #tpu.memory_space<vmem>>, %arg7: memref<128x384xf32, #tpu.memory_space<vmem>>, %arg8: memref<1x384xf32, #tpu.memory_space<vmem>>, %arg9: memref<128x384xf32, #tpu.memory_space<vmem>>, %arg10: memref<1x384xf32, #tpu.memory_space<vmem>>, %arg11: memref<256x128xf32, #tpu.memory_space<vmem>>) attributes {dimension_semantics = [#tpu.dimension_semantics<parallel>], iteration_bounds = array<i64: 1>, scalar_prefetch = 0 : i64, scratch_operands = 0 : i64, tpu.core_type = #tpu.core_type<tc>, window_params = [{transform_indices = @transform_0, window_bounds = array<i64: 256, 128>}, {transform_indices = @transform_1, window_bounds = array<i64: 32, 8, 8>}, {pipeline_mode = #tpu.pipeline_mode<synchronous>, transform_indices = @transform_2, window_bounds = array<i64: 128, 256>}, {pipeline_mode = #tpu.pipeline_mode<synchronous>, transform_indices = @transform_3, window_bounds = array<i64: 1, 256>}, {pipeline_mode = #tpu.pipeline_mode<synchronous>, transform_indices = @transform_4, window_bounds = array<i64: 128, 128>}, {pipeline_mode = #tpu.pipeline_mode<synchronous>, transform_indices = @transform_5, window_bounds = array<i64: 1, 128>}, {pipeline_mode = #tpu.pipeline_mode<synchronous>, transform_indices = @transform_6, window_bounds = array<i64: 128, 384>}, {pipeline_mode = #tpu.pipeline_mode<synchronous>, transform_indices = @transform_7, window_bounds = array<i64: 1, 384>}, {pipeline_mode = #tpu.pipeline_mode<synchronous>, transform_indices = @transform_8, window_bounds = array<i64: 128, 384>}, {pipeline_mode = #tpu.pipeline_mode<synchronous>, transform_indices = @transform_9, window_bounds = array<i64: 1, 384>}, {transform_indices = @transform_10, window_bounds = array<i64: 256, 128>}]} {
    %c0 = arith.constant 0 : index
    %c0_0 = arith.constant 0 : index
    %0 = vector.load %arg1[%c0, %c0_0] : memref<256x128xf32, #tpu.memory_space<vmem>>, vector<256x128xf32>
    %c0_1 = arith.constant 0 : index
    %c0_2 = arith.constant 0 : index
    %1 = vector.load %arg3[%c0_1, %c0_2] : memref<128x256xf32, #tpu.memory_space<vmem>>, vector<128x256xf32>
    %cst = arith.constant dense<0.000000e+00> : vector<256x256xf32>
    %2 = tpu.matmul %0, %1, %cst {dimension_numbers = #tpu.dot_dimension_numbers<[1], [0], [0], [1], [0, 0, 1, 1], [], []>} : vector<256x128xf32>, vector<128x256xf32>, vector<256x256xf32> -> vector<256x256xf32>
    %c0_3 = arith.constant 0 : index
    %c0_4 = arith.constant 0 : index
    %3 = vector.load %arg4[%c0_3, %c0_4] : memref<1x256xf32, #tpu.memory_space<vmem>>, vector<1x256xf32>
    %4 = vector.broadcast %3 : vector<1x256xf32> to vector<256x256xf32>
    %5 = arith.addf %2, %4 : vector<256x256xf32>
    %6 = vector.extract_strided_slice %5 {offsets = [0, 0], sizes = [256, 128], strides = [1, 1]} : vector<256x256xf32> to vector<256x128xf32>
    %7 = arith.negf %6 : vector<256x128xf32>
    %8 = math.exp %7 : vector<256x128xf32>
    %cst_5 = arith.constant 1.000000e+00 : f32
    %9 = vector.broadcast %cst_5 : f32 to vector<256x128xf32>
    %10 = arith.addf %9, %8 : vector<256x128xf32>
    %11 = arith.divf %9, %10 : vector<256x128xf32>
    %12 = arith.mulf %6, %11 : vector<256x128xf32>
    %c0_6 = arith.constant 0 : index
    %c0_7 = arith.constant 0 : index
    %13 = vector.load %arg5[%c0_6, %c0_7] : memref<128x128xf32, #tpu.memory_space<vmem>>, vector<128x128xf32>
    %cst_8 = arith.constant dense<0.000000e+00> : vector<256x128xf32>
    %14 = tpu.matmul %12, %13, %cst_8 {dimension_numbers = #tpu.dot_dimension_numbers<[1], [0], [0], [1], [0, 0, 1, 1], [], []>} : vector<256x128xf32>, vector<128x128xf32>, vector<256x128xf32> -> vector<256x128xf32>
    %c0_9 = arith.constant 0 : index
    %c0_10 = arith.constant 0 : index
    %15 = vector.load %arg6[%c0_9, %c0_10] : memref<1x128xf32, #tpu.memory_space<vmem>>, vector<1x128xf32>
    %16 = vector.broadcast %15 : vector<1x128xf32> to vector<256x128xf32>
    %17 = arith.addf %14, %16 : vector<256x128xf32>
    %18 = vector.extract_strided_slice %5 {offsets = [0, 128], sizes = [256, 128], strides = [1, 1]} : vector<256x256xf32> to vector<256x128xf32>
    %19 = arith.addf %17, %18 : vector<256x128xf32>
    %c0_11 = arith.constant 0 : index
    %c0_12 = arith.constant 0 : index
    %20 = vector.load %arg7[%c0_11, %c0_12] : memref<128x384xf32, #tpu.memory_space<vmem>>, vector<128x384xf32>
    %cst_13 = arith.constant dense<0.000000e+00> : vector<256x384xf32>
    %21 = tpu.matmul %19, %20, %cst_13 {dimension_numbers = #tpu.dot_dimension_numbers<[1], [0], [0], [1], [0, 0, 1, 1], [], []>} : vector<256x128xf32>, vector<128x384xf32>, vector<256x384xf32> -> vector<256x384xf32>
    %c0_14 = arith.constant 0 : index
    %c0_15 = arith.constant 0 : index
    %22 = vector.load %arg8[%c0_14, %c0_15] : memref<1x384xf32, #tpu.memory_space<vmem>>, vector<1x384xf32>
    %23 = vector.broadcast %22 : vector<1x384xf32> to vector<256x384xf32>
    %24 = arith.addf %21, %23 : vector<256x384xf32>
    %25 = vector.extract_strided_slice %24 {offsets = [0, 0], sizes = [256, 128], strides = [1, 1]} : vector<256x384xf32> to vector<256x128xf32>
    %26 = vector.extract_strided_slice %24 {offsets = [0, 128], sizes = [256, 128], strides = [1, 1]} : vector<256x384xf32> to vector<256x128xf32>
    %27 = vector.extract_strided_slice %24 {offsets = [0, 256], sizes = [256, 128], strides = [1, 1]} : vector<256x384xf32> to vector<256x128xf32>
    %c0_16 = arith.constant 0 : index
    %c0_17 = arith.constant 0 : index
    %c0_18 = arith.constant 0 : index
    %28 = vector.load %arg2[%c0_16, %c0_17, %c0_18] : memref<32x8x8xf32, #tpu.memory_space<vmem>>, vector<32x8x8xf32>
    %29 = vector.shape_cast %25 : vector<256x128xf32> to vector<32x8x128xf32>
    %30 = vector.extract_strided_slice %28 {offsets = [0, 0, 0], sizes = [32, 8, 1], strides = [1, 1, 1]} : vector<32x8x8xf32> to vector<32x8x1xf32>
    %31 = vector.extract_strided_slice %29 {offsets = [0, 0, 0], sizes = [32, 1, 128], strides = [1, 1, 1]} : vector<32x8x128xf32> to vector<32x1x128xf32>
    %32 = vector.broadcast %30 : vector<32x8x1xf32> to vector<32x8x128xf32>
    %33 = vector.broadcast %31 : vector<32x1x128xf32> to vector<32x8x128xf32>
    %34 = arith.mulf %32, %33 : vector<32x8x128xf32>
    %35 = vector.extract_strided_slice %28 {offsets = [0, 0, 1], sizes = [32, 8, 1], strides = [1, 1, 1]} : vector<32x8x8xf32> to vector<32x8x1xf32>
    %36 = vector.extract_strided_slice %29 {offsets = [0, 1, 0], sizes = [32, 1, 128], strides = [1, 1, 1]} : vector<32x8x128xf32> to vector<32x1x128xf32>
    %37 = vector.broadcast %35 : vector<32x8x1xf32> to vector<32x8x128xf32>
    %38 = vector.broadcast %36 : vector<32x1x128xf32> to vector<32x8x128xf32>
    %39 = arith.mulf %37, %38 : vector<32x8x128xf32>
    %40 = arith.addf %34, %39 : vector<32x8x128xf32>
    %41 = vector.extract_strided_slice %28 {offsets = [0, 0, 2], sizes = [32, 8, 1], strides = [1, 1, 1]} : vector<32x8x8xf32> to vector<32x8x1xf32>
    %42 = vector.extract_strided_slice %29 {offsets = [0, 2, 0], sizes = [32, 1, 128], strides = [1, 1, 1]} : vector<32x8x128xf32> to vector<32x1x128xf32>
    %43 = vector.broadcast %41 : vector<32x8x1xf32> to vector<32x8x128xf32>
    %44 = vector.broadcast %42 : vector<32x1x128xf32> to vector<32x8x128xf32>
    %45 = arith.mulf %43, %44 : vector<32x8x128xf32>
    %46 = arith.addf %40, %45 : vector<32x8x128xf32>
    %47 = vector.extract_strided_slice %28 {offsets = [0, 0, 3], sizes = [32, 8, 1], strides = [1, 1, 1]} : vector<32x8x8xf32> to vector<32x8x1xf32>
    %48 = vector.extract_strided_slice %29 {offsets = [0, 3, 0], sizes = [32, 1, 128], strides = [1, 1, 1]} : vector<32x8x128xf32> to vector<32x1x128xf32>
    %49 = vector.broadcast %47 : vector<32x8x1xf32> to vector<32x8x128xf32>
    %50 = vector.broadcast %48 : vector<32x1x128xf32> to vector<32x8x128xf32>
    %51 = arith.mulf %49, %50 : vector<32x8x128xf32>
    %52 = arith.addf %46, %51 : vector<32x8x128xf32>
    %53 = vector.extract_strided_slice %28 {offsets = [0, 0, 4], sizes = [32, 8, 1], strides = [1, 1, 1]} : vector<32x8x8xf32> to vector<32x8x1xf32>
    %54 = vector.extract_strided_slice %29 {offsets = [0, 4, 0], sizes = [32, 1, 128], strides = [1, 1, 1]} : vector<32x8x128xf32> to vector<32x1x128xf32>
    %55 = vector.broadcast %53 : vector<32x8x1xf32> to vector<32x8x128xf32>
    %56 = vector.broadcast %54 : vector<32x1x128xf32> to vector<32x8x128xf32>
    %57 = arith.mulf %55, %56 : vector<32x8x128xf32>
    %58 = arith.addf %52, %57 : vector<32x8x128xf32>
    %59 = vector.extract_strided_slice %28 {offsets = [0, 0, 5], sizes = [32, 8, 1], strides = [1, 1, 1]} : vector<32x8x8xf32> to vector<32x8x1xf32>
    %60 = vector.extract_strided_slice %29 {offsets = [0, 5, 0], sizes = [32, 1, 128], strides = [1, 1, 1]} : vector<32x8x128xf32> to vector<32x1x128xf32>
    %61 = vector.broadcast %59 : vector<32x8x1xf32> to vector<32x8x128xf32>
    %62 = vector.broadcast %60 : vector<32x1x128xf32> to vector<32x8x128xf32>
    %63 = arith.mulf %61, %62 : vector<32x8x128xf32>
    %64 = arith.addf %58, %63 : vector<32x8x128xf32>
    %65 = vector.extract_strided_slice %28 {offsets = [0, 0, 6], sizes = [32, 8, 1], strides = [1, 1, 1]} : vector<32x8x8xf32> to vector<32x8x1xf32>
    %66 = vector.extract_strided_slice %29 {offsets = [0, 6, 0], sizes = [32, 1, 128], strides = [1, 1, 1]} : vector<32x8x128xf32> to vector<32x1x128xf32>
    %67 = vector.broadcast %65 : vector<32x8x1xf32> to vector<32x8x128xf32>
    %68 = vector.broadcast %66 : vector<32x1x128xf32> to vector<32x8x128xf32>
    %69 = arith.mulf %67, %68 : vector<32x8x128xf32>
    %70 = arith.addf %64, %69 : vector<32x8x128xf32>
    %71 = vector.extract_strided_slice %28 {offsets = [0, 0, 7], sizes = [32, 8, 1], strides = [1, 1, 1]} : vector<32x8x8xf32> to vector<32x8x1xf32>
    %72 = vector.extract_strided_slice %29 {offsets = [0, 7, 0], sizes = [32, 1, 128], strides = [1, 1, 1]} : vector<32x8x128xf32> to vector<32x1x128xf32>
    %73 = vector.broadcast %71 : vector<32x8x1xf32> to vector<32x8x128xf32>
    %74 = vector.broadcast %72 : vector<32x1x128xf32> to vector<32x8x128xf32>
    %75 = arith.mulf %73, %74 : vector<32x8x128xf32>
    %76 = arith.addf %70, %75 : vector<32x8x128xf32>
    %77 = vector.shape_cast %76 : vector<32x8x128xf32> to vector<256x128xf32>
    %c0_19 = arith.constant 0 : index
    %c0_20 = arith.constant 0 : index
    %78 = vector.load %arg9[%c0_19, %c0_20] : memref<128x384xf32, #tpu.memory_space<vmem>>, vector<128x384xf32>
    %cst_21 = arith.constant dense<0.000000e+00> : vector<256x384xf32>
    %79 = tpu.matmul %19, %78, %cst_21 {dimension_numbers = #tpu.dot_dimension_numbers<[1], [0], [0], [1], [0, 0, 1, 1], [], []>} : vector<256x128xf32>, vector<128x384xf32>, vector<256x384xf32> -> vector<256x384xf32>
    %c0_22 = arith.constant 0 : index
    %c0_23 = arith.constant 0 : index
    %80 = vector.load %arg10[%c0_22, %c0_23] : memref<1x384xf32, #tpu.memory_space<vmem>>, vector<1x384xf32>
    %81 = vector.broadcast %80 : vector<1x384xf32> to vector<256x384xf32>
    %82 = arith.addf %79, %81 : vector<256x384xf32>
    %83 = vector.extract_strided_slice %82 {offsets = [0, 0], sizes = [256, 128], strides = [1, 1]} : vector<256x384xf32> to vector<256x128xf32>
    %84 = vector.extract_strided_slice %82 {offsets = [0, 128], sizes = [256, 128], strides = [1, 1]} : vector<256x384xf32> to vector<256x128xf32>
    %85 = vector.extract_strided_slice %82 {offsets = [0, 256], sizes = [256, 128], strides = [1, 1]} : vector<256x384xf32> to vector<256x128xf32>
    %86 = arith.mulf %85, %83 : vector<256x128xf32>
    %87 = arith.addf %86, %84 : vector<256x128xf32>
    %88 = arith.negf %87 : vector<256x128xf32>
    %89 = math.exp %88 : vector<256x128xf32>
    %cst_24 = arith.constant 1.000000e+00 : f32
    %90 = vector.broadcast %cst_24 : f32 to vector<256x128xf32>
    %91 = arith.addf %90, %89 : vector<256x128xf32>
    %92 = arith.divf %90, %91 : vector<256x128xf32>
    %93 = arith.mulf %87, %92 : vector<256x128xf32>
    %94 = arith.mulf %27, %77 : vector<256x128xf32>
    %95 = arith.addf %94, %26 : vector<256x128xf32>
    %96 = arith.negf %95 : vector<256x128xf32>
    %97 = math.exp %96 : vector<256x128xf32>
    %cst_25 = arith.constant 1.000000e+00 : f32
    %98 = vector.broadcast %cst_25 : f32 to vector<256x128xf32>
    %99 = arith.addf %98, %97 : vector<256x128xf32>
    %100 = arith.divf %98, %99 : vector<256x128xf32>
    %101 = arith.mulf %95, %100 : vector<256x128xf32>
    %102 = arith.addf %93, %101 : vector<256x128xf32>
    %c0_26 = arith.constant 0 : index
    %c0_27 = arith.constant 0 : index
    %103 = vector.load %arg11[%c0_26, %c0_27] : memref<256x128xf32, #tpu.memory_space<vmem>>, vector<256x128xf32>
    tpu.vector_store %arg11[%c0_26, %c0_27], %102 {strides = array<i32>} : memref<256x128xf32, #tpu.memory_space<vmem>>, vector<256x128xf32>,
    return
  }
  func.func @transform_0(%arg0: i32) -> (i32, i32) {
    %c0_i32 = arith.constant 0 : i32
    %c0_i32_0 = arith.constant 0 : i32
    return %arg0, %c0_i32 : i32, i32
  }
  func.func @transform_1(%arg0: i32) -> (i32, i32, i32) {
    %c0_i32 = arith.constant 0 : i32
    %c0_i32_0 = arith.constant 0 : i32
    %c0_i32_1 = arith.constant 0 : i32
    return %arg0, %c0_i32, %c0_i32_0 : i32, i32, i32
  }
  func.func @transform_2(%arg0: i32) -> (i32, i32) {
    %c0_i32 = arith.constant 0 : i32
    %c0_i32_0 = arith.constant 0 : i32
    %c0_i32_1 = arith.constant 0 : i32
    return %c0_i32, %c0_i32_0 : i32, i32
  }
  func.func @transform_3(%arg0: i32) -> (i32, i32) {
    %c0_i32 = arith.constant 0 : i32
    %c0_i32_0 = arith.constant 0 : i32
    %c0_i32_1 = arith.constant 0 : i32
    return %c0_i32, %c0_i32_0 : i32, i32
  }
  func.func @transform_4(%arg0: i32) -> (i32, i32) {
    %c0_i32 = arith.constant 0 : i32
    %c0_i32_0 = arith.constant 0 : i32
    %c0_i32_1 = arith.constant 0 : i32
    return %c0_i32, %c0_i32_0 : i32, i32
  }
  func.func @transform_5(%arg0: i32) -> (i32, i32) {
    %c0_i32 = arith.constant 0 : i32
    %c0_i32_0 = arith.constant 0 : i32
    %c0_i32_1 = arith.constant 0 : i32
    return %c0_i32, %c0_i32_0 : i32, i32
  }
  func.func @transform_6(%arg0: i32) -> (i32, i32) {
    %c0_i32 = arith.constant 0 : i32
    %c0_i32_0 = arith.constant 0 : i32
    %c0_i32_1 = arith.constant 0 : i32
    return %c0_i32, %c0_i32_0 : i32, i32
  }
  func.func @transform_7(%arg0: i32) -> (i32, i32) {
    %c0_i32 = arith.constant 0 : i32
    %c0_i32_0 = arith.constant 0 : i32
    %c0_i32_1 = arith.constant 0 : i32
    return %c0_i32, %c0_i32_0 : i32, i32
  }
  func.func @transform_8(%arg0: i32) -> (i32, i32) {
    %c0_i32 = arith.constant 0 : i32
    %c0_i32_0 = arith.constant 0 : i32
    %c0_i32_1 = arith.constant 0 : i32
    return %c0_i32, %c0_i32_0 : i32, i32
  }
  func.func @transform_9(%arg0: i32) -> (i32, i32) {
    %c0_i32 = arith.constant 0 : i32
    %c0_i32_0 = arith.constant 0 : i32
    %c0_i32_1 = arith.constant 0 : i32
    return %c0_i32, %c0_i32_0 : i32, i32
  }
  func.func @transform_10(%arg0: i32) -> (i32, i32) {
    %c0_i32 = arith.constant 0 : i32
    %c0_i32_0 = arith.constant 0 : i32
    return %arg0, %c0_i32 : i32, i32
  }
}

</mosaic_0001>

<bundles_post_ra>
// kernel: tpu_custom_call.1
= control target key start
LH: loop header
LB: loop body
LE: loop exit
PB: predicated region body
PF: predicated region fallthrough
CT: control target
= control target key end

     0   :  { %15 = vsyncpa [#allocation3], 0  ;;  %s10326_s0 = inlined_call_operand.vmem [shape: f32[256,128], index: 0, kind: input, shape index: {}]   ;;  %s10327_s1 = inlined_call_operand.vmem [shape: f32[32,8,8], index: 1, kind: input, shape index: {}]   ;;  %s10328_s2 = inlined_call_operand.hbm [shape: f32[128,256], index: 2, kind: input, shape index: {}]   ;;  %s10329_s3 = inlined_call_operand.vmem [shape: f32[1,256], index: 3, kind: input, shape index: {}]   ;;  %s10330_s4 = inlined_call_operand.hbm [shape: f32[128,128], index: 4, kind: input, shape index: {}]   ;;  %s10331_s5 = inlined_call_operand.vmem [shape: f32[1,128], index: 5, kind: input, shape index: {}]   ;;  %s10332_s6 = inlined_call_operand.hbm [shape: f32[128,384], index: 6, kind: input, shape index: {}]   ;;  %s10333_s7 = inlined_call_operand.vmem [shape: f32[1,384], index: 7, kind: input, shape index: {}]   ;;  %s10334_s8 = inlined_call_operand.hbm [shape: f32[128,384], index: 8, kind: input, shape index: {}]   ;;  %s10335_s9 = inlined_call_operand.vmem [shape: f32[1,384], index: 9, kind: input, shape index: {}]   ;;  %s10336_s10 = inlined_call_operand.hbm [shape: f32[256,128], index: 10, kind: output, shape index: {}]  }
   0x1   :  { %16 = vsyncpa [#allocation6], 0 }
   0x2   :  { %17 = vsyncpa [#allocation9], 0 }
   0x3   :  { %18 = vsyncpa [#allocation4], 0  ;;  %s6379_s13 = smov [#allocation5]  }
   0x4   :  { %s42_s14 = sshll.u32 %s6379_s13, 4  ;;  %s43_s14 = int_to_ptr.vmem [resolvable:$true] %s42_s14 }
   0x5   :  { %s6279_s15 = scalar_lea.vmem %s43_s14, 2048  ;;  %p6284_p1 = scmp.lt.s32.totalorder %s43_s14, %s43_s14 }
   0x6   :  { %p6280_p0 = scmp.ne.s32.totalorder %s43_s14, %s6279_s15  ;;  %p6285_p2 = scmp.lt.s32.totalorder %s6279_s15, %s6279_s15 }
   0x8   :  { %p6286_p3 = por %p6285_p2, %p6284_p1 }
   0xa   :  { %p6287_p4 = pnand %p6286_p3, %p6280_p0 }
   0xc   :  { %6290 = shalt.err (!%p6287_p4)
}
   0xd   :  { %s6380_s16 = smov 128   ;;  %s6381_s17 = smov 8  }
   0xe   :  { %48 = dma.hbm_to_vmem [thread:$0]  %s10330_s4, 2048, %s43_s14, [#allocation6], %s6380_s16, %s6380_s16, %s6381_s17  }
   0xf   :  { %s6382_s20 = smov [#allocation2]  }
  0x10   :  { %s28_s21 = sshll.u32 %s6382_s20, 4  ;;  %s29_s21 = int_to_ptr.vmem [resolvable:$true] %s28_s21 }
  0x11   :  { %s6299_s22 = scalar_lea.vmem %s29_s21, 4096  ;;  %p6304_p6 = scmp.lt.s32.totalorder %s29_s21, %s29_s21 }
  0x12   :  { %p6300_p5 = scmp.ne.s32.totalorder %s29_s21, %s6299_s22  ;;  %p6305_p7 = scmp.lt.s32.totalorder %s6299_s22, %s6299_s22 }
  0x14   :  { %p6306_p8 = por %p6305_p7, %p6304_p6 }
  0x16   :  { %p6307_p9 = pnand %p6306_p8, %p6300_p5 }
  0x18   :  { %6310 = shalt.err (!%p6307_p9)
}
  0x19   :  { %s6383_s23 = smov 256   ;;  %s6384_s24 = smov 16  }
  0x1a   :  { %34 = dma.hbm_to_vmem [thread:$0]  %s10328_s2, 4096, %s29_s21, [#allocation3], %s6383_s23, %s6383_s23, %s6384_s24  }
  0x1b   :  { %s6385_s27 = smov [#allocation7]  }
  0x1c   :  { %s56_s28 = sshll.u32 %s6385_s27, 4  ;;  %s57_s28 = int_to_ptr.vmem [resolvable:$true] %s56_s28 }
  0x1d   :  { %s6319_s4 = scalar_lea.vmem %s57_s28, 6144  ;;  %p6324_p11 = scmp.lt.s32.totalorder %s57_s28, %s57_s28 }
  0x1e   :  { %p6320_p10 = scmp.ne.s32.totalorder %s57_s28, %s6319_s4  ;;  %p6325_p12 = scmp.lt.s32.totalorder %s6319_s4, %s6319_s4 }
  0x20   :  { %p6326_p13 = por %p6325_p12, %p6324_p11 }
  0x22   :  { %p6327_p0 = pnand %p6326_p13, %p6320_p10 }
  0x24   :  { %6330 = shalt.err (!%p6327_p0)
}
  0x25   :  { %s6386_s29 = smov 384   ;;  %s6387_s30 = smov 24  }
  0x26   :  { %62 = dma.hbm_to_vmem [thread:$0]  %s10332_s6, 6144, %s57_s28, [#allocation6], %s6386_s29, %s6386_s29, %s6387_s30  }
  0x27   :  { %s6388_s13 = smov [#allocation8]  }
  0x28   :  { %s70_s14 = sshll.u32 %s6388_s13, 4  ;;  %s71_s14 = int_to_ptr.vmem [resolvable:$true] %s70_s14 }
  0x29   :  { %s6339_s2 = scalar_lea.vmem %s71_s14, 6144  ;;  %p6344_p2 = scmp.lt.s32.totalorder %s71_s14, %s71_s14 }
  0x2a   :  { %p6340_p1 = scmp.ne.s32.totalorder %s71_s14, %s6339_s2  ;;  %p6345_p3 = scmp.lt.s32.totalorder %s6339_s2, %s6339_s2 }
  0x2c   :  { %p6346_p4 = por %p6345_p3, %p6344_p2 }
  0x2e   :  { %p6347_p5 = pnand %p6346_p4, %p6340_p1 }
  0x30   :  { %6350 = shalt.err (!%p6347_p5)
}
  0x31   :  { %76 = dma.hbm_to_vmem [thread:$0]  %s10334_s8, 6144, %s71_s14, [#allocation9], %s6386_s29, %s6386_s29, %s6387_s30  }
  0x32   :  { %6371 = dma.done.wait [#allocation3], 4096  }
  0x33   :  { %6372 = vsyncadd [#allocation3], 4294963200 }
  0x34   :  { %6373 = dma.done.wait [#allocation6], 8192  }
  0x35   :  { %6374 = vsyncadd [#allocation6], 4294959104 }
  0x36   :  { %6375 = dma.done.wait [#allocation9], 6144  }
  0x37   :  { %6376 = vsyncadd [#allocation9], 4294961152  ;;  %v10337_v0 = vmov 0.0   ;;  %v6390_v1 = vmov 0   ;;  %v154_v2 = vld [vmem:[#allocation2 + $0xf8] sm:$0xff]  ;;  %v153_v3 = vld [vmem:[#allocation2 + $0xf0] sm:$0xff] }
  0x38   :  { %231 = vmatprep.mubr.f32.mxu0 %v10337_v0  ;;  %5807 = vset.pattern.permute.xlu1 %v6390_v1  ;;  %v152_v4 = vld [vmem:[#allocation2 + $0xe8] sm:$0xff]  ;;  %v151_v5 = vld [vmem:[#allocation2 + $0xe0] sm:$0xff]  ;;  %v150_v6 = vld [vmem:[#allocation2 + $0xd8] sm:$0xff] }
  0x39   :  { %375 = vmatprep.mubr.f32.mxu1 %v10337_v0  ;;  %5806 = vset.pattern.permute.xlu0 %v6390_v1  ;;  %v149_v7 = vld [vmem:[#allocation2 + $0xd0] sm:$0xff]  ;;  %v148_v8 = vld [vmem:[#allocation2 + $0xc8] sm:$0xff]  ;;  %v147_v9 = vld [vmem:[#allocation2 + $0xc0] sm:$0xff] }
  0x3a   :  { %167 = vmatprep.subr.mxu0 %v154_v2  ;;  %5754 = vmatprep.subr.mxu1 %v154_v2  ;;  %v146_v10 = vld [vmem:[#allocation2 + $0xb8] sm:$0xff]  ;;  %v145_v11 = vld [vmem:[#allocation2 + $0xb0] sm:$0xff]  ;;  %v144_v12 = vld [vmem:[#allocation2 + $0xa8] sm:$0xff] }
  0x3b   :  { %168 = vmatpush1.msra.mxu0 %v153_v3  ;;  %5770 = vmatpush1.msra.mxu1 %v153_v3  ;;  %v143_v13 = vld [vmem:[#allocation2 + $0xa0] sm:$0xff]  ;;  %v142_v14 = vld [vmem:[#allocation2 + $0x98] sm:$0xff]  ;;  %v141_v15 = vld [vmem:[#allocation2 + $0x90] sm:$0xff] }
  0x3c   :  { %169 = vmatprep.subr.mxu0 %v152_v4  ;;  %5755 = vmatprep.subr.mxu1 %v152_v4  ;;  %v140_v16 = vld [vmem:[#allocation2 + $0x88] sm:$0xff]  ;;  %v139_v17 = vld [vmem:[#allocation2 + $0x80] sm:$0xff]  ;;  %v138_v18 = vld [vmem:[#allocation2 + $0x78] sm:$0xff] }
  0x3d   :  { %170 = vmatpush1.msra.mxu0 %v151_v5  ;;  %5771 = vmatpush1.msra.mxu1 %v151_v5  ;;  %v137_v19 = vld [vmem:[#allocation2 + $0x70] sm:$0xff]  ;;  %v136_v20 = vld [vmem:[#allocation2 + $0x68] sm:$0xff]  ;;  %v135_v21 = vld [vmem:[#allocation2 + $0x60] sm:$0xff] }
  0x3e   :  { %171 = vmatprep.subr.mxu0 %v150_v6  ;;  %5756 = vmatprep.subr.mxu1 %v150_v6  ;;  %v134_v22 = vld [vmem:[#allocation2 + $0x58] sm:$0xff]  ;;  %v133_v23 = vld [vmem:[#allocation2 + $0x50] sm:$0xff]  ;;  %v132_v24 = vld [vmem:[#allocation2 + $0x48] sm:$0xff] }
  0x3f   :  { %172 = vmatpush1.msra.mxu0 %v149_v7  ;;  %5772 = vmatpush1.msra.mxu1 %v149_v7  ;;  %v131_v25 = vld [vmem:[#allocation2 + $0x40] sm:$0xff]  ;;  %v130_v26 = vld [vmem:[#allocation2 + $0x38] sm:$0xff]  ;;  %v129_v27 = vld [vmem:[#allocation2 + $0x30] sm:$0xff] }
  0x40   :  { %173 = vmatprep.subr.mxu0 %v148_v8  ;;  %5757 = vmatprep.subr.mxu1 %v148_v8  ;;  %v128_v28 = vld [vmem:[#allocation2 + $0x28] sm:$0xff]  ;;  %v6474_v29 = vld [vmem:[%s10327_s1 + $0x10] sm:$0xff]  ;;  %v127_v30 = vld [vmem:[#allocation2 + $0x20] sm:$0xff] }
  0x41   :  { %174 = vmatpush1.msra.mxu0 %v147_v9  ;;  %5773 = vmatpush1.msra.mxu1 %v147_v9  ;;  %v126_v31 = vld [vmem:[#allocation2 + $0x18] sm:$0xff]  ;;  %v125_v32 = vld [vmem:[#allocation2 + $0x10] sm:$0xff]  ;;  %v124_v33 = vld [vmem:[#allocation2 + $0x8] sm:$0xff] }
  0x42   :  { %175 = vmatprep.subr.mxu0 %v146_v10  ;;  %5758 = vmatprep.subr.mxu1 %v146_v10  ;;  %v123_v34 = vld [vmem:[#allocation2] sm:$0xff]  ;;  %v6480_v35 = vld [vmem:[%s10327_s1 + $0x18] sm:$0xff]  ;;  %v6497_v39 = vld [vmem:[%s10327_s1 + $0x28] sm:$0xff] }
  0x43   :  { %176 = vmatpush1.msra.mxu0 %v145_v11  ;;  %5774 = vmatpush1.msra.mxu1 %v145_v11  ;;  %v91_v36 = vld [vmem:[%s10326_s0] sm:$0xff]  ;;  %v92_v40 = vld [vmem:[%s10326_s0 + $0x8] sm:$0xff]  ;;  %v6517_v43 = vld [vmem:[%s10327_s1 + $0x38] sm:$0xff] }
  0x44   :  { %177 = vmatprep.subr.mxu0 %v144_v12  ;;  %5759 = vmatprep.subr.mxu1 %v144_v12  ;;  %v115_v37 = vld [vmem:[%s10326_s0 + $0xc0] sm:$0xff]  ;;  %v116_v41 = vld [vmem:[%s10326_s0 + $0xc8] sm:$0xff]  ;;  %v93_v44 = vld [vmem:[%s10326_s0 + $0x10] sm:$0xff] }
  0x45   :  { %178 = vmatpush1.msra.mxu0 %v143_v13  ;;  %5775 = vmatpush1.msra.mxu1 %v143_v13  ;;  %v6492_v38 = vld [vmem:[%s10327_s1] sm:$0xff]  ;;  %v6512_v42 = vld [vmem:[%s10327_s1 + $0x8] sm:$0xff]  ;;  %v117_v45 = vld [vmem:[%s10326_s0 + $0xd0] sm:$0xff] }
  0x46   :  { %179 = vmatprep.subr.mxu0 %v142_v14  ;;  %5760 = vmatprep.subr.mxu1 %v142_v14  ;;  %v6532_v46 = vld [vmem:[%s10327_s1 + $0x20] sm:$0xff]  ;;  %v6537_v47 = vld [vmem:[%s10327_s1 + $0x48] sm:$0xff]  ;;  %v94_v48 = vld [vmem:[%s10326_s0 + $0x18] sm:$0xff] }
  0x47   :  { %180 = vmatpush1.msra.mxu0 %v141_v15  ;;  %5776 = vmatpush1.msra.mxu1 %v141_v15  ;;  %v118_v49 = vld [vmem:[%s10326_s0 + $0xd8] sm:$0xff]  ;;  %v6552_v50 = vld [vmem:[%s10327_s1 + $0x30] sm:$0xff]  ;;  %v95_v52 = vld [vmem:[%s10326_s0 + $0x20] sm:$0xff] }
  0x48   :  { %181 = vmatprep.subr.mxu0 %v140_v16  ;;  %5761 = vmatprep.subr.mxu1 %v140_v16  ;;  %v6557_v51 = vld [vmem:[%s10327_s1 + $0x58] sm:$0xff]  ;;  %v119_v53 = vld [vmem:[%s10326_s0 + $0xe0] sm:$0xff]  ;;  %v6577_v55 = vld [vmem:[%s10327_s1 + $0x68] sm:$0xff] }
  0x49   :  { %182 = vmatpush1.msra.mxu0 %v139_v17  ;;  %5777 = vmatpush1.msra.mxu1 %v139_v17  ;;  %v6572_v54 = vld [vmem:[%s10327_s1 + $0x40] sm:$0xff]  ;;  %v96_v56 = vld [vmem:[%s10326_s0 + $0x28] sm:$0xff]  ;;  %v6592_v58 = vld [vmem:[%s10327_s1 + $0x50] sm:$0xff] }
  0x4a   :  { %183 = vmatprep.subr.mxu0 %v138_v18  ;;  %5762 = vmatprep.subr.mxu1 %v138_v18  ;;  %v120_v57 = vld [vmem:[%s10326_s0 + $0xe8] sm:$0xff]  ;;  %v6597_v59 = vld [vmem:[%s10327_s1 + $0x78] sm:$0xff]  ;;  %v97_v60 = vld [vmem:[%s10326_s0 + $0x30] sm:$0xff] }
  0x4b   :  { %184 = vmatpush1.msra.mxu0 %v137_v19  ;;  %5778 = vmatpush1.msra.mxu1 %v137_v19  ;;  %v121_v61 = vld [vmem:[%s10326_s0 + $0xf0] sm:$0xff]  ;;  %v6612_v62 = vld [vmem:[%s10327_s1 + $0x60] sm:$0xff]  ;;  %v6617_v63 = vld [vmem:[%s10327_s1 + $0x88] sm:$0xff] }
  0x4c   :  { %185 = vmatprep.subr.mxu0 %v136_v20  ;;  %5763 = vmatprep.subr.mxu1 %v136_v20  ;;  %v98_v1 = vld [vmem:[%s10326_s0 + $0x38] sm:$0xff]  ;;  %v6632_v3 = vld [vmem:[%s10327_s1 + $0x70] sm:$0xff]  ;;  %v99_v5 = vld [vmem:[%s10326_s0 + $0x40] sm:$0xff] }
  0x4d   :  { %186 = vmatpush1.msra.mxu0 %v135_v21  ;;  %5779 = vmatpush1.msra.mxu1 %v135_v21  ;;  %v122_v2 = vld [vmem:[%s10326_s0 + $0xf8] sm:$0xff]  ;;  %v6648_v6 = vld [vmem:[%s10327_s1 + $0x80] sm:$0xff]  ;;  %v6653_v7 = vld [vmem:[%s10327_s1 + $0xa8] sm:$0xff] }
  0x4e   :  { %187 = vmatprep.subr.mxu0 %v134_v22  ;;  %5764 = vmatprep.subr.mxu1 %v134_v22  ;;  %v6637_v4 = vld [vmem:[%s10327_s1 + $0x98] sm:$0xff]  ;;  %v100_v8 = vld [vmem:[%s10326_s0 + $0x48] sm:$0xff]  ;;  %v6664_v9 = vld [vmem:[%s10327_s1 + $0x90] sm:$0xff] }
  0x4f   :  { %188 = vmatpush1.msra.mxu0 %v133_v23  ;;  %5780 = vmatpush1.msra.mxu1 %v133_v23  ;;  %v6669_v10 = vld [vmem:[%s10327_s1 + $0xb8] sm:$0xff]  ;;  %v101_v11 = vld [vmem:[%s10326_s0 + $0x50] sm:$0xff]  ;;  %v6680_v12 = vld [vmem:[%s10327_s1 + $0xa0] sm:$0xff] }
  0x50   :  { %189 = vmatprep.subr.mxu0 %v132_v24  ;;  %5765 = vmatprep.subr.mxu1 %v132_v24  ;;  %v6685_v13 = vld [vmem:[%s10327_s1 + $0xc8] sm:$0xff]  ;;  %v102_v14 = vld [vmem:[%s10326_s0 + $0x58] sm:$0xff]  ;;  %v6696_v15 = vld [vmem:[%s10327_s1 + $0xb0] sm:$0xff] }
  0x51   :  { %190 = vmatpush1.msra.mxu0 %v131_v25  ;;  %5781 = vmatpush1.msra.mxu1 %v131_v25  ;;  %v6701_v16 = vld [vmem:[%s10327_s1 + $0xd8] sm:$0xff]  ;;  %v103_v17 = vld [vmem:[%s10326_s0 + $0x60] sm:$0xff]  ;;  %v6717_v19 = vld [vmem:[%s10327_s1 + $0xe8] sm:$0xff] }
  0x52   :  { %191 = vmatprep.subr.mxu0 %v130_v26  ;;  %5766 = vmatprep.subr.mxu1 %v130_v26  ;;  %v6712_v18 = vld [vmem:[%s10327_s1 + $0xc0] sm:$0xff]  ;;  %v104_v20 = vld [vmem:[%s10326_s0 + $0x68] sm:$0xff]  ;;  %v6728_v21 = vld [vmem:[%s10327_s1 + $0xd0] sm:$0xff]  ;;  %v6391_v26 = vmov 1  }
  0x53   :  { %192 = vmatpush1.msra.mxu0 %v129_v27  ;;  %5782 = vmatpush1.msra.mxu1 %v129_v27  ;;  %v6733_v22 = vld [vmem:[%s10327_s1 + $0xf8] sm:$0xff]  ;;  %v105_v23 = vld [vmem:[%s10326_s0 + $0x70] sm:$0xff]  ;;  %v6744_v24 = vld [vmem:[%s10327_s1 + $0xe0] sm:$0xff] }
  0x54   :  { %193 = vmatprep.subr.mxu0 %v128_v28  ;;  %1519 = vperm.xlu1 %5807, %v6474_v29   ;;  %v106_v25 = vld [vmem:[%s10326_s0 + $0x78] sm:$0xff]  ;;  %v6754_v27 = vld [vmem:[%s10327_s1 + $0xf0] sm:$0xff] }
  0x55   :  { %194 = vmatpush1.msra.mxu0 %v127_v30  ;;  %5767 = vmatprep.subr.mxu1 %v128_v28  ;;  %v107_v28 = vld [vmem:[%s10326_s0 + $0x80] sm:$0xff] }
  0x56   :  { %195 = vmatprep.subr.mxu0 %v126_v31  ;;  %5783 = vmatpush1.msra.mxu1 %v127_v30  ;;  %v108_v30 = vld [vmem:[%s10326_s0 + $0x88] sm:$0xff] }
  0x57   :  { %196 = vmatpush1.msra.mxu0 %v125_v32  ;;  %5768 = vmatprep.subr.mxu1 %v126_v31  ;;  %v109_v31 = vld [vmem:[%s10326_s0 + $0x90] sm:$0xff] }
  0x58   :  { %197 = vmatprep.subr.mxu0 %v124_v33  ;;  %5784 = vmatpush1.msra.mxu1 %v125_v32  ;;  %v663_v32 = vld [vmem:[#allocation5 + $0x78] sm:$0xff] }
  0x59   :  { %198 = vmatpush1.msra.mxu0 %v123_v34  ;;  %1524 = vperm.xlu1 %5807, %v6480_v35  }
  0x5a   :  { %232 = vmatmul.mubr.f32.vlgmr.msra.gmra.mxu0 %v91_v36  ;;  %5769 = vmatprep.subr.mxu1 %v124_v33  ;;  %v110_v33 = vld [vmem:[%s10326_s0 + $0x98] sm:$0xff]  ;;  %v661_v36 = vld [vmem:[#allocation5 + $0x68] sm:$0xff] }
  0x5b   :  { %237 = vmatprep.mubr.f32.mxu0 %v10337_v0  ;;  %5785 = vmatpush1.msra.mxu1 %v123_v34  ;;  %v662_v34 = vld [vmem:[#allocation5 + $0x70] sm:$0xff] }
  0x5c   :  { %376 = vmatmul.mubr.f32.vlgmr.msra.gmra.mxu1 %v115_v37  ;;  %1509 = vperm.xlu0 %5806, %v6492_v38   ;;  %v111_v37 = vld [vmem:[%s10326_s0 + $0xa0] sm:$0xff] }
  0x5d   :  { %1534 = vperm.xlu1 %5807, %v6497_v39   ;;  %381 = vmatprep.mubr.f32.mxu1 %v10337_v0 }
  0x5e   :  { %238 = vmatmul.mubr.f32.gmra.mxu0 %v92_v40  ;;  %5514 = vmatprep.subr.mxu1 %v663_v32  ;;  %v660_v40 = vld [vmem:[#allocation5 + $0x60] sm:$0xff] }
  0x5f   :  { %243 = vmatprep.mubr.f32.mxu0 %v10337_v0  ;;  %5515 = vmatpush3.msra.mxu1 %v663_v32 }
  0x60   :  { %382 = vmatmul.mubr.f32.gmra.mxu1 %v116_v41  ;;  %1514 = vperm.xlu0 %5806, %v6512_v42   ;;  %v112_v41 = vld [vmem:[%s10326_s0 + $0xa8] sm:$0xff] }
  0x61   :  { %1544 = vperm.xlu1 %5807, %v6517_v43   ;;  %387 = vmatprep.mubr.f32.mxu1 %v10337_v0 }
  0x62   :  { %244 = vmatmul.mubr.f32.gmra.mxu0 %v93_v44  ;;  %5516 = vmatprep.subr.mxu1 %v662_v34  ;;  %v659_v44 = vld [vmem:[#allocation5 + $0x58] sm:$0xff] }
  0x63   :  { %249 = vmatprep.mubr.f32.mxu0 %v10337_v0  ;;  %5517 = vmatpush3.msra.mxu1 %v662_v34 }
  0x64   :  { %388 = vmatmul.mubr.f32.gmra.mxu1 %v117_v45  ;;  %1529 = vperm.xlu0 %5806, %v6532_v46   ;;  %v658_v45 = vld [vmem:[#allocation5 + $0x50] sm:$0xff] }
  0x65   :  { %1554 = vperm.xlu1 %5807, %v6537_v47   ;;  %393 = vmatprep.mubr.f32.mxu1 %v10337_v0 }
  0x66   :  { %250 = vmatmul.mubr.f32.gmra.mxu0 %v94_v48  ;;  %5518 = vmatprep.subr.mxu1 %v661_v36  ;;  %v113_v48 = vld [vmem:[%s10326_s0 + $0xb0] sm:$0xff] }
  0x67   :  { %255 = vmatprep.mubr.f32.mxu0 %v10337_v0  ;;  %5519 = vmatpush3.msra.mxu1 %v661_v36 }
  0x68   :  { %394 = vmatmul.mubr.f32.gmra.mxu1 %v118_v49  ;;  %1539 = vperm.xlu0 %5806, %v6552_v50   ;;  %v657_v49 = vld [vmem:[#allocation5 + $0x48] sm:$0xff] }
  0x69   :  { %1564 = vperm.xlu1 %5807, %v6557_v51   ;;  %399 = vmatprep.mubr.f32.mxu1 %v10337_v0 }
  0x6a   :  { %256 = vmatmul.mubr.f32.gmra.mxu0 %v95_v52  ;;  %5520 = vmatprep.subr.mxu1 %v660_v40  ;;  %v656_v52 = vld [vmem:[#allocation5 + $0x40] sm:$0xff] }
  0x6b   :  { %261 = vmatprep.mubr.f32.mxu0 %v10337_v0  ;;  %5521 = vmatpush3.msra.mxu1 %v660_v40 }
  0x6c   :  { %400 = vmatmul.mubr.f32.gmra.mxu1 %v119_v53  ;;  %1549 = vperm.xlu0 %5806, %v6572_v54   ;;  %v114_v53 = vld [vmem:[%s10326_s0 + $0xb8] sm:$0xff] }
  0x6d   :  { %1574 = vperm.xlu1 %5807, %v6577_v55   ;;  %405 = vmatprep.mubr.f32.mxu1 %v10337_v0 }
  0x6e   :  { %262 = vmatmul.mubr.f32.gmra.mxu0 %v96_v56  ;;  %5522 = vmatprep.subr.mxu1 %v659_v44  ;;  %v655_v56 = vld [vmem:[#allocation5 + $0x38] sm:$0xff] }
  0x6f   :  { %267 = vmatprep.mubr.f32.mxu0 %v10337_v0  ;;  %5523 = vmatpush3.msra.mxu1 %v659_v44 }
  0x70   :  { %406 = vmatmul.mubr.f32.gmra.mxu1 %v120_v57  ;;  %1559 = vperm.xlu0 %5806, %v6592_v58   ;;  %v654_v57 = vld [vmem:[#allocation5 + $0x30] sm:$0xff] }
  0x71   :  { %1584 = vperm.xlu1 %5807, %v6597_v59   ;;  %411 = vmatprep.mubr.f32.mxu1 %v10337_v0 }
  0x72   :  { %268 = vmatmul.mubr.f32.gmra.mxu0 %v97_v60  ;;  %5524 = vmatprep.subr.mxu1 %v658_v45  ;;  %v653_v60 = vld [vmem:[#allocation5 + $0x28] sm:$0xff] }
  0x73   :  { %273 = vmatprep.mubr.f32.mxu0 %v10337_v0  ;;  %5525 = vmatpush3.msra.mxu1 %v658_v45 }
  0x74   :  { %412 = vmatmul.mubr.f32.gmra.mxu1 %v121_v61  ;;  %1569 = vperm.xlu0 %5806, %v6612_v62   ;;  %v652_v61 = vld [vmem:[#allocation5 + $0x20] sm:$0xff] }
  0x75   :  { %1594 = vperm.xlu1 %5807, %v6617_v63   ;;  %417 = vmatprep.mubr.f32.mxu1 %v10337_v0 }
  0x76   :  { %274 = vmatmul.mubr.f32.gmra.mxu0 %v98_v1  ;;  %5526 = vmatprep.subr.mxu1 %v657_v49  ;;  %v651_v1 = vld [vmem:[#allocation5 + $0x18] sm:$0xff] }
  0x77   :  { %279 = vmatprep.mubr.f32.mxu0 %v10337_v0  ;;  %5527 = vmatpush3.msra.mxu1 %v657_v49 }
  0x78   :  { %418 = vmatmul.mubr.f32.gmra.mxu1 %v122_v2  ;;  %1579 = vperm.xlu0 %5806, %v6632_v3   ;;  %v650_v2 = vld [vmem:[#allocation5 + $0x10] sm:$0xff] }
  0x79   :  { %1604 = vperm.xlu1 %5807, %v6637_v4   ;;  %5528 = vmatprep.subr.mxu1 %v656_v52 }
  0x7a   :  { %280 = vmatmul.mubr.f32.gmra.mxu0 %v99_v5  ;;  %5529 = vmatpush3.msra.mxu1 %v656_v52  ;;  %v649_v5 = vld [vmem:[#allocation5 + $0x8] sm:$0xff] }
  0x7b   :  { %285 = vmatprep.mubr.f32.mxu0 %v10337_v0  ;;  %5530 = vmatprep.subr.mxu1 %v655_v56 }
  0x7c   :  { %1589 = vperm.xlu0 %5806, %v6648_v6   ;;  %5531 = vmatpush3.msra.mxu1 %v655_v56 }
  0x7d   :  { %1614 = vperm.xlu1 %5807, %v6653_v7   ;;  %5532 = vmatprep.subr.mxu1 %v654_v57 }
  0x7e   :  { %286 = vmatmul.mubr.f32.gmra.mxu0 %v100_v8  ;;  %5533 = vmatpush3.msra.mxu1 %v654_v57  ;;  %v648_v8 = vld [vmem:[#allocation5] sm:$0xff] }
  0x7f   :  { %291 = vmatprep.mubr.f32.mxu0 %v10337_v0  ;;  %5534 = vmatprep.subr.mxu1 %v653_v60 }
  0x80   :  { %1599 = vperm.xlu0 %5806, %v6664_v9   ;;  %5535 = vmatpush3.msra.mxu1 %v653_v60 }
  0x81   :  { %1624 = vperm.xlu1 %5807, %v6669_v10   ;;  %5536 = vmatprep.subr.mxu1 %v652_v61 }
  0x82   :  { %292 = vmatmul.mubr.f32.gmra.mxu0 %v101_v11  ;;  %5537 = vmatpush3.msra.mxu1 %v652_v61 }
  0x83   :  { %297 = vmatprep.mubr.f32.mxu0 %v10337_v0  ;;  %5538 = vmatprep.subr.mxu1 %v651_v1 }
  0x84   :  { %1609 = vperm.xlu0 %5806, %v6680_v12   ;;  %5539 = vmatpush3.msra.mxu1 %v651_v1 }
  0x85   :  { %1634 = vperm.xlu1 %5807, %v6685_v13   ;;  %5540 = vmatprep.subr.mxu1 %v650_v2 }
  0x86   :  { %298 = vmatmul.mubr.f32.gmra.mxu0 %v102_v14  ;;  %5541 = vmatpush3.msra.mxu1 %v650_v2 }
  0x87   :  { %303 = vmatprep.mubr.f32.mxu0 %v10337_v0  ;;  %5542 = vmatprep.subr.mxu1 %v649_v5 }
  0x88   :  { %1619 = vperm.xlu0 %5806, %v6696_v15   ;;  %5543 = vmatpush3.msra.mxu1 %v649_v5  ;;  %v157_v5 = vlaneseq }
  0x89   :  { %1644 = vperm.xlu1 %5807, %v6701_v16   ;;  %5544 = vmatprep.subr.mxu1 %v648_v8 }
  0x8a   :  { %304 = vmatmul.mubr.f32.gmra.mxu0 %v103_v17  ;;  %5545 = vmatpush3.msra.mxu1 %v648_v8  ;;  %v6392_v17 = vmov 2  }
  0x8b   :  { %309 = vmatprep.mubr.f32.mxu0 %v10337_v0 }
  0x8c   :  { %1629 = vperm.xlu0 %5806, %v6712_v18  }
  0x8d   :  { %1654 = vperm.xlu1 %5807, %v6717_v19  }
  0x8e   :  { %310 = vmatmul.mubr.f32.gmra.mxu0 %v104_v20 }
  0x8f   :  { %315 = vmatprep.mubr.f32.mxu0 %v10337_v0 }
  0x90   :  { %1639 = vperm.xlu0 %5806, %v6728_v21  }
  0x91   :  { %1664 = vperm.xlu1 %5807, %v6733_v22  }
  0x92   :  { %316 = vmatmul.mubr.f32.gmra.mxu0 %v105_v23 }
  0x93   :  { %321 = vmatprep.mubr.f32.mxu0 %v10337_v0 }
  0x94   :  { %1649 = vperm.xlu0 %5806, %v6744_v24  }
  0x95   :  { %5809 = vset.pattern.permute.xlu1 %v6391_v26 }
  0x96   :  { %322 = vmatmul.mubr.f32.gmra.mxu0 %v106_v25  ;;  %1832 = vperm.xlu1 %5809, %v6512_v42  }
  0x97   :  { %327 = vmatprep.mubr.f32.mxu0 %v10337_v0 }
  0x98   :  { %1659 = vperm.xlu0 %5806, %v6754_v27  }
  0x9a   :  { %328 = vmatmul.mubr.f32.gmra.mxu0 %v107_v28  ;;  %1836 = vperm.xlu1 %5809, %v6474_v29  }
  0x9b   :  { %333 = vmatprep.mubr.f32.mxu0 %v10337_v0 }
  0x9c   :  { %5808 = vset.pattern.permute.xlu0 %v6391_v26 }
  0x9d   :  { %1828 = vperm.xlu0 %5808, %v6492_v38  }
  0x9e   :  { %334 = vmatmul.mubr.f32.gmra.mxu0 %v108_v30  ;;  %1844 = vperm.xlu1 %5809, %v6532_v46  }
  0x9f   :  { %339 = vmatprep.mubr.f32.mxu0 %v10337_v0 }
  0xa1   :  { %1840 = vperm.xlu0 %5808, %v6480_v35  }
  0xa2   :  { %340 = vmatmul.mubr.f32.gmra.mxu0 %v109_v31  ;;  %1852 = vperm.xlu1 %5809, %v6552_v50  }
  0xa3   :  { %345 = vmatprep.mubr.f32.mxu0 %v10337_v0 }
  0xa5   :  { %1848 = vperm.xlu0 %5808, %v6497_v39  }
  0xa6   :  { %346 = vmatmul.mubr.f32.gmra.mxu0 %v110_v33  ;;  %1860 = vperm.xlu1 %5809, %v6572_v54  }
  0xa7   :  { %351 = vmatprep.mubr.f32.mxu0 %v10337_v0 }
  0xa9   :  { %1856 = vperm.xlu0 %5808, %v6517_v43  }
  0xaa   :  { %352 = vmatmul.mubr.f32.gmra.mxu0 %v111_v37  ;;  %1868 = vperm.xlu1 %5809, %v6592_v58  }
  0xab   :  { %357 = vmatprep.mubr.f32.mxu0 %v10337_v0 }
  0xad   :  { %1864 = vperm.xlu0 %5808, %v6537_v47  }
  0xae   :  { %358 = vmatmul.mubr.f32.gmra.mxu0 %v112_v41  ;;  %1876 = vperm.xlu1 %5809, %v6612_v62  }
  0xaf   :  { %363 = vmatprep.mubr.f32.mxu0 %v10337_v0 }
  0xb1   :  { %1872 = vperm.xlu0 %5808, %v6557_v51  }
  0xb2   :  { %364 = vmatmul.mubr.f32.gmra.mxu0 %v113_v48  ;;  %1884 = vperm.xlu1 %5809, %v6632_v3  }
  0xb3   :  { %369 = vmatprep.mubr.f32.mxu0 %v10337_v0  ;;  %v6908_v0 = vshrl.u32 %v157_v5, 7  ;;  %v155_v5 = vld [vmem:[%s10329_s3] sm:$0x3] }
  0xb5   :  { %1880 = vperm.xlu0 %5808, %v6577_v55  }
  0xb6   :  { %370 = vmatmul.mubr.f32.gmra.mxu0 %v114_v53  ;;  %1892 = vperm.xlu1 %5809, %v6648_v6  }
  0xb9   :  { %1888 = vperm.xlu0 %5808, %v6597_v59  }
  0xba   :  { %1900 = vperm.xlu1 %5809, %v6664_v9  }
  0xbd   :  { %1896 = vperm.xlu0 %5808, %v6617_v63  }
  0xbe   :  { %1908 = vperm.xlu1 %5809, %v6680_v12  }
  0xc1   :  { %1904 = vperm.xlu0 %5808, %v6637_v4  }
  0xc2   :  { %1916 = vperm.xlu1 %5809, %v6696_v15  }
  0xc5   :  { %1912 = vperm.xlu0 %5808, %v6653_v7  }
  0xc6   :  { %1924 = vperm.xlu1 %5809, %v6712_v18  }
  0xc9   :  { %1920 = vperm.xlu0 %5808, %v6669_v10  }
  0xca   :  { %1932 = vperm.xlu1 %5809, %v6728_v21  }
  0xcd   :  { %1928 = vperm.xlu0 %5808, %v6685_v13  }
  0xce   :  { %1940 = vperm.xlu1 %5809, %v6744_v24  }
  0xcf   :  { %v6817_v11 = vpop.permute.xlu1 %1519 }
  0xd0   :  { %10378 = vst [vmem:[#allocation15_spill] sm:$0xff] %v6817_v11 }
  0xd1   :  { %1936 = vperm.xlu0 %5808, %v6701_v16  }
  0xd2   :  { %1948 = vperm.xlu1 %5809, %v6754_v27  }
  0xd4   :  { %v6821_v14 = vpop.permute.xlu1 %1524 }
  0xd5   :  { %10379 = vst [vmem:[#allocation16_spill] sm:$0xff] %v6821_v14  ;;  %1944 = vperm.xlu0 %5808, %v6717_v19  }
  0xd6   :  { %5810 = vset.pattern.permute.xlu1 %v6392_v17 }
  0xd7   :  { %2148 = vperm.xlu1 %5810, %v6492_v38   ;;  %v6825_v20 = vpop.permute.xlu0 %1509 }
  0xd8   :  { %10380 = vst [vmem:[#allocation17_spill] sm:$0xff] %v6825_v20  ;;  %v6827_v23 = vpop.permute.xlu1 %1534 }
  0xd9   :  { %10381 = vst [vmem:[#allocation18_spill] sm:$0xff] %v6827_v23  ;;  %1952 = vperm.xlu0 %5808, %v6733_v22  }
  0xdb   :  { %2156 = vperm.xlu1 %5810, %v6474_v29   ;;  %v6831_v25 = vpop.permute.xlu0 %1514 }
  0xdc   :  { %10382 = vst [vmem:[#allocation19_spill] sm:$0xff] %v6831_v25  ;;  %v6833_v26 = vpop.permute.xlu1 %1544 }
  0xdd   :  { %10383 = vst [vmem:[#allocation20_spill] sm:$0xff] %v6833_v26  ;;  %5811 = vset.pattern.permute.xlu0 %v6392_v17  ;;  %v954_v26 = vld [vmem:[#allocation7 + $0xd0] sm:$0xff] }
  0xde   :  { %2152 = vperm.xlu0 %5811, %v6512_v42  }
  0xdf   :  { %2160 = vperm.xlu1 %5810, %v6480_v35   ;;  %v6837_v28 = vpop.permute.xlu0 %1529 }
  0xe0   :  { %10384 = vst [vmem:[#allocation21_spill] sm:$0xff] %v6837_v28  ;;  %v6839_v30 = vpop.permute.xlu1 %1554 }
  0xe1   :  { %10385 = vst [vmem:[#allocation22_spill] sm:$0xff] %v6839_v30 }
  0xe2   :  { %2164 = vperm.xlu0 %5811, %v6532_v46  }
  0xe3   :  { %2168 = vperm.xlu1 %5810, %v6497_v39   ;;  %v6843_v31 = vpop.permute.xlu0 %1539 }
  0xe4   :  { %10386 = vst [vmem:[#allocation23_spill] sm:$0xff] %v6843_v31  ;;  %v6845_v32 = vpop.permute.xlu1 %1564  ;;  %v942_v31 = vld [vmem:[#allocation7 + $0x70] sm:$0xff] }
  0xe5   :  { %10387 = vst [vmem:[#allocation24_spill] sm:$0xff] %v6845_v32 }
  0xe6   :  { %2172 = vperm.xlu0 %5811, %v6552_v50  }
  0xe7   :  { %2176 = vperm.xlu1 %5810, %v6517_v43   ;;  %v6849_v33 = vpop.permute.xlu0 %1549 }
  0xe8   :  { %10388 = vst [vmem:[#allocation25_spill] sm:$0xff] %v6849_v33  ;;  %v6851_v34 = vpop.permute.xlu1 %1574  ;;  %v963_v33 = vld [vmem:[#allocation7 + $0x118] sm:$0xff] }
  0xe9   :  { %10389 = vst [vmem:[#allocation26_spill] sm:$0xff] %v6851_v34 }
  0xea   :  { %2180 = vperm.xlu0 %5811, %v6572_v54  }
  0xeb   :  { %2184 = vperm.xlu1 %5810, %v6537_v47   ;;  %v6855_v36 = vpop.permute.xlu0 %1559 }
  0xec   :  { %10390 = vst [vmem:[#allocation27_spill] sm:$0xff] %v6855_v36  ;;  %v6857_v37 = vpop.permute.xlu1 %1584 }
  0xed   :  { %10391 = vst [vmem:[#allocation28_spill] sm:$0xff] %v6857_v37 }
  0xee   :  { %2188 = vperm.xlu0 %5811, %v6592_v58  }
  0xef   :  { %2192 = vperm.xlu1 %5810, %v6557_v51   ;;  %v6861_v40 = vpop.permute.xlu0 %1569 }
  0xf0   :  { %10392 = vst [vmem:[#allocation29_spill] sm:$0xff] %v6861_v40  ;;  %v6863_v41 = vpop.permute.xlu1 %1594 }
  0xf1   :  { %10393 = vst [vmem:[#allocation30_spill] sm:$0xff] %v6863_v41 }
  0xf2   :  { %2196 = vperm.xlu0 %5811, %v6612_v62  }
  0xf3   :  { %2200 = vperm.xlu1 %5810, %v6577_v55   ;;  %v6867_v44 = vpop.permute.xlu0 %1579 }
  0xf4   :  { %10394 = vst [vmem:[#allocation31_spill] sm:$0xff] %v6867_v44  ;;  %v6869_v45 = vpop.permute.xlu1 %1604 }
  0xf5   :  { %10395 = vst [vmem:[#allocation32_spill] sm:$0xff] %v6869_v45 }
  0xf6   :  { %2204 = vperm.xlu0 %5811, %v6632_v3  }
  0xf7   :  { %2208 = vperm.xlu1 %5810, %v6597_v59   ;;  %v6873_v48 = vpop.permute.xlu0 %1589 }
  0xf8   :  { %10396 = vst [vmem:[#allocation33_spill] sm:$0xff] %v6873_v48  ;;  %v6875_v49 = vpop.permute.xlu1 %1614 }
  0xf9   :  { %10397 = vst [vmem:[#allocation34_spill] sm:$0xff] %v6875_v49  ;;  %v6393_v49 = vmov 3  }
  0xfa   :  { %2212 = vperm.xlu0 %5811, %v6648_v6  }
  0xfb   :  { %2216 = vperm.xlu1 %5810, %v6617_v63   ;;  %v6879_v52 = vpop.permute.xlu0 %1599 }
  0xfc   :  { %10398 = vst [vmem:[#allocation35_spill] sm:$0xff] %v6879_v52  ;;  %v6881_v53 = vpop.permute.xlu1 %1624 }
  0xfd   :  { %10399 = vst [vmem:[#allocation36_spill] sm:$0xff] %v6881_v53 }
  0xfe   :  { %2220 = vperm.xlu0 %5811, %v6664_v9  }
  0xff   :  { %2224 = vperm.xlu1 %5810, %v6637_v4   ;;  %v6885_v56 = vpop.permute.xlu0 %1609 }
 0x100   :  { %10400 = vst [vmem:[#allocation37_spill] sm:$0xff] %v6885_v56  ;;  %v6887_v57 = vpop.permute.xlu1 %1634 }
 0x101   :  { %10401 = vst [vmem:[#allocation38_spill] sm:$0xff] %v6887_v57 }
 0x102   :  { %2228 = vperm.xlu0 %5811, %v6680_v12  }
 0x103   :  { %2232 = vperm.xlu1 %5810, %v6653_v7   ;;  %v6891_v60 = vpop.permute.xlu0 %1619 }
 0x104   :  { %10402 = vst [vmem:[#allocation39_spill] sm:$0xff] %v6891_v60  ;;  %v6893_v61 = vpop.permute.xlu1 %1644 }
 0x105   :  { %10403 = vst [vmem:[#allocation40_spill] sm:$0xff] %v6893_v61 }
 0x106   :  { %2236 = vperm.xlu0 %5811, %v6696_v15  }
 0x107   :  { %2240 = vperm.xlu1 %5810, %v6669_v10   ;;  %v6897_v1 = vpop.permute.xlu0 %1629 }
 0x108   :  { %10404 = vst [vmem:[#allocation41_spill] sm:$0xff] %v6897_v1  ;;  %v6899_v2 = vpop.permute.xlu1 %1654 }
 0x109   :  { %10405 = vst [vmem:[#allocation42_spill] sm:$0xff] %v6899_v2  ;;  %v6917_v2 = vsub.s32 0, %v6908_v0 }
 0x10a   :  { %2244 = vperm.xlu0 %5811, %v6712_v18  }
 0x10b   :  { %2248 = vperm.xlu1 %5810, %v6685_v13   ;;  %v6903_v8 = vpop.permute.xlu0 %1639  ;;  %10410 = vst [vmem:[#allocation47_spill] sm:$0xff] %v6917_v2 }
 0x10c   :  { %10406 = vst [vmem:[#allocation43_spill] sm:$0xff] %v6903_v8  ;;  %v6905_v17 = vpop.permute.xlu1 %1664 }
 0x10d   :  { %10407 = vst [vmem:[#allocation44_spill] sm:$0xff] %v6905_v17 }
 0x10e   :  { %2252 = vperm.xlu0 %5811, %v6728_v21  }
 0x10f   :  { %2256 = vperm.xlu1 %5810, %v6701_v16   ;;  %v6911_v61 = vpop.permute.xlu0 %1649 }
 0x110   :  { %10408 = vst [vmem:[#allocation45_spill] sm:$0xff] %v6911_v61  ;;  %v6929_v61 = vrot.slane %v155_v5, %v6917_v2 }
 0x111   :  { %v6913_v57 = vpop.permute.xlu1 %1832 }
 0x112   :  { %10409 = vst [vmem:[#allocation46_spill] sm:$0xff] %v6913_v57  ;;  %2260 = vperm.xlu0 %5811, %v6744_v24  }
 0x113   :  { %2264 = vperm.xlu1 %5810, %v6717_v19   ;;  %v6920_v8 = vpop.permute.xlu0 %1659 }
 0x114   :  { %10411 = vst [vmem:[#allocation48_spill] sm:$0xff] %v6920_v8 }
 0x115   :  { %v6925_v17 = vpop.permute.xlu1 %1836 }
 0x116   :  { %10412 = vst [vmem:[#allocation49_spill] sm:$0xff] %v6925_v17  ;;  %2268 = vperm.xlu0 %5811, %v6754_v27  }
 0x117   :  { %2272 = vperm.xlu1 %5810, %v6733_v22  }
 0x118   :  { %v6932_v1 = vpop.permute.xlu0 %1828 }
 0x119   :  { %10413 = vst [vmem:[#allocation50_spill] sm:$0xff] %v6932_v1  ;;  %v6934_v53 = vpop.permute.xlu1 %1844 }
 0x11a   :  { %10414 = vst [vmem:[#allocation51_spill] sm:$0xff] %v6934_v53  ;;  %v233_v60 = vpop.f32.mrf.mxu0  ;;  %5812 = vset.pattern.permute.xlu0 %v6393_v49  ;;  %v940_v53 = vld [vmem:[#allocation7 + $0x60] sm:$0xff] }
 0x11b   :  { %v6937_v8 = vadd.f32 %v233_v60, %v6929_v61  ;;  %5813 = vset.pattern.permute.xlu1 %v6393_v49  ;;  %2468 = vperm.xlu0 %5812, %v6492_v38  }
 0x11c   :  { %v6940_v56 = vpop.f32.mrf.mxu0  ;;  %2472 = vperm.xlu1 %5813, %v6512_v42   ;;  %v6946_v52 = vpop.permute.xlu0 %1840 }
 0x11d   :  { %v5273_v5 = vmul.f32 -1.442695, %v6937_v8  ;;  %v6944_v45 = vpop.permute.xlu1 %1852  ;;  %10416 = vst [vmem:[#allocation53_spill] sm:$0xff] %v6946_v52 }
 0x11e   :  { %10415 = vst [vmem:[#allocation52_spill] sm:$0xff] %v6944_v45  ;;  %v239_v41 = vpop.f32.mrf.mxu0 }
 0x11f   :  { %5822 = vpow2.f32 %v5273_v5  ;;  %v6949_v48 = vadd.f32 %v239_v41, %v6929_v61  ;;  %2480 = vperm.xlu0 %5812, %v6480_v35  }
 0x120   :  { %v6952_v49 = vpop.f32.mrf.mxu0  ;;  %2476 = vperm.xlu1 %5813, %v6474_v29   ;;  %v6958_v60 = vpop.permute.xlu0 %1848 }
 0x121   :  { %v5274_v38 = vmul.f32 -1.442695, %v6949_v48  ;;  %v6956_v42 = vpop.permute.xlu1 %1860  ;;  %10418 = vst [vmem:[#allocation55_spill] sm:$0xff] %v6958_v60 }
 0x122   :  { %10417 = vst [vmem:[#allocation54_spill] sm:$0xff] %v6956_v42  ;;  %v245_v37 = vpop.f32.mrf.mxu0 }
 0x123   :  { %5824 = vpow2.f32 %v5274_v38  ;;  %v6961_v44 = vadd.f32 %v245_v37, %v6929_v61  ;;  %2488 = vperm.xlu0 %5812, %v6497_v39  }
 0x124   :  { %v6964_v41 = vpop.f32.mrf.mxu0  ;;  %2484 = vperm.xlu1 %5813, %v6532_v46   ;;  %v6970_v5 = vpop.permute.xlu0 %1856 }
 0x125   :  { %v5275_v35 = vmul.f32 -1.442695, %v6961_v44  ;;  %v6968_v29 = vpop.permute.xlu1 %1868  ;;  %10420 = vst [vmem:[#allocation57_spill] sm:$0xff] %v6970_v5 }
 0x126   :  { %10419 = vst [vmem:[#allocation56_spill] sm:$0xff] %v6968_v29  ;;  %v251_v34 = vpop.f32.mrf.mxu0 }
 0x127   :  { %5826 = vpow2.f32 %v5275_v35  ;;  %v6973_v40 = vadd.f32 %v251_v34, %v6929_v61  ;;  %2496 = vperm.xlu0 %5812, %v6517_v43   ;;  %v975_v43 = vld [vmem:[#allocation7 + $0x178] sm:$0xff] }
 0x128   :  { %v6976_v37 = vpop.f32.mrf.mxu0  ;;  %2492 = vperm.xlu1 %5813, %v6552_v50   ;;  %v6982_v38 = vpop.permute.xlu0 %1864  ;;  %v972_v50 = vld [vmem:[#allocation7 + $0x160] sm:$0xff]  ;;  %5594 = vmatprep.subr.mxu0 %v975_v43 }
 0x129   :  { %v5276_v39 = vmul.f32 -1.442695, %v6973_v40  ;;  %v6980_v46 = vpop.permute.xlu1 %1876  ;;  %10422 = vst [vmem:[#allocation59_spill] sm:$0xff] %v6982_v38  ;;  %5595 = vmatpush3.msra.mxu0 %v975_v43 }
 0x12a   :  { %10421 = vst [vmem:[#allocation58_spill] sm:$0xff] %v6980_v46  ;;  %v257_v32 = vpop.f32.mrf.mxu0  ;;  %5596 = vmatprep.subr.mxu0 %v972_v50 }
 0x12b   :  { %5828 = vpow2.f32 %v5276_v39  ;;  %v6985_v29 = vadd.f32 %v257_v32, %v6929_v61  ;;  %2504 = vperm.xlu0 %5812, %v6537_v47   ;;  %5597 = vmatpush3.msra.mxu0 %v972_v50 }
 0x12c   :  { %v5823_v34 = vpop.eup %5822  ;;  %v6988_v35 = vpop.f32.mrf.mxu0  ;;  %2500 = vperm.xlu1 %5813, %v6572_v54  }
 0x12d   :  { %v520_v36 = vadd.f32 1.0, %v5823_v34  ;;  %v5277_v30 = vmul.f32 -1.442695, %v6985_v29  ;;  %v6992_v46 = vpop.permute.xlu1 %1884  ;;  %v6994_v38 = vpop.permute.xlu0 %1872 }
 0x12e   :  { %10423 = vst [vmem:[#allocation60_spill] sm:$0xff] %v6992_v46  ;;  %10424 = vst [vmem:[#allocation61_spill] sm:$0xff] %v6994_v38  ;;  %v263_v39 = vpop.f32.mrf.mxu0 }
 0x12f   :  { %5830 = vrcp.f32 %v520_v36  ;;  %v6997_v47 = vadd.f32 %v263_v39, %v6929_v61  ;;  %2512 = vperm.xlu0 %5812, %v6557_v51   ;;  %v969_v39 = vld [vmem:[#allocation7 + $0x148] sm:$0xff] }
 0x130   :  { %v5825_v54 = vpop.eup %5824  ;;  %5832 = vpow2.f32 %v5277_v30  ;;  %v7000_v32 = vpop.f32.mrf.mxu0  ;;  %2508 = vperm.xlu1 %5813, %v6592_v58   ;;  %5598 = vmatprep.subr.mxu0 %v969_v39 }
 0x131   :  { %v521_v34 = vadd.f32 1.0, %v5825_v54  ;;  %v5278_v46 = vmul.f32 -1.442695, %v6997_v47  ;;  %v7004_v38 = vpop.permute.xlu1 %1892  ;;  %v7006_v43 = vpop.permute.xlu0 %1880  ;;  %5599 = vmatpush3.msra.mxu0 %v969_v39 }
 0x132   :  { %10425 = vst [vmem:[#allocation62_spill] sm:$0xff] %v7004_v38  ;;  %10426 = vst [vmem:[#allocation63_spill] sm:$0xff] %v7006_v43  ;;  %v269_v36 = vpop.f32.mrf.mxu0 }
 0x133   :  { %5834 = vrcp.f32 %v521_v34  ;;  %v7009_v51 = vadd.f32 %v269_v36, %v6929_v61  ;;  %2520 = vperm.xlu0 %5812, %v6577_v55   ;;  %v966_v36 = vld [vmem:[#allocation7 + $0x130] sm:$0xff] }
 0x134   :  { %v5827_v30 = vpop.eup %5826  ;;  %5836 = vpow2.f32 %v5278_v46  ;;  %v7012_v58 = vpop.f32.mrf.mxu0  ;;  %2516 = vperm.xlu1 %5813, %v6612_v62   ;;  %5600 = vmatprep.subr.mxu0 %v966_v36 }
 0x135   :  { %v522_v50 = vadd.f32 1.0, %v5827_v30  ;;  %v5279_v54 = vmul.f32 -1.442695, %v7009_v51  ;;  %v7016_v38 = vpop.permute.xlu1 %1900  ;;  %v7018_v43 = vpop.permute.xlu0 %1888  ;;  %5601 = vmatpush3.msra.mxu0 %v966_v36 }
 0x136   :  { %10427 = vst [vmem:[#allocation64_spill] sm:$0xff] %v7016_v38  ;;  %10428 = vst [vmem:[#allocation65_spill] sm:$0xff] %v7018_v43  ;;  %v275_v34 = vpop.f32.mrf.mxu0  ;;  %5602 = vmatprep.subr.mxu0 %v963_v33 }
 0x137   :  { %5838 = vrcp.f32 %v522_v50  ;;  %v7021_v55 = vadd.f32 %v275_v34, %v6929_v61  ;;  %2528 = vperm.xlu0 %5812, %v6597_v59   ;;  %v974_v34 = vld [vmem:[#allocation7 + $0x170] sm:$0xff]  ;;  %5603 = vmatpush3.msra.mxu0 %v963_v33 }
 0x138   :  { %v5829_v46 = vpop.eup %5828  ;;  %5840 = vpow2.f32 %v5279_v54  ;;  %v7024_v62 = vpop.f32.mrf.mxu0  ;;  %2524 = vperm.xlu1 %5813, %v6632_v3   ;;  %993 = vmatprep.subr.mxu1 %v974_v34 }
 0x139   :  { %v523_v39 = vadd.f32 1.0, %v5829_v46  ;;  %v5280_v30 = vmul.f32 -1.442695, %v7021_v55  ;;  %v7028_v38 = vpop.permute.xlu1 %1908  ;;  %v7030_v43 = vpop.permute.xlu0 %1896 }
 0x13a   :  { %10429 = vst [vmem:[#allocation66_spill] sm:$0xff] %v7028_v38  ;;  %10430 = vst [vmem:[#allocation67_spill] sm:$0xff] %v7030_v43  ;;  %v281_v50 = vpop.f32.mrf.mxu0 }
 0x13b   :  { %5842 = vrcp.f32 %v523_v39  ;;  %v7033_v59 = vadd.f32 %v281_v50, %v6929_v61  ;;  %2536 = vperm.xlu0 %5812, %v6617_v63  }
 0x13c   :  { %v5831_v54 = vpop.eup %5830  ;;  %5844 = vpow2.f32 %v5280_v30  ;;  %v7036_v3 = vpop.f32.mrf.mxu0  ;;  %2532 = vperm.xlu1 %5813, %v6648_v6  }
 0x13d   :  { %10431 = vst [vmem:[#allocation68_spill] sm:$0xff] %v7036_v3  ;;  %v5833_v36 = vpop.eup %5832  ;;  %v616_v46 = vmul.f32 %v5831_v54, %v6937_v8  ;;  %v5281_v38 = vmul.f32 -1.442695, %v7033_v59  ;;  %v7041_v43 = vpop.permute.xlu1 %1916 }
 0x13e   :  { %10432 = vst [vmem:[#allocation69_spill] sm:$0xff] %v7041_v43  ;;  %v7043_v39 = vpop.permute.xlu0 %1904  ;;  %v524_v50 = vadd.f32 1.0, %v5833_v36  ;;  %v287_v42 = vpop.f32.mrf.mxu0  ;;  %v971_v43 = vld [vmem:[#allocation7 + $0x158] sm:$0xff] }
 0x13f   :  { %10433 = vst [vmem:[#allocation70_spill] sm:$0xff] %v7043_v39  ;;  %5846 = vpow2.f32 %v5281_v38  ;;  %v7046_v63 = vadd.f32 %v287_v42, %v6929_v61  ;;  %5546 = vmatprep.mubr.f32.mxu1 %v616_v46  ;;  %2544 = vperm.xlu0 %5812, %v6637_v4   ;;  %v973_v42 = vld [vmem:[#allocation7 + $0x168] sm:$0xff] }
 0x140   :  { %v5835_v6 = vpop.eup %5834  ;;  %5848 = vrcp.f32 %v524_v50  ;;  %v7049_v30 = vpop.f32.mrf.mxu0  ;;  %2540 = vperm.xlu1 %5813, %v6664_v9  }
 0x141   :  { %10434 = vst [vmem:[#allocation71_spill] sm:$0xff] %v7049_v30  ;;  %v5837_v8 = vpop.eup %5836  ;;  %v617_v34 = vmul.f32 %v5835_v6, %v6949_v48  ;;  %v5282_v54 = vmul.f32 -1.442695, %v7046_v63  ;;  %v7054_v36 = vpop.permute.xlu1 %1924  ;;  %v970_v48 = vld [vmem:[#allocation7 + $0x150] sm:$0xff]  ;;  %v960_v6 = vld [vmem:[#allocation7 + $0x100] sm:$0xff] }
 0x142   :  { %10435 = vst [vmem:[#allocation72_spill] sm:$0xff] %v7054_v36  ;;  %v7056_v38 = vpop.permute.xlu0 %1912  ;;  %v525_v46 = vadd.f32 1.0, %v5837_v8  ;;  %v293_v4 = vpop.f32.mrf.mxu0  ;;  %5604 = vmatprep.subr.mxu0 %v960_v6 }
 0x143   :  { %10436 = vst [vmem:[#allocation73_spill] sm:$0xff] %v7056_v38  ;;  %5850 = vpow2.f32 %v5282_v54  ;;  %v7059_v50 = vadd.f32 %v293_v4, %v6929_v61  ;;  %5547 = vmatmul.mubr.f32.vlgmr.msra.gmra.mxu1 %v617_v34  ;;  %v7061_v9 = vpop.f32.mrf.mxu1  ;;  %2552 = vperm.xlu0 %5812, %v6653_v7   ;;  %v968_v7 = vld [vmem:[#allocation7 + $0x140] sm:$0xff] }
 0x144   :  { %v5839_v39 = vpop.eup %5838  ;;  %5852 = vrcp.f32 %v525_v46  ;;  %v7064_v36 = vpop.f32.mrf.mxu0  ;;  %2548 = vperm.xlu1 %5813, %v6680_v12   ;;  %994 = vmatpush1.msra.mxu1 %v973_v42  ;;  %v967_v46 = vld [vmem:[#allocation7 + $0x138] sm:$0xff]  ;;  %v957_v42 = vld [vmem:[#allocation7 + $0xe8] sm:$0xff] }
 0x145   :  { %10437 = vst [vmem:[#allocation74_spill] sm:$0xff] %v7064_v36  ;;  %v5841_v33 = vpop.eup %5840  ;;  %v618_v8 = vmul.f32 %v5839_v39, %v6961_v44  ;;  %v5283_v54 = vmul.f32 -1.442695, %v7059_v50  ;;  %v7069_v4 = vpop.permute.xlu1 %1932  ;;  %995 = vmatprep.subr.mxu1 %v971_v43  ;;  %5605 = vmatpush3.msra.mxu0 %v960_v6  ;;  %v965_v39 = vld [vmem:[#allocation7 + $0x128] sm:$0xff] }
 0x146   :  { %10438 = vst [vmem:[#allocation75_spill] sm:$0xff] %v7069_v4  ;;  %v7071_v34 = vpop.permute.xlu0 %1920  ;;  %v526_v38 = vadd.f32 1.0, %v5841_v33  ;;  %v299_v5 = vpop.f32.mrf.mxu0  ;;  %996 = vmatpush1.msra.mxu1 %v970_v48  ;;  %5606 = vmatprep.subr.mxu0 %v957_v42 }
 0x147   :  { %10439 = vst [vmem:[#allocation76_spill] sm:$0xff] %v7071_v34  ;;  %5854 = vpow2.f32 %v5283_v54  ;;  %v7074_v12 = vadd.f32 %v299_v5, %v6929_v61  ;;  %5549 = vmatprep.mubr.f32.mxu1 %v618_v8  ;;  %v7076_v44 = vpop.f32.mrf.mxu1  ;;  %2560 = vperm.xlu0 %5812, %v6669_v10   ;;  %v964_v10 = vld [vmem:[#allocation7 + $0x120] sm:$0xff] }
 0x148   :  { %10440 = vst [vmem:[#allocation77_spill] sm:$0xff] %v7076_v44  ;;  %v5843_v4 = vpop.eup %5842  ;;  %5856 = vrcp.f32 %v526_v38  ;;  %v7079_v43 = vpop.f32.mrf.mxu0  ;;  %2556 = vperm.xlu1 %5813, %v6696_v15   ;;  %997 = vmatprep.subr.mxu1 %v968_v7  ;;  %v962_v38 = vld [vmem:[#allocation7 + $0x110] sm:$0xff] }
 0x149   :  { %10441 = vst [vmem:[#allocation78_spill] sm:$0xff] %v7079_v43  ;;  %v5845_v48 = vpop.eup %5844  ;;  %v619_v6 = vmul.f32 %v5843_v4, %v6973_v40  ;;  %v5284_v5 = vmul.f32 -1.442695, %v7074_v12  ;;  %v7084_v33 = vpop.permute.xlu1 %1940  ;;  %998 = vmatpush1.msra.mxu1 %v967_v46  ;;  %5607 = vmatpush3.msra.mxu0 %v957_v42  ;;  %v961_v4 = vld [vmem:[#allocation7 + $0x108] sm:$0xff] }
 0x14a   :  { %10442 = vst [vmem:[#allocation79_spill] sm:$0xff] %v7084_v33  ;;  %v7086_v8 = vpop.permute.xlu0 %1928  ;;  %v527_v54 = vadd.f32 1.0, %v5845_v48  ;;  %v305_v34 = vpop.f32.mrf.mxu0  ;;  %999 = vmatprep.subr.mxu1 %v965_v39  ;;  %v959_v39 = vld [vmem:[#allocation7 + $0xf8] sm:$0xff]  ;;  %5608 = vmatprep.subr.mxu0 %v954_v26 }
 0x14b   :  { %10443 = vst [vmem:[#allocation80_spill] sm:$0xff] %v7086_v8  ;;  %5858 = vpow2.f32 %v5284_v5  ;;  %v7089_v15 = vadd.f32 %v305_v34, %v6929_v61  ;;  %5550 = vmatmul.mubr.f32.gmra.mxu1 %v619_v6  ;;  %v7091_v40 = vpop.f32.mrf.mxu1  ;;  %2568 = vperm.xlu0 %5812, %v6685_v13   ;;  %v951_v8 = vld [vmem:[#allocation7 + $0xb8] sm:$0xff] }
 0x14c   :  { %v5847_v7 = vpop.eup %5846  ;;  %5860 = vrcp.f32 %v527_v54  ;;  %v7094_v46 = vpop.f32.mrf.mxu0  ;;  %2564 = vperm.xlu1 %5813, %v6712_v18   ;;  %1000 = vmatpush1.msra.mxu1 %v964_v10  ;;  %v958_v54 = vld [vmem:[#allocation7 + $0xf0] sm:$0xff] }
 0x14d   :  { %10444 = vst [vmem:[#allocation81_spill] sm:$0xff] %v7094_v46  ;;  %v5849_v42 = vpop.eup %5848  ;;  %v528_v48 = vadd.f32 1.0, %v5847_v7  ;;  %v5285_v5 = vmul.f32 -1.442695, %v7089_v15  ;;  %v7098_v34 = vpop.permute.xlu1 %1948  ;;  %1001 = vmatprep.subr.mxu1 %v962_v38  ;;  %5609 = vmatpush3.msra.mxu0 %v954_v26  ;;  %v956_v7 = vld [vmem:[#allocation7 + $0xe0] sm:$0xff]  ;;  %v931_v46 = vld [vmem:[#allocation7 + $0x18] sm:$0xff] }
 0x14e   :  { %10445 = vst [vmem:[#allocation82_spill] sm:$0xff] %v7098_v34  ;;  %v7100_v6 = vpop.permute.xlu0 %1936  ;;  %v620_v13 = vmul.f32 %v5849_v42, %v6985_v29  ;;  %v311_v33 = vpop.f32.mrf.mxu0  ;;  %1002 = vmatpush1.msra.mxu1 %v961_v4  ;;  %v955_v29 = vld [vmem:[#allocation7 + $0xd8] sm:$0xff]  ;;  %5610 = vmatprep.subr.mxu0 %v951_v8 }
 0x14f   :  { %10446 = vst [vmem:[#allocation83_spill] sm:$0xff] %v7100_v6  ;;  %5862 = vrcp.f32 %v528_v48  ;;  %v7104_v18 = vadd.f32 %v311_v33, %v6929_v61  ;;  %v7106_v10 = vpop.f32.mrf.mxu1  ;;  %2576 = vperm.xlu0 %5812, %v6701_v16   ;;  %1003 = vmatprep.subr.mxu1 %v959_v39 }
 0x150   :  { %10447 = vst [vmem:[#allocation84_spill] sm:$0xff] %v7106_v10  ;;  %v5851_v34 = vpop.eup %5850  ;;  %5864 = vpow2.f32 %v5285_v5  ;;  %5552 = vmatprep.mubr.f32.mxu1 %v620_v13  ;;  %v7109_v38 = vpop.f32.mrf.mxu0  ;;  %2572 = vperm.xlu1 %5813, %v6728_v21   ;;  %v953_v5 = vld [vmem:[#allocation7 + $0xc8] sm:$0xff]  ;;  %v948_v13 = vld [vmem:[#allocation7 + $0xa0] sm:$0xff] }
 0x151   :  { %10448 = vst [vmem:[#allocation85_spill] sm:$0xff] %v7109_v38  ;;  %v5853_v26 = vpop.eup %5852  ;;  %v529_v4 = vadd.f32 1.0, %v5851_v34  ;;  %v5286_v42 = vmul.f32 -1.442695, %v7104_v18  ;;  %1004 = vmatpush1.msra.mxu1 %v958_v54  ;;  %5611 = vmatpush3.msra.mxu0 %v951_v8  ;;  %v7121_v34 = vpop.f32.mrf.mxu1  ;;  %v952_v54 = vld [vmem:[#allocation7 + $0xc0] sm:$0xff] }
 0x152   :  { %v7113_v33 = vpop.permute.xlu0 %1944  ;;  %v621_v16 = vmul.f32 %v5853_v26, %v6997_v47  ;;  %v317_v39 = vpop.f32.mrf.mxu0  ;;  %1005 = vmatprep.subr.mxu1 %v956_v7  ;;  %v950_v7 = vld [vmem:[#allocation7 + $0xb0] sm:$0xff]  ;;  %5612 = vmatprep.subr.mxu0 %v948_v13 }
 0x153   :  { %10449 = vst [vmem:[#allocation86_spill] sm:$0xff] %v7113_v33  ;;  %v7116_v48 = vpop.permute.xlu1 %2148  ;;  %5866 = vrcp.f32 %v529_v4  ;;  %v7119_v21 = vadd.f32 %v317_v39, %v6929_v61  ;;  %2584 = vperm.xlu0 %5812, %v6717_v19   ;;  %1006 = vmatpush1.msra.mxu1 %v955_v29 }
 0x154   :  { %10450 = vst [vmem:[#allocation87_spill] sm:$0xff] %v7116_v48  ;;  %v5855_v33 = vpop.eup %5854  ;;  %5868 = vpow2.f32 %v5286_v42  ;;  %5553 = vmatmul.mubr.f32.gmra.mxu1 %v621_v16  ;;  %v7124_v47 = vpop.f32.mrf.mxu0  ;;  %2580 = vperm.xlu1 %5813, %v6744_v24   ;;  %v949_v42 = vld [vmem:[#allocation7 + $0xa8] sm:$0xff] }
 0x155   :  { %10451 = vst [vmem:[#allocation88_spill] sm:$0xff] %v7124_v47  ;;  %v5857_v8 = vpop.eup %5856  ;;  %v530_v26 = vadd.f32 1.0, %v5855_v33  ;;  %v5287_v4 = vmul.f32 -1.442695, %v7119_v21  ;;  %1007 = vmatprep.subr.mxu1 %v953_v5  ;;  %5613 = vmatpush3.msra.mxu0 %v948_v13  ;;  %v945_v16 = vld [vmem:[#allocation7 + $0x88] sm:$0xff]  ;;  %v7133_v24 = vpop.f32.mrf.mxu1  ;;  %v947_v5 = vld [vmem:[#allocation7 + $0x98] sm:$0xff] }
 0x156   :  { %v7128_v39 = vpop.permute.xlu0 %1952  ;;  %v622_v19 = vmul.f32 %v5857_v8, %v7009_v51  ;;  %v323_v29 = vpop.f32.mrf.mxu0  ;;  %1008 = vmatpush1.msra.mxu1 %v952_v54  ;;  %10454 = vst [vmem:[#allocation91_spill] sm:$0xff] %v7133_v24  ;;  %v946_v54 = vld [vmem:[#allocation7 + $0x90] sm:$0xff]  ;;  %5614 = vmatprep.subr.mxu0 %v945_v16 }
 0x157   :  { %10452 = vst [vmem:[#allocation89_spill] sm:$0xff] %v7128_v39  ;;  %v7131_v6 = vpop.permute.xlu1 %2156  ;;  %5870 = vrcp.f32 %v530_v26  ;;  %v7136_v33 = vadd.f32 %v323_v29, %v6929_v61  ;;  %2592 = vperm.xlu0 %5812, %v6733_v22   ;;  %1009 = vmatprep.subr.mxu1 %v950_v7 }
 0x158   :  { %10453 = vst [vmem:[#allocation90_spill] sm:$0xff] %v7131_v6  ;;  %v5859_v39 = vpop.eup %5858  ;;  %5872 = vpow2.f32 %v5287_v4  ;;  %5555 = vmatprep.mubr.f32.mxu1 %v622_v19  ;;  %v7139_v51 = vpop.f32.mrf.mxu0  ;;  %2588 = vperm.xlu1 %5813, %v6754_v27   ;;  %v944_v19 = vld [vmem:[#allocation7 + $0x80] sm:$0xff] }
 0x159   :  { %10455 = vst [vmem:[#allocation92_spill] sm:$0xff] %v7139_v51  ;;  %v5861_v13 = vpop.eup %5860  ;;  %v531_v8 = vadd.f32 1.0, %v5859_v39  ;;  %v5288_v26 = vmul.f32 -1.442695, %v7136_v33  ;;  %1010 = vmatpush1.msra.mxu1 %v949_v42  ;;  %5615 = vmatpush3.msra.mxu0 %v945_v16  ;;  %v7148_v4 = vpop.f32.mrf.mxu1  ;;  %v6394_v39 = vmov 4  }
 0x15a   :  { %v7143_v45 = vpop.permute.xlu0 %2152  ;;  %v623_v22 = vmul.f32 %v5861_v13, %v7021_v55  ;;  %v329_v7 = vpop.f32.mrf.mxu0  ;;  %1011 = vmatprep.subr.mxu1 %v947_v5  ;;  %v943_v13 = vld [vmem:[#allocation7 + $0x78] sm:$0xff]  ;;  %5616 = vmatprep.subr.mxu0 %v942_v31 }
 0x15b   :  { %10456 = vst [vmem:[#allocation93_spill] sm:$0xff] %v7143_v45  ;;  %v7146_v29 = vpop.permute.xlu1 %2160  ;;  %5874 = vrcp.f32 %v531_v8  ;;  %v7151_v27 = vadd.f32 %v329_v7, %v6929_v61  ;;  %5815 = vset.pattern.permute.xlu0 %v6394_v39  ;;  %1012 = vmatpush1.msra.mxu1 %v946_v54  ;;  %v7160_v7 = vld [vmem:[%s10327_s1] sm:$0xff]  ;;  %v7166_v54 = vld [vmem:[%s10327_s1 + $0x8] sm:$0xff]  ;;  %v7173_v60 = vpop.f32.mrf.mxu1 }
 0x15c   :  { %10457 = vst [vmem:[#allocation94_spill] sm:$0xff] %v7146_v29  ;;  %v5863_v42 = vpop.eup %5862  ;;  %5876 = vpow2.f32 %v5288_v26  ;;  %5556 = vmatmul.mubr.f32.gmra.mxu1 %v623_v22  ;;  %v7153_v55 = vpop.f32.mrf.mxu0  ;;  %5814 = vset.pattern.permute.xlu1 %v6394_v39  ;;  %v941_v22 = vld [vmem:[#allocation7 + $0x68] sm:$0xff]  ;;  %10461 = vst [vmem:[#allocation98_spill] sm:$0xff] %v7173_v60 }
 0x15d   :  { %10458 = vst [vmem:[#allocation95_spill] sm:$0xff] %v7153_v55  ;;  %v5865_v5 = vpop.eup %5864  ;;  %v624_v16 = vmul.f32 %v5863_v42, %v7033_v59  ;;  %v5289_v8 = vmul.f32 -1.442695, %v7151_v27  ;;  %2788 = vperm.xlu1 %5814, %v7160_v7   ;;  %2792 = vperm.xlu0 %5815, %v7166_v54  }
 0x15e   :  { %v7169_v26 = vpop.permute.xlu0 %2164  ;;  %v532_v59 = vadd.f32 1.0, %v5865_v5  ;;  %v335_v39 = vpop.f32.mrf.mxu0  ;;  %1013 = vmatprep.subr.mxu1 %v944_v19  ;;  %v938_v5 = vld [vmem:[#allocation7 + $0x50] sm:$0xff]  ;;  %5617 = vmatpush3.msra.mxu0 %v942_v31 }
 0x15f   :  { %10459 = vst [vmem:[#allocation96_spill] sm:$0xff] %v7169_v26  ;;  %v7171_v42 = vpop.permute.xlu1 %2168  ;;  %5878 = vpow2.f32 %v5289_v8  ;;  %v7176_v23 = vadd.f32 %v335_v39, %v6929_v61  ;;  %5558 = vmatprep.mubr.f32.mxu1 %v624_v16  ;;  %1014 = vmatpush1.msra.mxu1 %v943_v13  ;;  %v7185_v8 = vld [vmem:[%s10327_s1 + $0x10] sm:$0xff]  ;;  %v7191_v13 = vld [vmem:[%s10327_s1 + $0x20] sm:$0xff] }
 0x160   :  { %10460 = vst [vmem:[#allocation97_spill] sm:$0xff] %v7171_v42  ;;  %v5867_v28 = vpop.eup %5866  ;;  %5880 = vrcp.f32 %v532_v59  ;;  %v7178_v29 = vpop.f32.mrf.mxu0  ;;  %1015 = vmatprep.subr.mxu1 %v941_v22 }
 0x161   :  { %10462 = vst [vmem:[#allocation99_spill] sm:$0xff] %v7178_v29  ;;  %v5869_v26 = vpop.eup %5868  ;;  %v625_v19 = vmul.f32 %v5867_v28, %v7046_v63  ;;  %v5290_v42 = vmul.f32 -1.442695, %v7176_v23  ;;  %2796 = vperm.xlu1 %5814, %v7185_v8   ;;  %2804 = vperm.xlu0 %5815, %v7191_v13   ;;  %v7198_v22 = vpop.f32.mrf.mxu1 }
 0x162   :  { %v7194_v31 = vpop.permute.xlu0 %2172  ;;  %v533_v16 = vadd.f32 1.0, %v5869_v26  ;;  %v341_v28 = vpop.f32.mrf.mxu0  ;;  %1016 = vmatpush1.msra.mxu1 %v940_v53  ;;  %v7210_v53 = vld [vmem:[%s10327_s1 + $0x18] sm:$0xff] }
 0x163   :  { %10463 = vst [vmem:[#allocation100_spill] sm:$0xff] %v7194_v31  ;;  %v7196_v63 = vpop.permute.xlu1 %2176  ;;  %5882 = vpow2.f32 %v5290_v42  ;;  %v7201_v59 = vadd.f32 %v341_v28, %v6929_v61  ;;  %5559 = vmatmul.mubr.f32.gmra.mxu1 %v625_v19  ;;  %1017 = vmatprep.subr.mxu1 %v938_v5  ;;  %v7216_v42 = vld [vmem:[%s10327_s1 + $0x30] sm:$0xff]  ;;  %v7223_v28 = vpop.f32.mrf.mxu1 }
 0x164   :  { %10464 = vst [vmem:[#allocation101_spill] sm:$0xff] %v7196_v63  ;;  %v5871_v39 = vpop.eup %5870  ;;  %5884 = vrcp.f32 %v533_v16  ;;  %v7203_v52 = vpop.f32.mrf.mxu0  ;;  %10468 = vst [vmem:[#allocation105_spill] sm:$0xff] %v7223_v28 }
 0x165   :  { %10465 = vst [vmem:[#allocation102_spill] sm:$0xff] %v7203_v52  ;;  %v5873_v14 = vpop.eup %5872  ;;  %v626_v31 = vmul.f32 %v5871_v39, %v7059_v50  ;;  %v5291_v26 = vmul.f32 -1.442695, %v7201_v59  ;;  %2800 = vperm.xlu1 %5814, %v7210_v53   ;;  %2812 = vperm.xlu0 %5815, %v7216_v42  }
 0x166   :  { %v7219_v5 = vpop.permute.xlu0 %2180  ;;  %v534_v19 = vadd.f32 1.0, %v5873_v14  ;;  %v347_v50 = vpop.f32.mrf.mxu0  ;;  %v7235_v14 = vld [vmem:[%s10327_s1 + $0x28] sm:$0xff] }
 0x167   :  { %10466 = vst [vmem:[#allocation103_spill] sm:$0xff] %v7219_v5  ;;  %v7221_v16 = vpop.permute.xlu1 %2184  ;;  %5886 = vpow2.f32 %v5291_v26  ;;  %v7226_v39 = vadd.f32 %v347_v50, %v6929_v61  ;;  %5561 = vmatprep.mubr.f32.mxu1 %v626_v31  ;;  %v7241_v31 = vld [vmem:[%s10327_s1 + $0x40] sm:$0xff]  ;;  %v7248_v50 = vpop.f32.mrf.mxu1 }
 0x168   :  { %10467 = vst [vmem:[#allocation104_spill] sm:$0xff] %v7221_v16  ;;  %v5875_v63 = vpop.eup %5874  ;;  %5888 = vrcp.f32 %v534_v19  ;;  %v7228_v6 = vpop.f32.mrf.mxu0 }
 0x169   :  { %10469 = vst [vmem:[#allocation106_spill] sm:$0xff] %v7228_v6  ;;  %v5877_v17 = vpop.eup %5876  ;;  %v627_v11 = vmul.f32 %v5875_v63, %v7074_v12  ;;  %v5292_v5 = vmul.f32 -1.442695, %v7226_v39  ;;  %2808 = vperm.xlu1 %5814, %v7235_v14   ;;  %2820 = vperm.xlu0 %5815, %v7241_v31  }
 0x16a   :  { %v7244_v26 = vpop.permute.xlu0 %2188  ;;  %v535_v19 = vadd.f32 1.0, %v5877_v17  ;;  %v353_v12 = vpop.f32.mrf.mxu0  ;;  %v7259_v17 = vld [vmem:[%s10327_s1 + $0x38] sm:$0xff] }
 0x16b   :  { %10470 = vst [vmem:[#allocation107_spill] sm:$0xff] %v7244_v26  ;;  %v7246_v63 = vpop.permute.xlu1 %2192  ;;  %5890 = vpow2.f32 %v5292_v5  ;;  %v7251_v16 = vadd.f32 %v353_v12, %v6929_v61  ;;  %5562 = vmatmul.mubr.f32.gmra.mxu1 %v627_v11  ;;  %v7265_v5 = vld [vmem:[%s10327_s1 + $0x50] sm:$0xff]  ;;  %v7277_v26 = vpop.f32.mrf.mxu1 }
 0x16c   :  { %10471 = vst [vmem:[#allocation108_spill] sm:$0xff] %v7246_v63  ;;  %v5879_v45 = vpop.eup %5878  ;;  %5892 = vrcp.f32 %v535_v19  ;;  %v7253_v57 = vpop.f32.mrf.mxu0  ;;  %v7273_v19 = vadd.f32 %v7061_v9, %v6929_v61  ;;  %10475 = vst [vmem:[#allocation112_spill] sm:$0xff] %v7277_v26 }
 0x16d   :  { %10472 = vst [vmem:[#allocation109_spill] sm:$0xff] %v7253_v57  ;;  %v5881_v25 = vpop.eup %5880  ;;  %v536_v48 = vadd.f32 1.0, %v5879_v45  ;;  %v5293_v1 = vmul.f32 -1.442695, %v7251_v16  ;;  %2816 = vperm.xlu1 %5814, %v7259_v17   ;;  %2828 = vperm.xlu0 %5815, %v7265_v5   ;;  %v413_v60 = vpop.f32.mrf.mxu1  ;;  %v7342_v57 = vadd.f32 %v7198_v22, %v6929_v61  ;;  %v7359_v22 = vld [vmem:[%s10327_s1 + $0x80] sm:$0xff] }
 0x16e   :  { %v7268_v11 = vpop.permute.xlu0 %2196  ;;  %v628_v45 = vmul.f32 %v5881_v25, %v7089_v15  ;;  %v359_v12 = vpop.f32.mrf.mxu0  ;;  %v7286_v25 = vadd.f32 %v7091_v40, %v6929_v61 }
 0x16f   :  { %10473 = vst [vmem:[#allocation110_spill] sm:$0xff] %v7268_v11  ;;  %v7275_v63 = vpop.permute.xlu1 %2200  ;;  %5894 = vrcp.f32 %v536_v48  ;;  %v7280_v20 = vadd.f32 %v359_v12, %v6929_v61  ;;  %v7292_v48 = vld [vmem:[%s10327_s1 + $0x48] sm:$0xff]  ;;  %v7307_v12 = vadd.f32 %v7121_v34, %v6929_v61  ;;  %v7344_v6 = vpop.f32.mrf.mxu1 }
 0x170   :  { %10474 = vst [vmem:[#allocation111_spill] sm:$0xff] %v7275_v63  ;;  %v5883_v2 = vpop.eup %5882  ;;  %5896 = vpow2.f32 %v5293_v1  ;;  %5564 = vmatprep.mubr.f32.mxu1 %v628_v45  ;;  %v7282_v28 = vpop.f32.mrf.mxu0  ;;  %v7298_v1 = vld [vmem:[%s10327_s1 + $0x60] sm:$0xff]  ;;  %10482 = vst [vmem:[#allocation119_spill] sm:$0xff] %v7344_v6  ;;  %v7374_v6 = vadd.f32 %v413_v60, %v6929_v61  ;;  %v7386_v60 = vld [vmem:[%s10327_s1 + $0x90] sm:$0xff] }
 0x171   :  { %10476 = vst [vmem:[#allocation113_spill] sm:$0xff] %v7282_v28  ;;  %v5885_v11 = vpop.eup %5884  ;;  %v537_v9 = vadd.f32 1.0, %v5883_v2  ;;  %v5294_v15 = vmul.f32 -1.442695, %v7280_v20  ;;  %2824 = vperm.xlu1 %5814, %v7292_v48   ;;  %2836 = vperm.xlu0 %5815, %v7298_v1   ;;  %v5297_v2 = vmul.f32 -1.442695, %v7273_v19  ;;  %v419_v52 = vpop.f32.mrf.mxu1 }
 0x172   :  { %v7301_v45 = vpop.permute.xlu0 %2204  ;;  %v629_v40 = vmul.f32 %v5885_v11, %v7104_v18  ;;  %v365_v63 = vpop.f32.mrf.mxu0  ;;  %v5298_v18 = vmul.f32 -1.442695, %v7286_v25 }
 0x173   :  { %10477 = vst [vmem:[#allocation114_spill] sm:$0xff] %v7301_v45  ;;  %v7309_v26 = vpop.permute.xlu1 %2208  ;;  %5898 = vrcp.f32 %v537_v9  ;;  %v7312_v24 = vadd.f32 %v365_v63, %v6929_v61  ;;  %v7327_v63 = vld [vmem:[%s10327_s1 + $0x70] sm:$0xff] }
 0x174   :  { %10478 = vst [vmem:[#allocation115_spill] sm:$0xff] %v7309_v26  ;;  %v5887_v10 = vpop.eup %5886  ;;  %5900 = vpow2.f32 %v5294_v15  ;;  %5565 = vmatmul.mubr.f32.gmra.mxu1 %v629_v40  ;;  %v7314_v45 = vpop.f32.mrf.mxu0  ;;  %v7321_v26 = vld [vmem:[%s10327_s1 + $0x58] sm:$0xff]  ;;  %v5299_v15 = vmul.f32 -1.442695, %v7307_v12  ;;  %v7336_v40 = vadd.f32 %v7148_v4, %v6929_v61 }
 0x175   :  { %10479 = vst [vmem:[#allocation116_spill] sm:$0xff] %v7314_v45  ;;  %v5889_v44 = vpop.eup %5888  ;;  %v538_v11 = vadd.f32 1.0, %v5887_v10  ;;  %v5295_v34 = vmul.f32 -1.442695, %v7312_v24  ;;  %2832 = vperm.xlu1 %5814, %v7321_v26   ;;  %2844 = vperm.xlu0 %5815, %v7327_v63   ;;  %5902 = vpow2.f32 %v5297_v2 }
 0x176   :  { %v7330_v9 = vpop.permute.xlu0 %2212  ;;  %v630_v10 = vmul.f32 %v5889_v44, %v7119_v21  ;;  %v371_v45 = vpop.f32.mrf.mxu0 }
 0x177   :  { %10480 = vst [vmem:[#allocation117_spill] sm:$0xff] %v7330_v9  ;;  %v7338_v28 = vpop.permute.xlu1 %2216  ;;  %5904 = vrcp.f32 %v538_v11  ;;  %v7347_v2 = vadd.f32 %v371_v45, %v6929_v61  ;;  %v5300_v11 = vmul.f32 -1.442695, %v7336_v40 }
 0x178   :  { %10481 = vst [vmem:[#allocation118_spill] sm:$0xff] %v7338_v28  ;;  %v5891_v44 = vpop.eup %5890  ;;  %5906 = vpow2.f32 %v5295_v34  ;;  %5567 = vmatprep.mubr.f32.mxu1 %v630_v10  ;;  %v7353_v28 = vld [vmem:[%s10327_s1 + $0x68] sm:$0xff]  ;;  %v7368_v34 = vadd.f32 %v7248_v50, %v6929_v61  ;;  %v7380_v50 = vld [vmem:[%s10327_s1 + $0x78] sm:$0xff] }
 0x179   :  { %v5893_v21 = vpop.eup %5892  ;;  %5908 = vpow2.f32 %v5298_v18  ;;  %v539_v4 = vadd.f32 1.0, %v5891_v44  ;;  %v5296_v9 = vmul.f32 -1.442695, %v7347_v2  ;;  %2840 = vperm.xlu1 %5814, %v7353_v28   ;;  %2852 = vperm.xlu0 %5815, %v7359_v22   ;;  %v5301_v44 = vmul.f32 -1.442695, %v7342_v57 }
 0x17a   :  { %v7362_v45 = vpop.permute.xlu0 %2220  ;;  %5910 = vpow2.f32 %v5299_v15  ;;  %v631_v18 = vmul.f32 %v5893_v21, %v7136_v33 }
 0x17b   :  { %10483 = vst [vmem:[#allocation120_spill] sm:$0xff] %v7362_v45  ;;  %v7370_v10 = vpop.permute.xlu1 %2224  ;;  %5912 = vrcp.f32 %v539_v4 }
 0x17c   :  { %10484 = vst [vmem:[#allocation121_spill] sm:$0xff] %v7370_v10  ;;  %v5895_v29 = vpop.eup %5894  ;;  %5914 = vpow2.f32 %v5296_v9  ;;  %5568 = vmatmul.mubr.f32.gmra.mxu1 %v631_v18  ;;  %v5302_v9 = vmul.f32 -1.442695, %v7368_v34  ;;  %v5303_v18 = vmul.f32 -1.442695, %v7374_v6 }
 0x17d   :  { %v5897_v15 = vpop.eup %5896  ;;  %v632_v33 = vmul.f32 %v5895_v29, %v7151_v27  ;;  %2848 = vperm.xlu1 %5814, %v7380_v50   ;;  %2860 = vperm.xlu0 %5815, %v7386_v60   ;;  %5916 = vpow2.f32 %v5300_v11  ;;  %v7393_v29 = vadd.f32 %v419_v52, %v6929_v61  ;;  %v7402_v11 = vld [vmem:[%s10327_s1 + $0x88] sm:$0xff]  ;;  %v7408_v52 = vld [vmem:[%s10327_s1 + $0xa0] sm:$0xff] }
 0x17e   :  { %v7389_v21 = vpop.permute.xlu0 %2228  ;;  %v540_v27 = vadd.f32 1.0, %v5897_v15  ;;  %5918 = vpow2.f32 %v5301_v44 }
 0x17f   :  { %10485 = vst [vmem:[#allocation122_spill] sm:$0xff] %v7389_v21  ;;  %v7395_v4 = vpop.permute.xlu1 %2232  ;;  %5570 = vmatprep.mubr.f32.mxu1 %v632_v33  ;;  %v5304_v44 = vmul.f32 -1.442695, %v7393_v29  ;;  %v937_v33 = vld [vmem:[#allocation7 + $0x48] sm:$0xff]  ;;  %v935_v21 = vld [vmem:[#allocation7 + $0x38] sm:$0xff] }
 0x180   :  { %10486 = vst [vmem:[#allocation123_spill] sm:$0xff] %v7395_v4  ;;  %v5899_v10 = vpop.eup %5898  ;;  %5920 = vrcp.f32 %v540_v27  ;;  %v939_v27 = vld [vmem:[#allocation7 + $0x58] sm:$0xff]  ;;  %1018 = vmatpush1.msra.mxu1 %v937_v33 }
 0x181   :  { %v5901_v45 = vpop.eup %5900  ;;  %v633_v55 = vmul.f32 %v5899_v10, %v7176_v23  ;;  %2856 = vperm.xlu1 %5814, %v7402_v11   ;;  %2868 = vperm.xlu0 %5815, %v7408_v52   ;;  %5922 = vpow2.f32 %v5302_v9  ;;  %v7420_v9 = vld [vmem:[%s10327_s1 + $0x98] sm:$0xff] }
 0x182   :  { %v7411_v61 = vpop.permute.xlu0 %2236  ;;  %v541_v23 = vadd.f32 1.0, %v5901_v45  ;;  %v5903_v15 = vpop.eup %5902  ;;  %5924 = vpow2.f32 %v5303_v18  ;;  %5618 = vmatprep.subr.mxu0 %v939_v27  ;;  %v934_v18 = vld [vmem:[#allocation7 + $0x30] sm:$0xff]  ;;  %1019 = vmatprep.subr.mxu1 %v935_v21 }
 0x183   :  { %10487 = vst [vmem:[#allocation124_spill] sm:$0xff] %v7411_v61  ;;  %v7414_v10 = vpop.permute.xlu1 %2240  ;;  %5571 = vmatmul.mubr.f32.gmra.mxu1 %v633_v55  ;;  %v7426_v55 = vld [vmem:[%s10327_s1 + $0xb0] sm:$0xff]  ;;  %5619 = vmatpush3.msra.mxu0 %v939_v27  ;;  %v544_v38 = vadd.f32 1.0, %v5903_v15 }
 0x184   :  { %10488 = vst [vmem:[#allocation125_spill] sm:$0xff] %v7414_v10  ;;  %v5905_v4 = vpop.eup %5904  ;;  %5926 = vrcp.f32 %v541_v23  ;;  %v936_v23 = vld [vmem:[#allocation7 + $0x40] sm:$0xff]  ;;  %1020 = vmatpush1.msra.mxu1 %v934_v18 }
 0x185   :  { %v5907_v51 = vpop.eup %5906  ;;  %v634_v47 = vmul.f32 %v5905_v4, %v7201_v59  ;;  %2864 = vperm.xlu1 %5814, %v7420_v9   ;;  %2876 = vperm.xlu0 %5815, %v7426_v55   ;;  %5928 = vpow2.f32 %v5304_v44  ;;  %v932_v10 = vld [vmem:[#allocation7 + $0x20] sm:$0xff]  ;;  %v929_v44 = vld [vmem:[#allocation7 + $0x8] sm:$0xff] }
 0x186   :  { %v7429_v45 = vpop.permute.xlu0 %2244  ;;  %v5909_v33 = vpop.eup %5908  ;;  %v542_v59 = vadd.f32 1.0, %v5907_v51  ;;  %5620 = vmatprep.subr.mxu0 %v936_v23  ;;  %1021 = vmatprep.subr.mxu1 %v932_v10  ;;  %v7437_v51 = vld [vmem:[%s10327_s1 + $0xa8] sm:$0xff]  ;;  %v928_v18 = vld [vmem:[#allocation7] sm:$0xff] }
 0x187   :  { %10489 = vst [vmem:[#allocation126_spill] sm:$0xff] %v7429_v45  ;;  %v7431_v4 = vpop.permute.xlu1 %2248  ;;  %v5911_v61 = vpop.eup %5910  ;;  %5573 = vmatprep.mubr.f32.mxu1 %v634_v47  ;;  %v933_v45 = vld [vmem:[#allocation7 + $0x28] sm:$0xff]  ;;  %v7443_v47 = vld [vmem:[%s10327_s1 + $0xc0] sm:$0xff]  ;;  %v545_v10 = vadd.f32 1.0, %v5909_v33  ;;  %5621 = vmatpush3.msra.mxu0 %v936_v23 }
 0x188   :  { %10490 = vst [vmem:[#allocation127_spill] sm:$0xff] %v7431_v4  ;;  %v5913_v43 = vpop.eup %5912  ;;  %5930 = vrcp.f32 %v542_v59  ;;  %1022 = vmatpush1.msra.mxu1 %v931_v46  ;;  %v546_v27 = vadd.f32 1.0, %v5911_v61  ;;  %5622 = vmatprep.subr.mxu0 %v933_v45  ;;  %v930_v59 = vld [vmem:[#allocation7 + $0x10] sm:$0xff] }
 0x189   :  { %v5915_v36 = vpop.eup %5914  ;;  %v635_v30 = vmul.f32 %v5913_v43, %v7226_v39  ;;  %2872 = vperm.xlu1 %5814, %v7437_v51   ;;  %2884 = vperm.xlu0 %5815, %v7443_v47   ;;  %5932 = vrcp.f32 %v544_v38  ;;  %v7459_v46 = vld [vmem:[%s10327_s1 + $0xd0] sm:$0xff] }
 0x18a   :  { %v7446_v21 = vpop.permute.xlu0 %2252  ;;  %v543_v15 = vadd.f32 1.0, %v5915_v36  ;;  %v5917_v39 = vpop.eup %5916  ;;  %1023 = vmatprep.subr.mxu1 %v929_v44  ;;  %5623 = vmatpush3.msra.mxu0 %v933_v45  ;;  %v7453_v36 = vld [vmem:[%s10327_s1 + $0xb8] sm:$0xff] }
 0x18b   :  { %10491 = vst [vmem:[#allocation128_spill] sm:$0xff] %v7446_v21  ;;  %v7448_v43 = vpop.permute.xlu1 %2256  ;;  %5574 = vmatmul.mubr.f32.gmra.mxu1 %v635_v30  ;;  %v5919_v4 = vpop.eup %5918  ;;  %v547_v38 = vadd.f32 1.0, %v5917_v39  ;;  %5624 = vmatprep.subr.mxu0 %v930_v59 }
 0x18c   :  { %10492 = vst [vmem:[#allocation129_spill] sm:$0xff] %v7448_v43  ;;  %5934 = vrcp.f32 %v543_v15  ;;  %1024 = vmatpush1.msra.mxu1 %v928_v18  ;;  %v548_v33 = vadd.f32 1.0, %v5919_v4  ;;  %5625 = vmatpush3.msra.mxu0 %v930_v59  ;;  %v7470_v43 = vld [vmem:[%s10327_s1 + $0xc8] sm:$0xff] }
 0x18d   :  { %v5921_v3 = vpop.eup %5920  ;;  %2880 = vperm.xlu1 %5814, %v7453_v36   ;;  %2892 = vperm.xlu0 %5815, %v7459_v46   ;;  %5936 = vrcp.f32 %v545_v10 }
 0x18e   :  { %v7462_v30 = vpop.permute.xlu0 %2260  ;;  %v636_v61 = vmul.f32 %v5921_v3, %v7251_v16  ;;  %v5923_v23 = vpop.eup %5922  ;;  %5938 = vrcp.f32 %v546_v27  ;;  %v7476_v3 = vld [vmem:[%s10327_s1 + $0xe0] sm:$0xff] }
 0x18f   :  { %10493 = vst [vmem:[#allocation130_spill] sm:$0xff] %v7462_v30  ;;  %v7465_v45 = vpop.permute.xlu1 %2264  ;;  %v5925_v44 = vpop.eup %5924  ;;  %5940 = vrcp.f32 %v547_v38  ;;  %v549_v4 = vadd.f32 1.0, %v5923_v23  ;;  %v7493_v38 = vld [vmem:[%s10327_s1 + $0xf0] sm:$0xff] }
 0x190   :  { %10494 = vst [vmem:[#allocation131_spill] sm:$0xff] %v7465_v45  ;;  %5576 = vmatprep.mubr.f32.mxu1 %v636_v61  ;;  %5942 = vrcp.f32 %v548_v33  ;;  %v550_v18 = vadd.f32 1.0, %v5925_v44  ;;  %v7487_v61 = vld [vmem:[%s10327_s1 + $0xd8] sm:$0xff] }
 0x191   :  { %v5927_v15 = vpop.eup %5926  ;;  %2888 = vperm.xlu1 %5814, %v7470_v43   ;;  %2900 = vperm.xlu0 %5815, %v7476_v3   ;;  %5944 = vrcp.f32 %v549_v4  ;;  %v7517_v45 = vld [vmem:[%s10327_s1 + $0xf8] sm:$0xff] }
 0x192   :  { %v7479_v16 = vpop.permute.xlu0 %2268  ;;  %v637_v10 = vmul.f32 %v5927_v15, %v7280_v20  ;;  %v5929_v27 = vpop.eup %5928  ;;  %5946 = vrcp.f32 %v550_v18 }
 0x193   :  { %10495 = vst [vmem:[#allocation132_spill] sm:$0xff] %v7479_v16  ;;  %v7482_v39 = vpop.permute.xlu1 %2272  ;;  %v551_v20 = vadd.f32 1.0, %v5929_v27  ;;  %v6395_v16 = vmov 5  }
 0x194   :  { %10496 = vst [vmem:[#allocation133_spill] sm:$0xff] %v7482_v39  ;;  %5577 = vmatmul.mubr.f32.gmra.mxu1 %v637_v10  ;;  %v7504_v39 = vld [vmem:[%s10327_s1 + $0xe8] sm:$0xff] }
 0x195   :  { %v5931_v59 = vpop.eup %5930  ;;  %2896 = vperm.xlu1 %5814, %v7487_v61   ;;  %2908 = vperm.xlu0 %5815, %v7493_v38   ;;  %5948 = vrcp.f32 %v551_v20 }
 0x196   :  { %v638_v23 = vmul.f32 %v5931_v59, %v7312_v24  ;;  %v7497_v33 = vpop.permute.xlu0 %2468  ;;  %v5933_v15 = vpop.eup %5932 }
 0x197   :  { %v7499_v44 = vpop.permute.xlu1 %2472  ;;  %v640_v18 = vmul.f32 %v5933_v15, %v7273_v19 }
 0x198   :  { %5579 = vmatprep.mubr.f32.mxu1 %v638_v23 }
 0x199   :  { %v5935_v10 = vpop.eup %5934  ;;  %2904 = vperm.xlu1 %5814, %v7504_v39   ;;  %5816 = vset.pattern.permute.xlu0 %v6395_v16 }
 0x19a   :  { %v639_v24 = vmul.f32 %v5935_v10, %v7347_v2  ;;  %3108 = vperm.xlu0 %5816, %v7160_v7   ;;  %v7509_v4 = vpop.permute.xlu0 %2480  ;;  %v5937_v27 = vpop.eup %5936 }
 0x19b   :  { %v7512_v59 = vpop.permute.xlu1 %2476  ;;  %v5939_v23 = vpop.eup %5938  ;;  %v641_v2 = vmul.f32 %v5937_v27, %v7286_v25 }
 0x19c   :  { %5580 = vmatmul.mubr.f32.gmra.mxu1 %v639_v24  ;;  %v5941_v10 = vpop.eup %5940  ;;  %v642_v19 = vmul.f32 %v5939_v23, %v7307_v12 }
 0x19d   :  { %5582 = vmatprep.mubr.f32.mxu1 %v640_v18  ;;  %2912 = vperm.xlu1 %5814, %v7517_v45   ;;  %v5943_v24 = vpop.eup %5942  ;;  %v643_v18 = vmul.f32 %v5941_v10, %v7336_v40 }
 0x19e   :  { %3120 = vperm.xlu0 %5816, %v7210_v53   ;;  %v7522_v20 = vpop.permute.xlu0 %2488  ;;  %v5945_v27 = vpop.eup %5944  ;;  %v644_v30 = vmul.f32 %v5943_v24, %v7342_v57 }
 0x19f   :  { %10497 = vst [vmem:[#allocation134_spill] sm:$0xff] %v7522_v20  ;;  %v7525_v15 = vpop.permute.xlu1 %2484  ;;  %v5947_v12 = vpop.eup %5946  ;;  %v645_v23 = vmul.f32 %v5945_v27, %v7368_v34 }
 0x1a0   :  { %5583 = vmatmul.mubr.f32.gmra.mxu1 %v641_v2  ;;  %v646_v2 = vmul.f32 %v5947_v12, %v7374_v6 }
 0x1a1   :  { %5585 = vmatprep.mubr.f32.mxu1 %v642_v19  ;;  %5817 = vset.pattern.permute.xlu1 %v6395_v16  ;;  %v10504_v19 = vmov 0.0  }
 0x1a2   :  { %3112 = vperm.xlu1 %5817, %v7166_v54   ;;  %3128 = vperm.xlu0 %5816, %v7235_v14   ;;  %v7530_v25 = vpop.permute.xlu0 %2496  ;;  %v5949_v16 = vpop.eup %5948 }
 0x1a3   :  { %10498 = vst [vmem:[#allocation135_spill] sm:$0xff] %v7530_v25  ;;  %v7533_v21 = vpop.permute.xlu1 %2492  ;;  %v647_v57 = vmul.f32 %v5949_v16, %v7393_v29  ;;  %v4113_v16 = vld [vmem:[#allocation8 + $0x170] sm:$0xff] }
 0x1a4   :  { %10499 = vst [vmem:[#allocation136_spill] sm:$0xff] %v7533_v21  ;;  %5586 = vmatmul.mubr.f32.gmra.mxu1 %v643_v18  ;;  %4132 = vmatprep.subr.mxu0 %v4113_v16 }
 0x1a5   :  { %5588 = vmatprep.mubr.f32.mxu1 %v644_v30 }
 0x1a6   :  { %3116 = vperm.xlu1 %5817, %v7185_v8   ;;  %3136 = vperm.xlu0 %5816, %v7259_v17   ;;  %v7538_v40 = vpop.permute.xlu0 %2504 }
 0x1a7   :  { %10500 = vst [vmem:[#allocation137_spill] sm:$0xff] %v7538_v40  ;;  %v7541_v10 = vpop.permute.xlu1 %2500 }
 0x1a8   :  { %10501 = vst [vmem:[#allocation138_spill] sm:$0xff] %v7541_v10  ;;  %5589 = vmatmul.mubr.f32.gmra.mxu1 %v645_v23  ;;  %v7569_v23 = vld [vmem:[#allocation8 + $0x178] sm:$0xff] }
 0x1a9   :  { %5591 = vmatprep.mubr.f32.mxu1 %v646_v2  ;;  %5674 = vmatprep.subr.mxu1 %v7569_v23 }
 0x1aa   :  { %3124 = vperm.xlu1 %5817, %v7191_v13   ;;  %3144 = vperm.xlu0 %5816, %v7292_v48   ;;  %v7546_v34 = vpop.permute.xlu0 %2512 }
 0x1ab   :  { %10502 = vst [vmem:[#allocation139_spill] sm:$0xff] %v7546_v34  ;;  %v7548_v30 = vpop.permute.xlu1 %2508 }
 0x1ac   :  { %10503 = vst [vmem:[#allocation140_spill] sm:$0xff] %v7548_v30  ;;  %5592 = vmatmul.mubr.f32.gmra.mxu1 %v647_v57 }
 0x1ad   :  { %1057 = vmatprep.mubr.f32.mxu1 %v10504_v19 }
 0x1ae   :  { %3132 = vperm.xlu1 %5817, %v7216_v42   ;;  %3152 = vperm.xlu0 %5816, %v7321_v26   ;;  %v7553_v6 = vpop.permute.xlu0 %2520 }
 0x1af   :  { %10505 = vst [vmem:[#allocation141_spill] sm:$0xff] %v7553_v6  ;;  %v7555_v24 = vpop.permute.xlu1 %2516 }
 0x1b0   :  { %10506 = vst [vmem:[#allocation142_spill] sm:$0xff] %v7555_v24 }
 0x1b2   :  { %3140 = vperm.xlu1 %5817, %v7241_v31   ;;  %3160 = vperm.xlu0 %5816, %v7353_v28   ;;  %v7559_v29 = vpop.permute.xlu0 %2528 }
 0x1b3   :  { %10507 = vst [vmem:[#allocation143_spill] sm:$0xff] %v7559_v29  ;;  %v7561_v18 = vpop.permute.xlu1 %2524 }
 0x1b4   :  { %10508 = vst [vmem:[#allocation144_spill] sm:$0xff] %v7561_v18 }
 0x1b6   :  { %3148 = vperm.xlu1 %5817, %v7265_v5   ;;  %3168 = vperm.xlu0 %5816, %v7380_v50   ;;  %v7565_v27 = vpop.permute.xlu0 %2536 }
 0x1b7   :  { %10509 = vst [vmem:[#allocation145_spill] sm:$0xff] %v7565_v27  ;;  %v7567_v12 = vpop.permute.xlu1 %2532 }
 0x1b8   :  { %10510 = vst [vmem:[#allocation146_spill] sm:$0xff] %v7567_v12 }
 0x1ba   :  { %3156 = vperm.xlu1 %5817, %v7298_v1   ;;  %3176 = vperm.xlu0 %5816, %v7402_v11   ;;  %v7574_v2 = vpop.permute.xlu0 %2544 }
 0x1bb   :  { %10511 = vst [vmem:[#allocation147_spill] sm:$0xff] %v7574_v2  ;;  %v7576_v57 = vpop.permute.xlu1 %2540 }
 0x1bc   :  { %10512 = vst [vmem:[#allocation148_spill] sm:$0xff] %v7576_v57 }
 0x1be   :  { %3164 = vperm.xlu1 %5817, %v7327_v63   ;;  %3184 = vperm.xlu0 %5816, %v7420_v9   ;;  %v7580_v27 = vpop.permute.xlu0 %2552 }
 0x1bf   :  { %10513 = vst [vmem:[#allocation149_spill] sm:$0xff] %v7580_v27  ;;  %v7582_v12 = vpop.permute.xlu1 %2548 }
 0x1c0   :  { %10514 = vst [vmem:[#allocation150_spill] sm:$0xff] %v7582_v12 }
 0x1c2   :  { %3172 = vperm.xlu1 %5817, %v7359_v22   ;;  %3192 = vperm.xlu0 %5816, %v7437_v51   ;;  %v7586_v29 = vpop.permute.xlu0 %2560 }
 0x1c3   :  { %10515 = vst [vmem:[#allocation151_spill] sm:$0xff] %v7586_v29  ;;  %v7588_v18 = vpop.permute.xlu1 %2556 }
 0x1c4   :  { %10516 = vst [vmem:[#allocation152_spill] sm:$0xff] %v7588_v18 }
 0x1c6   :  { %3180 = vperm.xlu1 %5817, %v7386_v60   ;;  %3200 = vperm.xlu0 %5816, %v7453_v36   ;;  %v7592_v16 = vpop.permute.xlu0 %2568 }
 0x1c7   :  { %10517 = vst [vmem:[#allocation153_spill] sm:$0xff] %v7592_v16  ;;  %v7594_v2 = vpop.permute.xlu1 %2564 }
 0x1c8   :  { %10518 = vst [vmem:[#allocation154_spill] sm:$0xff] %v7594_v2 }
 0x1ca   :  { %3188 = vperm.xlu1 %5817, %v7408_v52   ;;  %3208 = vperm.xlu0 %5816, %v7470_v43   ;;  %v7598_v27 = vpop.permute.xlu0 %2576 }
 0x1cb   :  { %10519 = vst [vmem:[#allocation155_spill] sm:$0xff] %v7598_v27  ;;  %v7600_v12 = vpop.permute.xlu1 %2572 }
 0x1cc   :  { %10520 = vst [vmem:[#allocation156_spill] sm:$0xff] %v7600_v12 }
 0x1ce   :  { %3196 = vperm.xlu1 %5817, %v7426_v55   ;;  %3216 = vperm.xlu0 %5816, %v7487_v61   ;;  %v7604_v29 = vpop.permute.xlu0 %2584 }
 0x1cf   :  { %10521 = vst [vmem:[#allocation157_spill] sm:$0xff] %v7604_v29  ;;  %v7606_v18 = vpop.permute.xlu1 %2580  ;;  %v6396_v29 = vmov 6  }
 0x1d0   :  { %10522 = vst [vmem:[#allocation158_spill] sm:$0xff] %v7606_v18 }
 0x1d2   :  { %3204 = vperm.xlu1 %5817, %v7443_v47   ;;  %3224 = vperm.xlu0 %5816, %v7504_v39   ;;  %v7610_v16 = vpop.permute.xlu0 %2592 }
 0x1d3   :  { %10523 = vst [vmem:[#allocation159_spill] sm:$0xff] %v7610_v16  ;;  %v7612_v2 = vpop.permute.xlu1 %2588 }
 0x1d4   :  { %10524 = vst [vmem:[#allocation160_spill] sm:$0xff] %v7612_v2 }
 0x1d6   :  { %3212 = vperm.xlu1 %5817, %v7459_v46   ;;  %3232 = vperm.xlu0 %5816, %v7517_v45  }
 0x1d8   :  { %v7616_v27 = vpop.permute.xlu1 %2788  ;;  %v7618_v12 = vpop.permute.xlu0 %2792 }
 0x1da   :  { %3220 = vperm.xlu1 %5817, %v7476_v3   ;;  %5819 = vset.pattern.permute.xlu0 %v6396_v29 }
 0x1db   :  { %3432 = vperm.xlu0 %5819, %v7166_v54  }
 0x1dc   :  { %v7622_v18 = vpop.permute.xlu1 %2796  ;;  %v7624_v57 = vpop.permute.xlu0 %2804 }
 0x1de   :  { %3228 = vperm.xlu1 %5817, %v7493_v38  }
 0x1df   :  { %3444 = vperm.xlu0 %5819, %v7191_v13  }
 0x1e0   :  { %v7628_v16 = vpop.permute.xlu1 %2800  ;;  %v7630_v2 = vpop.permute.xlu0 %2812 }
 0x1e1   :  { %10525 = vst [vmem:[#allocation161_spill] sm:$0xff] %v7630_v2  ;;  %v10595_v2 = vld [vmem:[#allocation105_spill] sm:$0xff] }
 0x1e2   :  { %5818 = vset.pattern.permute.xlu1 %v6396_v29 }
 0x1e3   :  { %3428 = vperm.xlu1 %5818, %v7160_v7   ;;  %3452 = vperm.xlu0 %5819, %v7216_v42  }
 0x1e4   :  { %v7634_v6 = vpop.permute.xlu1 %2808  ;;  %v7636_v54 = vpop.permute.xlu0 %2820 }
 0x1e5   :  { %10526 = vst [vmem:[#allocation162_spill] sm:$0xff] %v7634_v6  ;;  %10527 = vst [vmem:[#allocation163_spill] sm:$0xff] %v7636_v54  ;;  %v10637_v6 = vld [vmem:[#allocation46_spill] sm:$0xff] }
 0x1e7   :  { %3436 = vperm.xlu1 %5818, %v7185_v8   ;;  %3460 = vperm.xlu0 %5819, %v7241_v31  }
 0x1e8   :  { %v7640_v24 = vpop.permute.xlu1 %2816  ;;  %v7642_v13 = vpop.permute.xlu0 %2828 }
 0x1e9   :  { %10528 = vst [vmem:[#allocation164_spill] sm:$0xff] %v7640_v24  ;;  %10529 = vst [vmem:[#allocation165_spill] sm:$0xff] %v7642_v13 }
 0x1eb   :  { %3440 = vperm.xlu1 %5818, %v7210_v53   ;;  %3468 = vperm.xlu0 %5819, %v7265_v5  }
 0x1ec   :  { %v7646_v29 = vpop.permute.xlu1 %2824  ;;  %v7648_v7 = vpop.permute.xlu0 %2836 }
 0x1ed   :  { %10530 = vst [vmem:[#allocation166_spill] sm:$0xff] %v7646_v29  ;;  %10531 = vst [vmem:[#allocation167_spill] sm:$0xff] %v7648_v7  ;;  %v4093_v7 = vld [vmem:[#allocation8 + $0xd0] sm:$0xff] }
 0x1ef   :  { %3448 = vperm.xlu1 %5818, %v7235_v14   ;;  %3476 = vperm.xlu0 %5819, %v7298_v1  }
 0x1f0   :  { %v7652_v42 = vpop.permute.xlu1 %2832  ;;  %v7654_v8 = vpop.permute.xlu0 %2844 }
 0x1f1   :  { %10532 = vst [vmem:[#allocation168_spill] sm:$0xff] %v7652_v42  ;;  %10533 = vst [vmem:[#allocation169_spill] sm:$0xff] %v7654_v8  ;;  %v6243_v8 = vld [vmem:[%s10327_s1 + $0x20] sm:$0xff]  ;;  %v10563_v42 = vld [vmem:[#allocation81_spill] sm:$0xff] }
 0x1f3   :  { %3456 = vperm.xlu1 %5818, %v7259_v17   ;;  %3484 = vperm.xlu0 %5819, %v7327_v63   ;;  %v7675_v63 = vsub.s32 1, %v6908_v0 }
 0x1f4   :  { %v7658_v31 = vpop.permute.xlu1 %2840  ;;  %v7660_v53 = vpop.permute.xlu0 %2852 }
 0x1f5   :  { %10534 = vst [vmem:[#allocation170_spill] sm:$0xff] %v7658_v31  ;;  %10535 = vst [vmem:[#allocation171_spill] sm:$0xff] %v7660_v53  ;;  %v4073_v31 = vld [vmem:[#allocation8 + $0x30] sm:$0xff] }
 0x1f7   :  { %3464 = vperm.xlu1 %5818, %v7292_v48   ;;  %3492 = vperm.xlu0 %5819, %v7359_v22  }
 0x1f8   :  { %v7664_v5 = vpop.permute.xlu1 %2848  ;;  %v7666_v14 = vpop.permute.xlu0 %2860 }
 0x1f9   :  { %10536 = vst [vmem:[#allocation172_spill] sm:$0xff] %v7664_v5  ;;  %10537 = vst [vmem:[#allocation173_spill] sm:$0xff] %v7666_v14  ;;  %v7683_v14 = vpop.f32.mrf.mxu1 }
 0x1fb   :  { %3472 = vperm.xlu1 %5818, %v7321_v26   ;;  %3500 = vperm.xlu0 %5819, %v7386_v60   ;;  %v6238_v26 = vld [vmem:[%s10329_s3] sm:$0x3] }
 0x1fc   :  { %v7670_v1 = vpop.permute.xlu1 %2856  ;;  %v7672_v17 = vpop.permute.xlu0 %2868  ;;  %v7689_v60 = vrot.slane %v6238_v26, %v7675_v63 }
 0x1fd   :  { %10538 = vst [vmem:[#allocation174_spill] sm:$0xff] %v7670_v1  ;;  %10539 = vst [vmem:[#allocation175_spill] sm:$0xff] %v7672_v17  ;;  %v7694_v17 = vld [vmem:[%s10331_s5] ss:$0 sm:$0xff] }
 0x1fe   :  { %v236_v26 = vadd.f32 %v6940_v56, %v7689_v60  ;;  %v242_v5 = vadd.f32 %v6952_v49, %v7689_v60  ;;  %v4110_v56 = vld [vmem:[#allocation8 + $0x158] sm:$0xff]  ;;  %v4109_v49 = vld [vmem:[#allocation8 + $0x150] sm:$0xff]  ;;  %v308_v34 = vadd.f32 %v10563_v42, %v7689_v60 }
 0x1ff   :  { %3480 = vperm.xlu1 %5818, %v7353_v28   ;;  %3508 = vperm.xlu0 %5819, %v7408_v52  }
 0x200   :  { %v7679_v48 = vpop.permute.xlu1 %2864  ;;  %v7681_v22 = vpop.permute.xlu0 %2876 }
 0x201   :  { %10540 = vst [vmem:[#allocation176_spill] sm:$0xff] %v7679_v48  ;;  %10541 = vst [vmem:[#allocation177_spill] sm:$0xff] %v7681_v22 }
 0x203   :  { %v5548_v28 = vpop.f32.mrf.mxu1  ;;  %3488 = vperm.xlu1 %5818, %v7380_v50   ;;  %3516 = vperm.xlu0 %5819, %v7426_v55  }
 0x204   :  { %v7698_v52 = vpop.permute.xlu1 %2872  ;;  %v743_v22 = vadd.f32 %v5548_v28, %v7694_v17  ;;  %v7701_v1 = vpop.permute.xlu0 %2884 }
 0x205   :  { %10542 = vst [vmem:[#allocation178_spill] sm:$0xff] %v7698_v52  ;;  %v737_v48 = vpop.f32.mrf.mxu1  ;;  %10543 = vst [vmem:[#allocation179_spill] sm:$0xff] %v7701_v1  ;;  %v4112_v52 = vld [vmem:[#allocation8 + $0x168] sm:$0xff]  ;;  %v248_v1 = vadd.f32 %v6964_v41, %v7689_v60 }
 0x206   :  { %v738_v53 = vadd.f32 %v7694_v17, %v737_v48  ;;  %v7714_v28 = vadd.f32 %v743_v22, %v242_v5  ;;  %v4104_v41 = vld [vmem:[#allocation8 + $0x128] sm:$0xff] }
 0x207   :  { %3496 = vperm.xlu1 %5818, %v7402_v11   ;;  %3524 = vperm.xlu0 %5819, %v7443_v47   ;;  %v4111_v47 = vld [vmem:[#allocation8 + $0x160] sm:$0xff] }
 0x208   :  { %v7710_v50 = vadd.f32 %v738_v53, %v236_v26  ;;  %v7712_v55 = vpop.permute.xlu1 %2880  ;;  %v7720_v11 = vpop.permute.xlu0 %2892  ;;  %v4107_v26 = vld [vmem:[#allocation8 + $0x140] sm:$0xff] }
 0x209   :  { %10544 = vst [vmem:[#allocation180_spill] sm:$0xff] %v7712_v55  ;;  %10545 = vst [vmem:[#allocation181_spill] sm:$0xff] %v7720_v11  ;;  %v4096_v11 = vld [vmem:[#allocation8 + $0xe8] sm:$0xff] }
 0x20a   :  { %1058 = vmatmul.mubr.f32.vlgmr.msra.gmra.mxu1 %v7710_v50  ;;  %5626 = vmatprep.mubr.f32.mxu0 %v7710_v50 }
 0x20b   :  { %v5551_v48 = vpop.f32.mrf.mxu1  ;;  %5627 = vmatmul.mubr.f32.vlgmr.msra.gmra.mxu0 %v7714_v28  ;;  %1063 = vmatprep.mubr.f32.mxu1 %v10504_v19 }
 0x20c   :  { %5675 = vmatpush3.msra.mxu1 %v7569_v23  ;;  %4133 = vmatpush1.msra.mxu0 %v4112_v52  ;;  %v7723_v53 = vpop.permute.xlu1 %2888  ;;  %v753_v5 = vadd.f32 %v5551_v48, %v7694_v17  ;;  %v4106_v23 = vld [vmem:[#allocation8 + $0x138] sm:$0xff]  ;;  %v254_v52 = vadd.f32 %v6976_v37, %v7689_v60  ;;  %v4103_v37 = vld [vmem:[#allocation8 + $0x120] sm:$0xff] }
 0x20d   :  { %10546 = vst [vmem:[#allocation182_spill] sm:$0xff] %v7723_v53  ;;  %v747_v22 = vpop.f32.mrf.mxu1  ;;  %3504 = vperm.xlu1 %5818, %v7420_v9   ;;  %4134 = vmatprep.subr.mxu0 %v4110_v56 }
 0x20e   :  { %v748_v55 = vadd.f32 %v7694_v17, %v747_v22  ;;  %1064 = vmatmul.mubr.f32.gmra.mxu1 %v7714_v28  ;;  %4135 = vmatpush1.msra.mxu0 %v4109_v49  ;;  %v7738_v56 = vadd.f32 %v753_v5, %v254_v52  ;;  %v4108_v49 = vld [vmem:[#allocation8 + $0x148] sm:$0xff]  ;;  %v7741_v22 = vpop.permute.xlu0 %2900  ;;  %v260_v52 = vadd.f32 %v6988_v35, %v7689_v60 }
 0x20f   :  { %1069 = vmatprep.mubr.f32.mxu1 %v10504_v19  ;;  %5676 = vmatprep.subr.mxu1 %v4111_v47  ;;  %10548 = vst [vmem:[#allocation184_spill] sm:$0xff] %v7741_v22 }
 0x210   :  { %v7734_v48 = vadd.f32 %v748_v55, %v248_v1  ;;  %5677 = vmatpush3.msra.mxu1 %v4111_v47  ;;  %4136 = vmatprep.subr.mxu0 %v4107_v26  ;;  %v7736_v9 = vpop.permute.xlu1 %2896  ;;  %v4105_v47 = vld [vmem:[#allocation8 + $0x130] sm:$0xff] }
 0x211   :  { %10547 = vst [vmem:[#allocation183_spill] sm:$0xff] %v7736_v9  ;;  %3512 = vperm.xlu1 %5818, %v7437_v51   ;;  %4137 = vmatpush1.msra.mxu0 %v4106_v23  ;;  %v4101_v51 = vld [vmem:[#allocation8 + $0x110] sm:$0xff]  ;;  %v4100_v23 = vld [vmem:[#allocation8 + $0x108] sm:$0xff] }
 0x212   :  { %1070 = vmatmul.mubr.f32.gmra.mxu1 %v7734_v48  ;;  %5629 = vmatprep.mubr.f32.mxu0 %v7734_v48  ;;  %v6241_v9 = vld [vmem:[%s10327_s1 + $0x10] sm:$0xff] }
 0x213   :  { %5630 = vmatmul.mubr.f32.gmra.mxu0 %v7738_v56  ;;  %1075 = vmatprep.mubr.f32.mxu1 %v10504_v19 }
 0x214   :  { %v5554_v1 = vpop.f32.mrf.mxu1  ;;  %4138 = vmatprep.subr.mxu0 %v4104_v41  ;;  %5678 = vmatprep.subr.mxu1 %v4108_v49  ;;  %v7747_v55 = vpop.permute.xlu1 %2904 }
 0x215   :  { %10549 = vst [vmem:[#allocation185_spill] sm:$0xff] %v7747_v55  ;;  %3520 = vperm.xlu1 %5818, %v7453_v36   ;;  %4139 = vmatpush1.msra.mxu0 %v4103_v37  ;;  %v763_v5 = vadd.f32 %v5554_v1, %v7694_v17  ;;  %v4098_v36 = vld [vmem:[#allocation8 + $0xf8] sm:$0xff]  ;;  %v7757_v37 = vpop.permute.xlu0 %2908  ;;  %v266_v1 = vadd.f32 %v7000_v32, %v7689_v60 }
 0x216   :  { %v757_v26 = vpop.f32.mrf.mxu1  ;;  %1076 = vmatmul.mubr.f32.gmra.mxu1 %v7738_v56  ;;  %3532 = vperm.xlu0 %5819, %v7459_v46   ;;  %10550 = vst [vmem:[#allocation186_spill] sm:$0xff] %v7757_v37 }
 0x217   :  { %v758_v41 = vadd.f32 %v7694_v17, %v757_v26  ;;  %1081 = vmatprep.mubr.f32.mxu1 %v10504_v19  ;;  %5679 = vmatpush3.msra.mxu1 %v4108_v49  ;;  %v7766_v35 = vadd.f32 %v763_v5, %v266_v1  ;;  %v4097_v49 = vld [vmem:[#allocation8 + $0xf0] sm:$0xff]  ;;  %v4094_v5 = vld [vmem:[#allocation8 + $0xd8] sm:$0xff]  ;;  %v278_v1 = vadd.f32 %v7024_v62, %v7689_v60 }
 0x218   :  { %4140 = vmatprep.subr.mxu0 %v4101_v51  ;;  %v7761_v55 = vpop.permute.xlu1 %2912  ;;  %5680 = vmatprep.subr.mxu1 %v4105_v47  ;;  %v4095_v51 = vld [vmem:[#allocation8 + $0xe0] sm:$0xff] }
 0x219   :  { %10551 = vst [vmem:[#allocation187_spill] sm:$0xff] %v7761_v55  ;;  %v7763_v46 = vadd.f32 %v758_v41, %v260_v52  ;;  %3528 = vperm.xlu1 %5818, %v7470_v43   ;;  %4141 = vmatpush1.msra.mxu0 %v4100_v23  ;;  %v7776_v26 = vpop.permute.xlu0 %3108  ;;  %v4092_v52 = vld [vmem:[#allocation8 + $0xc8] sm:$0xff]  ;;  %v272_v41 = vadd.f32 %v7012_v58, %v7689_v60  ;;  %v4086_v55 = vld [vmem:[#allocation8 + $0x98] sm:$0xff] }
 0x21a   :  { %3540 = vperm.xlu0 %5819, %v7476_v3   ;;  %4142 = vmatprep.subr.mxu0 %v4098_v36 }
 0x21b   :  { %1082 = vmatmul.mubr.f32.gmra.mxu1 %v7763_v46  ;;  %5632 = vmatprep.mubr.f32.mxu0 %v7763_v46 }
 0x21c   :  { %v5557_v32 = vpop.f32.mrf.mxu1  ;;  %5633 = vmatmul.mubr.f32.gmra.mxu0 %v7766_v35  ;;  %1087 = vmatprep.mubr.f32.mxu1 %v10504_v19 }
 0x21d   :  { %3536 = vperm.xlu1 %5818, %v7487_v61   ;;  %4143 = vmatpush1.msra.mxu0 %v4097_v49  ;;  %v7774_v43 = vpop.permute.xlu1 %3112  ;;  %v773_v3 = vadd.f32 %v5557_v32, %v7694_v17  ;;  %v4091_v61 = vld [vmem:[#allocation8 + $0xc0] sm:$0xff]  ;;  %v4102_v32 = vld [vmem:[#allocation8 + $0x118] sm:$0xff] }
 0x21e   :  { %v767_v23 = vpop.f32.mrf.mxu1  ;;  %5681 = vmatpush3.msra.mxu1 %v4105_v47  ;;  %3548 = vperm.xlu0 %5819, %v7493_v38   ;;  %v6397_v47 = vmov 7  }
 0x21f   :  { %v768_v36 = vadd.f32 %v7694_v17, %v767_v23  ;;  %1088 = vmatmul.mubr.f32.gmra.mxu1 %v7766_v35  ;;  %4144 = vmatprep.subr.mxu0 %v4095_v51  ;;  %v7792_v58 = vadd.f32 %v773_v3, %v278_v1  ;;  %v7796_v51 = vpop.permute.xlu0 %3120 }
 0x220   :  { %1093 = vmatprep.mubr.f32.mxu1 %v10504_v19  ;;  %4145 = vmatpush1.msra.mxu0 %v4094_v5  ;;  %v4089_v5 = vld [vmem:[#allocation8 + $0xb0] sm:$0xff] }
 0x221   :  { %v7787_v49 = vadd.f32 %v768_v36, %v272_v41  ;;  %3544 = vperm.xlu1 %5818, %v7504_v39   ;;  %v7790_v38 = vpop.permute.xlu1 %3116  ;;  %4146 = vmatprep.subr.mxu0 %v4092_v52  ;;  %v4088_v39 = vld [vmem:[#allocation8 + $0xa8] sm:$0xff]  ;;  %v6239_v52 = vld [vmem:[%s10327_s1] sm:$0xff] }
 0x222   :  { %5820 = vset.pattern.permute.xlu0 %v6397_v47  ;;  %4147 = vmatpush1.msra.mxu0 %v4091_v61  ;;  %v10553_v36 = vld [vmem:[#allocation68_spill] sm:$0xff] }
 0x223   :  { %1094 = vmatmul.mubr.f32.gmra.mxu1 %v7787_v49  ;;  %5635 = vmatprep.mubr.f32.mxu0 %v7787_v49  ;;  %v5560_v62 = vpop.f32.mrf.mxu1  ;;  %v284_v61 = vadd.f32 %v10553_v36, %v7689_v60 }
 0x224   :  { %5636 = vmatmul.mubr.f32.gmra.mxu0 %v7792_v58  ;;  %1099 = vmatprep.mubr.f32.mxu1 %v10504_v19  ;;  %v783_v3 = vadd.f32 %v5560_v62, %v7694_v17  ;;  %v10554_v62 = vld [vmem:[#allocation71_spill] sm:$0xff] }
 0x225   :  { %v777_v23 = vpop.f32.mrf.mxu1  ;;  %3552 = vperm.xlu1 %5818, %v7517_v45   ;;  %3748 = vperm.xlu0 %5820, %v6239_v52   ;;  %v7805_v41 = vpop.permute.xlu1 %3124  ;;  %v290_v37 = vadd.f32 %v10554_v62, %v7689_v60  ;;  %v10558_v62 = vld [vmem:[#allocation74_spill] sm:$0xff] }
 0x226   :  { %10552 = vst [vmem:[#allocation188_spill] sm:$0xff] %v7805_v41  ;;  %v778_v1 = vadd.f32 %v7694_v17, %v777_v23  ;;  %5682 = vmatprep.subr.mxu1 %v4102_v32  ;;  %4148 = vmatprep.subr.mxu0 %v4089_v5  ;;  %v7820_v23 = vpop.permute.xlu0 %3128  ;;  %v4085_v5 = vld [vmem:[#allocation8 + $0x90] sm:$0xff] }
 0x227   :  { %1100 = vmatmul.mubr.f32.gmra.mxu1 %v7792_v58  ;;  %4149 = vmatpush1.msra.mxu0 %v4088_v39  ;;  %v7816_v52 = vadd.f32 %v783_v3, %v290_v37  ;;  %10556 = vst [vmem:[#allocation71_spill] sm:$0xff] %v7820_v23  ;;  %v6240_v39 = vld [vmem:[%s10327_s1 + $0x8] sm:$0xff]  ;;  %v4082_v3 = vld [vmem:[#allocation8 + $0x78] sm:$0xff] }
 0x228   :  { %v7813_v45 = vadd.f32 %v778_v1, %v284_v61  ;;  %1105 = vmatprep.mubr.f32.mxu1 %v10504_v19  ;;  %5683 = vmatpush3.msra.mxu1 %v4102_v32  ;;  %v4099_v61 = vld [vmem:[#allocation8 + $0x100] sm:$0xff] }
 0x229   :  { %5821 = vset.pattern.permute.xlu1 %v6397_v47  ;;  %v7818_v36 = vpop.permute.xlu1 %3132  ;;  %4150 = vmatprep.subr.mxu0 %v4086_v55  ;;  %v4083_v1 = vld [vmem:[#allocation8 + $0x80] sm:$0xff] }
 0x22a   :  { %10555 = vst [vmem:[#allocation68_spill] sm:$0xff] %v7818_v36  ;;  %5638 = vmatprep.mubr.f32.mxu0 %v7813_v45  ;;  %3752 = vperm.xlu1 %5821, %v6240_v39   ;;  %v296_v39 = vadd.f32 %v10558_v62, %v7689_v60  ;;  %v6242_v62 = vld [vmem:[%s10327_s1 + $0x18] sm:$0xff] }
 0x22b   :  { %1106 = vmatmul.mubr.f32.gmra.mxu1 %v7813_v45  ;;  %v5563_v37 = vpop.f32.mrf.mxu1  ;;  %5639 = vmatmul.mubr.f32.gmra.mxu0 %v7816_v52 }
 0x22c   :  { %1111 = vmatprep.mubr.f32.mxu1 %v10504_v19  ;;  %4151 = vmatpush1.msra.mxu0 %v4085_v5  ;;  %v793_v55 = vadd.f32 %v5563_v37, %v7694_v17  ;;  %v4080_v5 = vld [vmem:[#allocation8 + $0x68] sm:$0xff]  ;;  %v10559_v37 = vld [vmem:[#allocation78_spill] sm:$0xff] }
 0x22d   :  { %v787_v47 = vpop.f32.mrf.mxu1  ;;  %5684 = vmatprep.subr.mxu1 %v4099_v61  ;;  %v7830_v32 = vpop.permute.xlu1 %3140  ;;  %4152 = vmatprep.subr.mxu0 %v4083_v1  ;;  %v302_v53 = vadd.f32 %v10559_v37, %v7689_v60 }
 0x22e   :  { %10557 = vst [vmem:[#allocation189_spill] sm:$0xff] %v7830_v32  ;;  %v788_v22 = vadd.f32 %v7694_v17, %v787_v47  ;;  %3756 = vperm.xlu1 %5821, %v6241_v9   ;;  %5685 = vmatpush3.msra.mxu1 %v4099_v61  ;;  %v7841_v1 = vpop.permute.xlu0 %3136  ;;  %v4079_v61 = vld [vmem:[#allocation8 + $0x60] sm:$0xff] }
 0x22f   :  { %1112 = vmatmul.mubr.f32.gmra.mxu1 %v7816_v52  ;;  %10560 = vst [vmem:[#allocation74_spill] sm:$0xff] %v7841_v1  ;;  %3760 = vperm.xlu0 %5820, %v6242_v62   ;;  %v7849_v9 = vadd.f32 %v793_v55, %v302_v53  ;;  %v4077_v62 = vld [vmem:[#allocation8 + $0x50] sm:$0xff]  ;;  %v4074_v55 = vld [vmem:[#allocation8 + $0x38] sm:$0xff] }
 0x230   :  { %v7846_v47 = vadd.f32 %v788_v22, %v296_v39  ;;  %1117 = vmatprep.mubr.f32.mxu1 %v10504_v19  ;;  %4153 = vmatpush1.msra.mxu0 %v4082_v3  ;;  %v4076_v22 = vld [vmem:[#allocation8 + $0x48] sm:$0xff] }
 0x231   :  { %4154 = vmatprep.subr.mxu0 %v4080_v5  ;;  %5686 = vmatprep.subr.mxu1 %v4096_v11  ;;  %v7852_v37 = vpop.permute.xlu1 %3148 }
 0x232   :  { %5641 = vmatprep.mubr.f32.mxu0 %v7846_v47  ;;  %10561 = vst [vmem:[#allocation78_spill] sm:$0xff] %v7852_v37  ;;  %3764 = vperm.xlu1 %5821, %v6243_v8   ;;  %v7860_v3 = vpop.permute.xlu0 %3144  ;;  %v6244_v8 = vld [vmem:[%s10327_s1 + $0x28] sm:$0xff] }
 0x233   :  { %1118 = vmatmul.mubr.f32.gmra.mxu1 %v7846_v47  ;;  %5642 = vmatmul.mubr.f32.gmra.mxu0 %v7849_v9  ;;  %10562 = vst [vmem:[#allocation190_spill] sm:$0xff] %v7860_v3  ;;  %v4072_v3 = vld [vmem:[#allocation8 + $0x28] sm:$0xff] }
 0x234   :  { %v5566_v53 = vpop.f32.mrf.mxu1  ;;  %1123 = vmatprep.mubr.f32.mxu1 %v10504_v19  ;;  %4155 = vmatpush1.msra.mxu0 %v4079_v61 }
 0x235   :  { %5687 = vmatpush3.msra.mxu1 %v4096_v11  ;;  %4156 = vmatprep.subr.mxu0 %v4077_v62  ;;  %v803_v39 = vadd.f32 %v5566_v53, %v7694_v17  ;;  %v4071_v11 = vld [vmem:[#allocation8 + $0x20] sm:$0xff]  ;;  %v10564_v62 = vld [vmem:[#allocation85_spill] sm:$0xff]  ;;  %v7873_v37 = vpop.permute.xlu1 %3156 }
 0x236   :  { %v797_v5 = vpop.f32.mrf.mxu1  ;;  %3768 = vperm.xlu0 %5820, %v6244_v8   ;;  %4157 = vmatpush1.msra.mxu0 %v4076_v22  ;;  %v314_v53 = vadd.f32 %v10564_v62, %v7689_v60  ;;  %10565 = vst [vmem:[#allocation81_spill] sm:$0xff] %v7873_v37  ;;  %v6245_v22 = vld [vmem:[%s10327_s1 + $0x30] sm:$0xff]  ;;  %v4068_v62 = vld [vmem:[#allocation8 + $0x8] sm:$0xff] }
 0x237   :  { %v798_v61 = vadd.f32 %v7694_v17, %v797_v5  ;;  %1124 = vmatmul.mubr.f32.gmra.mxu1 %v7849_v9  ;;  %4158 = vmatprep.subr.mxu0 %v4074_v55  ;;  %v4070_v55 = vld [vmem:[#allocation8 + $0x18] sm:$0xff]  ;;  %v7884_v5 = vpop.permute.xlu0 %3152 }
 0x238   :  { %1129 = vmatprep.mubr.f32.mxu1 %v10504_v19  ;;  %3772 = vperm.xlu1 %5821, %v6245_v22   ;;  %v7880_v42 = vadd.f32 %v803_v39, %v314_v53  ;;  %10566 = vst [vmem:[#allocation85_spill] sm:$0xff] %v7884_v5  ;;  %v6247_v53 = vld [vmem:[%s10327_s1 + $0x40] sm:$0xff]  ;;  %v10568_v22 = vld [vmem:[#allocation88_spill] sm:$0xff] }
 0x239   :  { %v7878_v8 = vadd.f32 %v798_v61, %v308_v34  ;;  %4159 = vmatpush1.msra.mxu0 %v4073_v31  ;;  %5688 = vmatprep.subr.mxu1 %v4093_v7  ;;  %v4067_v34 = vld [vmem:[#allocation8] sm:$0xff]  ;;  %v6246_v31 = vld [vmem:[%s10327_s1 + $0x38] sm:$0xff]  ;;  %v320_v5 = vadd.f32 %v10568_v22, %v7689_v60 }
 0x23a   :  { %5689 = vmatpush3.msra.mxu1 %v4093_v7  ;;  %4160 = vmatprep.subr.mxu0 %v4071_v11  ;;  %v4090_v7 = vld [vmem:[#allocation8 + $0xb8] sm:$0xff]  ;;  %v7892_v11 = vpop.permute.xlu1 %3164 }
 0x23b   :  { %1130 = vmatmul.mubr.f32.gmra.mxu1 %v7878_v8  ;;  %5644 = vmatprep.mubr.f32.mxu0 %v7878_v8  ;;  %10567 = vst [vmem:[#allocation191_spill] sm:$0xff] %v7892_v11  ;;  %v7906_v11 = vpop.permute.xlu0 %3160 }
 0x23c   :  { %v5569_v37 = vpop.f32.mrf.mxu1  ;;  %5645 = vmatmul.mubr.f32.gmra.mxu0 %v7880_v42  ;;  %1135 = vmatprep.mubr.f32.mxu1 %v10504_v19  ;;  %10570 = vst [vmem:[#allocation88_spill] sm:$0xff] %v7906_v11  ;;  %v4081_v11 = vld [vmem:[#allocation8 + $0x70] sm:$0xff] }
 0x23d   :  { %3776 = vperm.xlu0 %5820, %v6246_v31   ;;  %4161 = vmatpush1.msra.mxu0 %v4070_v55  ;;  %v813_v39 = vadd.f32 %v5569_v37, %v7694_v17  ;;  %v4087_v55 = vld [vmem:[#allocation8 + $0xa0] sm:$0xff]  ;;  %v10569_v37 = vld [vmem:[#allocation92_spill] sm:$0xff] }
 0x23e   :  { %v807_v61 = vpop.f32.mrf.mxu1  ;;  %4162 = vmatprep.subr.mxu0 %v4068_v62  ;;  %3780 = vperm.xlu1 %5821, %v6247_v53   ;;  %v326_v31 = vadd.f32 %v10569_v37, %v7689_v60  ;;  %v6248_v53 = vld [vmem:[%s10327_s1 + $0x48] sm:$0xff]  ;;  %v6250_v37 = vld [vmem:[%s10327_s1 + $0x58] sm:$0xff] }
 0x23f   :  { %v808_v13 = vadd.f32 %v7694_v17, %v807_v61  ;;  %1136 = vmatmul.mubr.f32.gmra.mxu1 %v7880_v42  ;;  %4163 = vmatpush1.msra.mxu0 %v4067_v34  ;;  %v6249_v34 = vld [vmem:[%s10327_s1 + $0x50] sm:$0xff]  ;;  %v7935_v30 = vpop.permute.xlu0 %3168 }
 0x240   :  { %1141 = vmatprep.mubr.f32.mxu1 %v10504_v19  ;;  %5690 = vmatprep.subr.mxu1 %v4090_v7  ;;  %v7911_v61 = vadd.f32 %v813_v39, %v326_v31  ;;  %v10572_v31 = vld [vmem:[#allocation95_spill] sm:$0xff] }
 0x241   :  { %v7904_v62 = vadd.f32 %v808_v13, %v320_v5  ;;  %5691 = vmatpush3.msra.mxu1 %v4090_v7  ;;  %3784 = vperm.xlu0 %5820, %v6248_v53   ;;  %v4084_v5 = vld [vmem:[#allocation8 + $0x88] sm:$0xff]  ;;  %v7920_v7 = vpop.permute.xlu1 %3172  ;;  %v332_v53 = vadd.f32 %v10572_v31, %v7689_v60  ;;  %10574 = vst [vmem:[#allocation95_spill] sm:$0xff] %v7935_v30  ;;  %v4078_v31 = vld [vmem:[#allocation8 + $0x58] sm:$0xff] }
 0x242   :  { %3788 = vperm.xlu1 %5821, %v6249_v34   ;;  %5692 = vmatprep.subr.mxu1 %v4087_v55  ;;  %10571 = vst [vmem:[#allocation92_spill] sm:$0xff] %v7920_v7  ;;  %v6251_v7 = vld [vmem:[%s10327_s1 + $0x60] sm:$0xff] }
 0x243   :  { %1142 = vmatmul.mubr.f32.gmra.mxu1 %v7904_v62  ;;  %5647 = vmatprep.mubr.f32.mxu0 %v7904_v62  ;;  %v5572_v13 = vpop.f32.mrf.mxu1 }
 0x244   :  { %5648 = vmatmul.mubr.f32.gmra.mxu0 %v7911_v61  ;;  %1147 = vmatprep.mubr.f32.mxu1 %v10504_v19  ;;  %v823_v39 = vadd.f32 %v5572_v13, %v7694_v17  ;;  %v10573_v13 = vld [vmem:[#allocation99_spill] sm:$0xff] }
 0x245   :  { %v817_v22 = vpop.f32.mrf.mxu1  ;;  %5693 = vmatpush3.msra.mxu1 %v4087_v55  ;;  %3792 = vperm.xlu0 %5820, %v6250_v37   ;;  %v338_v55 = vadd.f32 %v10573_v13, %v7689_v60  ;;  %v7946_v13 = vpop.permute.xlu1 %3180 }
 0x246   :  { %v818_v34 = vadd.f32 %v7694_v17, %v817_v22  ;;  %5694 = vmatprep.subr.mxu1 %v4084_v5  ;;  %3796 = vperm.xlu1 %5821, %v6251_v7   ;;  %v6252_v7 = vld [vmem:[%s10327_s1 + $0x68] sm:$0xff]  ;;  %10575 = vst [vmem:[#allocation99_spill] sm:$0xff] %v7946_v13 }
 0x247   :  { %1148 = vmatmul.mubr.f32.gmra.mxu1 %v7911_v61  ;;  %v7940_v22 = vadd.f32 %v823_v39, %v338_v55  ;;  %v7952_v55 = vpop.permute.xlu0 %3176 }
 0x248   :  { %v7937_v37 = vadd.f32 %v818_v34, %v332_v53  ;;  %1153 = vmatprep.mubr.f32.mxu1 %v10504_v19  ;;  %5695 = vmatpush3.msra.mxu1 %v4084_v5  ;;  %v4075_v5 = vld [vmem:[#allocation8 + $0x40] sm:$0xff]  ;;  %10576 = vst [vmem:[#allocation192_spill] sm:$0xff] %v7952_v55  ;;  %v10578_v55 = vld [vmem:[#allocation106_spill] sm:$0xff] }
 0x249   :  { %5696 = vmatprep.subr.mxu1 %v4081_v11  ;;  %3800 = vperm.xlu0 %5820, %v6252_v7   ;;  %v6253_v7 = vld [vmem:[%s10327_s1 + $0x70] sm:$0xff] }
 0x24a   :  { %5650 = vmatprep.mubr.f32.mxu0 %v7937_v37  ;;  %5697 = vmatpush3.msra.mxu1 %v4081_v11  ;;  %v10577_v11 = vld [vmem:[#allocation102_spill] sm:$0xff] }
 0x24b   :  { %1154 = vmatmul.mubr.f32.gmra.mxu1 %v7937_v37  ;;  %v5575_v53 = vpop.f32.mrf.mxu1  ;;  %5651 = vmatmul.mubr.f32.gmra.mxu0 %v7940_v22  ;;  %v344_v13 = vadd.f32 %v10577_v11, %v7689_v60  ;;  %v4069_v11 = vld [vmem:[#allocation8 + $0x10] sm:$0xff] }
 0x24c   :  { %1159 = vmatprep.mubr.f32.mxu1 %v10504_v19  ;;  %5698 = vmatprep.subr.mxu1 %v4078_v31  ;;  %v833_v39 = vadd.f32 %v5575_v53, %v7694_v17  ;;  %v6254_v53 = vld [vmem:[%s10327_s1 + $0x78] sm:$0xff] }
 0x24d   :  { %v827_v34 = vpop.f32.mrf.mxu1  ;;  %5699 = vmatpush3.msra.mxu1 %v4078_v31  ;;  %3804 = vperm.xlu1 %5821, %v6253_v7   ;;  %v350_v31 = vadd.f32 %v10578_v55, %v7689_v60  ;;  %v7969_v7 = vpop.permute.xlu1 %3188 }
 0x24e   :  { %v828_v30 = vadd.f32 %v7694_v17, %v827_v34  ;;  %5700 = vmatprep.subr.mxu1 %v4075_v5  ;;  %3808 = vperm.xlu0 %5820, %v6254_v53   ;;  %10579 = vst [vmem:[#allocation102_spill] sm:$0xff] %v7969_v7  ;;  %v6255_v53 = vld [vmem:[%s10327_s1 + $0x80] sm:$0xff] }
 0x24f   :  { %1160 = vmatmul.mubr.f32.gmra.mxu1 %v7940_v22  ;;  %v7971_v34 = vadd.f32 %v833_v39, %v350_v31  ;;  %v6257_v31 = vld [vmem:[%s10327_s1 + $0x90] sm:$0xff] }
 0x250   :  { %v7966_v29 = vadd.f32 %v828_v30, %v344_v13  ;;  %1165 = vmatprep.mubr.f32.mxu1 %v10504_v19  ;;  %5701 = vmatpush3.msra.mxu1 %v4075_v5  ;;  %v7979_v30 = vpop.permute.xlu0 %3184  ;;  %v6256_v5 = vld [vmem:[%s10327_s1 + $0x88] sm:$0xff] }
 0x251   :  { %5702 = vmatprep.subr.mxu1 %v4072_v3  ;;  %3812 = vperm.xlu1 %5821, %v6255_v53   ;;  %10580 = vst [vmem:[#allocation106_spill] sm:$0xff] %v7979_v30  ;;  %v10582_v53 = vld [vmem:[#allocation109_spill] sm:$0xff] }
 0x252   :  { %5653 = vmatprep.mubr.f32.mxu0 %v7966_v29  ;;  %5703 = vmatpush3.msra.mxu1 %v4072_v3  ;;  %v7986_v3 = vpop.permute.xlu1 %3196  ;;  %v356_v7 = vadd.f32 %v10582_v53, %v7689_v60  ;;  %v10583_v30 = vld [vmem:[#allocation113_spill] sm:$0xff]  ;;  %v373_v53 = vpop.f32.mrf.mxu0 }
 0x253   :  { %1166 = vmatmul.mubr.f32.gmra.mxu1 %v7966_v29  ;;  %5654 = vmatmul.mubr.f32.gmra.mxu0 %v7971_v34  ;;  %10581 = vst [vmem:[#allocation193_spill] sm:$0xff] %v7986_v3  ;;  %v374_v54 = vadd.f32 %v373_v53, %v7689_v60  ;;  %v6263_v53 = vld [vmem:[%s10327_s1 + $0xc0] sm:$0xff] }
 0x254   :  { %v5578_v13 = vpop.f32.mrf.mxu1  ;;  %1171 = vmatprep.mubr.f32.mxu1 %v10504_v19  ;;  %5704 = vmatprep.subr.mxu1 %v4069_v11  ;;  %v8000_v3 = vpop.permute.xlu0 %3192 }
 0x255   :  { %5705 = vmatpush3.msra.mxu1 %v4069_v11  ;;  %3816 = vperm.xlu0 %5820, %v6256_v5   ;;  %v843_v39 = vadd.f32 %v5578_v13, %v7694_v17  ;;  %v362_v5 = vadd.f32 %v10583_v30, %v7689_v60  ;;  %10584 = vst [vmem:[#allocation109_spill] sm:$0xff] %v8000_v3 }
 0x256   :  { %v837_v55 = vpop.f32.mrf.mxu1  ;;  %3820 = vperm.xlu1 %5821, %v6257_v31   ;;  %v6258_v31 = vld [vmem:[%s10327_s1 + $0x98] sm:$0xff]  ;;  %v8014_v30 = vpop.permute.xlu1 %3204 }
 0x257   :  { %v838_v11 = vadd.f32 %v7694_v17, %v837_v55  ;;  %1172 = vmatmul.mubr.f32.gmra.mxu1 %v7971_v34  ;;  %v8005_v40 = vadd.f32 %v843_v39, %v362_v5  ;;  %v6259_v55 = vld [vmem:[%s10327_s1 + $0xa0] sm:$0xff]  ;;  %10585 = vst [vmem:[#allocation113_spill] sm:$0xff] %v8014_v30  ;;  %v6260_v39 = vld [vmem:[%s10327_s1 + $0xa8] sm:$0xff] }
 0x258   :  { %1177 = vmatprep.mubr.f32.mxu1 %v10504_v19  ;;  %v8027_v30 = vpop.permute.xlu0 %3200 }
 0x259   :  { %v7998_v13 = vadd.f32 %v838_v11, %v356_v7  ;;  %3824 = vperm.xlu0 %5820, %v6258_v31   ;;  %v6261_v31 = vld [vmem:[%s10327_s1 + $0xb0] sm:$0xff] }
 0x25a   :  { %3828 = vperm.xlu1 %5821, %v6259_v55   ;;  %v10586_v55 = vld [vmem:[#allocation116_spill] sm:$0xff]  ;;  %v8039_v1 = vpop.permute.xlu1 %3212 }
 0x25b   :  { %1178 = vmatmul.mubr.f32.gmra.mxu1 %v7998_v13  ;;  %5656 = vmatprep.mubr.f32.mxu0 %v7998_v13  ;;  %v368_v3 = vadd.f32 %v10586_v55, %v7689_v60  ;;  %10587 = vst [vmem:[#allocation116_spill] sm:$0xff] %v8027_v30  ;;  %10588 = vst [vmem:[#allocation194_spill] sm:$0xff] %v8039_v1 }
 0x25c   :  { %v5581_v7 = vpop.f32.mrf.mxu1  ;;  %5657 = vmatmul.mubr.f32.gmra.mxu0 %v8005_v40  ;;  %1183 = vmatprep.mubr.f32.mxu1 %v10504_v19 }
 0x25d   :  { %3832 = vperm.xlu0 %5820, %v6260_v39   ;;  %v853_v11 = vadd.f32 %v5581_v7, %v7694_v17 }
 0x25e   :  { %v847_v5 = vpop.f32.mrf.mxu1  ;;  %3836 = vperm.xlu1 %5821, %v6261_v31   ;;  %v6262_v31 = vld [vmem:[%s10327_s1 + $0xb8] sm:$0xff] }
 0x25f   :  { %v848_v32 = vadd.f32 %v7694_v17, %v847_v5  ;;  %1184 = vmatmul.mubr.f32.gmra.mxu1 %v8005_v40  ;;  %v8036_v10 = vadd.f32 %v853_v11, %v374_v54  ;;  %v10590_v54 = vld [vmem:[#allocation84_spill] sm:$0xff] }
 0x260   :  { %v5584_v39 = vpop.f32.mrf.mxu1  ;;  %1189 = vmatprep.mubr.f32.mxu1 %v10504_v19  ;;  %v386_v11 = vadd.f32 %v10590_v54, %v7689_v60  ;;  %v6265_v54 = vld [vmem:[%s10327_s1 + $0xd0] sm:$0xff] }
 0x261   :  { %v8031_v7 = vadd.f32 %v848_v32, %v368_v3  ;;  %3840 = vperm.xlu0 %5820, %v6262_v31   ;;  %v863_v5 = vadd.f32 %v5584_v39, %v7694_v17  ;;  %v10589_v32 = vld [vmem:[#allocation77_spill] sm:$0xff] }
 0x262   :  { %v857_v55 = vpop.f32.mrf.mxu1  ;;  %3844 = vperm.xlu1 %5821, %v6263_v53   ;;  %v380_v3 = vadd.f32 %v10589_v32, %v7689_v60  ;;  %v8055_v53 = vpop.permute.xlu0 %3208 }
 0x263   :  { %v858_v30 = vadd.f32 %v7694_v17, %v857_v55  ;;  %1190 = vmatmul.mubr.f32.gmra.mxu1 %v8031_v7  ;;  %5659 = vmatprep.mubr.f32.mxu0 %v8031_v7  ;;  %10591 = vst [vmem:[#allocation77_spill] sm:$0xff] %v8055_v53  ;;  %v6264_v55 = vld [vmem:[%s10327_s1 + $0xc8] sm:$0xff]  ;;  %v8060_v32 = vadd.f32 %v863_v5, %v386_v11  ;;  %v10593_v5 = vld [vmem:[#allocation98_spill] sm:$0xff] }
 0x264   :  { %v5587_v39 = vpop.f32.mrf.mxu1  ;;  %5660 = vmatmul.mubr.f32.gmra.mxu0 %v8036_v10  ;;  %1195 = vmatprep.mubr.f32.mxu1 %v10504_v19  ;;  %v398_v11 = vadd.f32 %v10593_v5, %v7689_v60  ;;  %v6267_v5 = vld [vmem:[%s10327_s1 + $0xe0] sm:$0xff] }
 0x265   :  { %v8053_v31 = vadd.f32 %v858_v30, %v380_v3  ;;  %3848 = vperm.xlu0 %5820, %v6264_v55   ;;  %v873_v1 = vadd.f32 %v5587_v39, %v7694_v17  ;;  %v10592_v30 = vld [vmem:[#allocation91_spill] sm:$0xff]  ;;  %v8075_v39 = vpop.permute.xlu1 %3220 }
 0x266   :  { %v867_v24 = vpop.f32.mrf.mxu1  ;;  %3852 = vperm.xlu1 %5821, %v6265_v54   ;;  %v392_v3 = vadd.f32 %v10592_v30, %v7689_v60  ;;  %10594 = vst [vmem:[#allocation84_spill] sm:$0xff] %v8075_v39  ;;  %v404_v39 = vadd.f32 %v10595_v2, %v7689_v60  ;;  %v6268_v2 = vld [vmem:[%s10327_s1 + $0xe8] sm:$0xff] }
 0x267   :  { %v868_v53 = vadd.f32 %v7694_v17, %v867_v24  ;;  %1196 = vmatmul.mubr.f32.gmra.mxu1 %v8036_v10  ;;  %5662 = vmatprep.mubr.f32.mxu0 %v8053_v31  ;;  %v6266_v24 = vld [vmem:[%s10327_s1 + $0xd8] sm:$0xff]  ;;  %v8082_v30 = vadd.f32 %v873_v1, %v398_v11  ;;  %v10597_v1 = vld [vmem:[#allocation112_spill] sm:$0xff] }
 0x268   :  { %v5590_v55 = vpop.f32.mrf.mxu1  ;;  %5663 = vmatmul.mubr.f32.gmra.mxu0 %v8060_v32  ;;  %1201 = vmatprep.mubr.f32.mxu1 %v10504_v19  ;;  %v410_v11 = vadd.f32 %v10597_v1, %v7689_v60  ;;  %v6269_v1 = vld [vmem:[%s10327_s1 + $0xf0] sm:$0xff] }
 0x269   :  { %v8077_v54 = vadd.f32 %v868_v53, %v392_v3  ;;  %3856 = vperm.xlu0 %5820, %v6266_v24   ;;  %v883_v25 = vadd.f32 %v5590_v55, %v7694_v17  ;;  %v8093_v3 = vpop.permute.xlu0 %3216  ;;  %v8107_v21 = vpop.permute.xlu1 %3228 }
 0x26a   :  { %v877_v36 = vpop.f32.mrf.mxu1  ;;  %3860 = vperm.xlu1 %5821, %v6267_v5   ;;  %10596 = vst [vmem:[#allocation91_spill] sm:$0xff] %v8093_v3  ;;  %10598 = vst [vmem:[#allocation98_spill] sm:$0xff] %v8107_v21 }
 0x26b   :  { %v878_v53 = vadd.f32 %v7694_v17, %v877_v36  ;;  %1202 = vmatmul.mubr.f32.gmra.mxu1 %v8053_v31  ;;  %5665 = vmatprep.mubr.f32.mxu0 %v8077_v54  ;;  %v8104_v36 = vadd.f32 %v883_v25, %v410_v11  ;;  %v422_v25 = vadd.f32 %v7683_v14, %v7689_v60 }
 0x26c   :  { %v5593_v55 = vpop.f32.mrf.mxu1  ;;  %5666 = vmatmul.mubr.f32.gmra.mxu0 %v8082_v30  ;;  %1207 = vmatprep.mubr.f32.mxu1 %v10504_v19 }
 0x26d   :  { %v8099_v24 = vadd.f32 %v878_v53, %v404_v39  ;;  %3864 = vperm.xlu0 %5820, %v6268_v2   ;;  %v893_v5 = vadd.f32 %v5593_v55, %v7694_v17  ;;  %v10599_v39 = vld [vmem:[#allocation119_spill] sm:$0xff]  ;;  %v8123_v55 = vpop.permute.xlu0 %3224  ;;  %v6270_v2 = vld [vmem:[%s10327_s1 + $0xf8] sm:$0xff]  ;;  %v8134_v14 = vpop.permute.xlu1 %3428 }
 0x26e   :  { %v887_v3 = vpop.f32.mrf.mxu1  ;;  %3868 = vperm.xlu1 %5821, %v6269_v1   ;;  %v416_v53 = vadd.f32 %v10599_v39, %v7689_v60  ;;  %10601 = vst [vmem:[#allocation112_spill] sm:$0xff] %v8123_v55 }
 0x26f   :  { %v888_v23 = vadd.f32 %v7694_v17, %v887_v3  ;;  %1208 = vmatmul.mubr.f32.gmra.mxu1 %v8060_v32  ;;  %5668 = vmatprep.mubr.f32.mxu0 %v8099_v24  ;;  %v8128_v17 = vadd.f32 %v893_v5, %v422_v25 }
 0x270   :  { %5669 = vmatmul.mubr.f32.gmra.mxu0 %v8104_v36  ;;  %1213 = vmatprep.mubr.f32.mxu1 %v10504_v19 }
 0x271   :  { %v8121_v11 = vadd.f32 %v888_v23, %v416_v53  ;;  %3872 = vperm.xlu0 %5820, %v6270_v2   ;;  %10602 = vst [vmem:[#allocation119_spill] sm:$0xff] %v8128_v17  ;;  %v8138_v60 = vpop.permute.xlu0 %3232  ;;  %v8143_v23 = vpop.permute.xlu1 %3436 }
 0x272   :  { %10603 = vst [vmem:[#allocation195_spill] sm:$0xff] %v8138_v60 }
 0x273   :  { %10600 = vst [vmem:[#allocation105_spill] sm:$0xff] %v8121_v11  ;;  %1214 = vmatmul.mubr.f32.gmra.mxu1 %v8077_v54  ;;  %5671 = vmatprep.mubr.f32.mxu0 %v8121_v11 }
 0x274   :  { %5672 = vmatmul.mubr.f32.gmra.mxu0 %v8128_v17  ;;  %1219 = vmatprep.mubr.f32.mxu1 %v10504_v19 }
 0x275   :  { %4196 = vmatprep.mubr.f32.mxu0 %v10504_v19  ;;  %v8149_v3 = vpop.permute.xlu0 %3432  ;;  %v8154_v5 = vpop.permute.xlu1 %3440 }
 0x277   :  { %1220 = vmatmul.mubr.f32.gmra.mxu1 %v8082_v30 }
 0x278   :  { %4197 = vmatmul.mubr.f32.vlgmr.msra.gmra.mxu0 %v7710_v50  ;;  %1225 = vmatprep.mubr.f32.mxu1 %v10504_v19 }
 0x279   :  { %4202 = vmatprep.mubr.f32.mxu0 %v10504_v19  ;;  %v8158_v1 = vpop.permute.xlu0 %3444  ;;  %v8163_v39 = vpop.permute.xlu1 %3448 }
 0x27a   :  { %10604 = vst [vmem:[#allocation196_spill] sm:$0xff] %v8163_v39 }
 0x27b   :  { %1226 = vmatmul.mubr.f32.gmra.mxu1 %v8099_v24 }
 0x27c   :  { %4203 = vmatmul.mubr.f32.gmra.mxu0 %v7714_v28  ;;  %1231 = vmatprep.mubr.f32.mxu1 %v10504_v19 }
 0x27d   :  { %4208 = vmatprep.mubr.f32.mxu0 %v10504_v19  ;;  %v8169_v53 = vpop.permute.xlu0 %3452  ;;  %v8174_v25 = vpop.permute.xlu1 %3456 }
 0x27e   :  { %10605 = vst [vmem:[#allocation197_spill] sm:$0xff] %v8169_v53  ;;  %10606 = vst [vmem:[#allocation198_spill] sm:$0xff] %v8174_v25  ;;  %v10636_v53 = vld [vmem:[#allocation19_spill] sm:$0xff] }
 0x27f   :  { %1232 = vmatmul.mubr.f32.gmra.mxu1 %v8104_v36 }
 0x280   :  { %4209 = vmatmul.mubr.f32.gmra.mxu0 %v7734_v48  ;;  %1237 = vmatprep.mubr.f32.mxu1 %v10504_v19 }
 0x281   :  { %4214 = vmatprep.mubr.f32.mxu0 %v10504_v19  ;;  %v8178_v2 = vpop.permute.xlu0 %3460 }
 0x282   :  { %10607 = vst [vmem:[#allocation199_spill] sm:$0xff] %v8178_v2 }
 0x283   :  { %1238 = vmatmul.mubr.f32.gmra.mxu1 %v8121_v11 }
 0x284   :  { %4215 = vmatmul.mubr.f32.gmra.mxu0 %v7738_v56  ;;  %1243 = vmatprep.mubr.f32.mxu1 %v10504_v19 }
 0x285   :  { %4220 = vmatprep.mubr.f32.mxu0 %v10504_v19 }
 0x287   :  { %1244 = vmatmul.mubr.f32.gmra.mxu1 %v8128_v17 }
 0x288   :  { %4221 = vmatmul.mubr.f32.gmra.mxu0 %v7763_v46  ;;  %5706 = vmatprep.mubr.f32.mxu1 %v7710_v50  ;;  %v8183_v50 = vpop.permute.xlu1 %3464 }
 0x289   :  { %4226 = vmatprep.mubr.f32.mxu0 %v10504_v19  ;;  %10608 = vst [vmem:[#allocation200_spill] sm:$0xff] %v8183_v50  ;;  %v10634_v50 = vld [vmem:[#allocation87_spill] sm:$0xff] }
 0x28b   :  { %5707 = vmatmul.mubr.f32.vlgmr.msra.gmra.mxu1 %v7714_v28  ;;  %v8189_v28 = vpop.permute.xlu0 %3468 }
 0x28c   :  { %4227 = vmatmul.mubr.f32.gmra.mxu0 %v7766_v35  ;;  %5709 = vmatprep.mubr.f32.mxu1 %v7734_v48  ;;  %10609 = vst [vmem:[#allocation201_spill] sm:$0xff] %v8189_v28  ;;  %v8194_v48 = vpop.permute.xlu1 %3472 }
 0x28d   :  { %4232 = vmatprep.mubr.f32.mxu0 %v10504_v19  ;;  %10610 = vst [vmem:[#allocation202_spill] sm:$0xff] %v8194_v48 }
 0x28f   :  { %5710 = vmatmul.mubr.f32.gmra.mxu1 %v7738_v56  ;;  %v8198_v56 = vpop.permute.xlu0 %3476 }
 0x290   :  { %4233 = vmatmul.mubr.f32.gmra.mxu0 %v7787_v49  ;;  %5712 = vmatprep.mubr.f32.mxu1 %v7763_v46  ;;  %10611 = vst [vmem:[#allocation203_spill] sm:$0xff] %v8198_v56  ;;  %v8203_v46 = vpop.permute.xlu1 %3480 }
 0x291   :  { %4238 = vmatprep.mubr.f32.mxu0 %v10504_v19  ;;  %10612 = vst [vmem:[#allocation204_spill] sm:$0xff] %v8203_v46  ;;  %v8317_v46 = vsub.s32 6, %v6908_v0 }
 0x293   :  { %5713 = vmatmul.mubr.f32.gmra.mxu1 %v7766_v35  ;;  %v8209_v35 = vpop.permute.xlu0 %3484 }
 0x294   :  { %4239 = vmatmul.mubr.f32.gmra.mxu0 %v7792_v58  ;;  %5715 = vmatprep.mubr.f32.mxu1 %v7787_v49  ;;  %10613 = vst [vmem:[#allocation205_spill] sm:$0xff] %v8209_v35  ;;  %v8214_v49 = vpop.permute.xlu1 %3488 }
 0x295   :  { %4244 = vmatprep.mubr.f32.mxu0 %v10504_v19  ;;  %10614 = vst [vmem:[#allocation206_spill] sm:$0xff] %v8214_v49 }
 0x297   :  { %5716 = vmatmul.mubr.f32.gmra.mxu1 %v7792_v58  ;;  %v8218_v58 = vpop.permute.xlu0 %3492 }
 0x298   :  { %4245 = vmatmul.mubr.f32.gmra.mxu0 %v7813_v45  ;;  %5718 = vmatprep.mubr.f32.mxu1 %v7813_v45  ;;  %10615 = vst [vmem:[#allocation207_spill] sm:$0xff] %v8218_v58  ;;  %v8223_v45 = vpop.permute.xlu1 %3496  ;;  %v10631_v58 = vld [vmem:[#allocation50_spill] sm:$0xff] }
 0x299   :  { %4250 = vmatprep.mubr.f32.mxu0 %v10504_v19  ;;  %10616 = vst [vmem:[#allocation208_spill] sm:$0xff] %v8223_v45 }
 0x29b   :  { %5719 = vmatmul.mubr.f32.gmra.mxu1 %v7816_v52 }
 0x29c   :  { %4251 = vmatmul.mubr.f32.gmra.mxu0 %v7816_v52  ;;  %5721 = vmatprep.mubr.f32.mxu1 %v7846_v47  ;;  %v8229_v52 = vpop.permute.xlu0 %3500 }
 0x29d   :  { %4256 = vmatprep.mubr.f32.mxu0 %v10504_v19  ;;  %10617 = vst [vmem:[#allocation209_spill] sm:$0xff] %v8229_v52  ;;  %v10630_v52 = vld [vmem:[#allocation17_spill] sm:$0xff] }
 0x29f   :  { %5722 = vmatmul.mubr.f32.gmra.mxu1 %v7849_v9 }
 0x2a0   :  { %4257 = vmatmul.mubr.f32.gmra.mxu0 %v7846_v47  ;;  %5724 = vmatprep.mubr.f32.mxu1 %v7878_v8  ;;  %v8234_v47 = vpop.permute.xlu1 %3504 }
 0x2a1   :  { %4262 = vmatprep.mubr.f32.mxu0 %v10504_v19  ;;  %10618 = vst [vmem:[#allocation210_spill] sm:$0xff] %v8234_v47 }
 0x2a3   :  { %5725 = vmatmul.mubr.f32.gmra.mxu1 %v7880_v42 }
 0x2a4   :  { %4263 = vmatmul.mubr.f32.gmra.mxu0 %v7849_v9  ;;  %5727 = vmatprep.mubr.f32.mxu1 %v7904_v62  ;;  %v8238_v9 = vpop.permute.xlu0 %3508 }
 0x2a5   :  { %4268 = vmatprep.mubr.f32.mxu0 %v10504_v19  ;;  %10619 = vst [vmem:[#allocation211_spill] sm:$0xff] %v8238_v9  ;;  %v8307_v9 = vsub.s32 5, %v6908_v0 }
 0x2a7   :  { %5728 = vmatmul.mubr.f32.gmra.mxu1 %v7911_v61 }
 0x2a8   :  { %4269 = vmatmul.mubr.f32.gmra.mxu0 %v7878_v8  ;;  %5730 = vmatprep.mubr.f32.mxu1 %v7937_v37  ;;  %v8243_v8 = vpop.permute.xlu1 %3512 }
 0x2a9   :  { %4274 = vmatprep.mubr.f32.mxu0 %v10504_v19  ;;  %10620 = vst [vmem:[#allocation212_spill] sm:$0xff] %v8243_v8 }
 0x2ab   :  { %5731 = vmatmul.mubr.f32.gmra.mxu1 %v7940_v22 }
 0x2ac   :  { %4275 = vmatmul.mubr.f32.gmra.mxu0 %v7880_v42  ;;  %5733 = vmatprep.mubr.f32.mxu1 %v7966_v29  ;;  %v8248_v42 = vpop.permute.xlu0 %3516 }
 0x2ad   :  { %4280 = vmatprep.mubr.f32.mxu0 %v10504_v19  ;;  %10621 = vst [vmem:[#allocation213_spill] sm:$0xff] %v8248_v42 }
 0x2af   :  { %5734 = vmatmul.mubr.f32.gmra.mxu1 %v7971_v34 }
 0x2b0   :  { %4281 = vmatmul.mubr.f32.gmra.mxu0 %v7904_v62  ;;  %5736 = vmatprep.mubr.f32.mxu1 %v7998_v13  ;;  %v8254_v62 = vpop.permute.xlu1 %3520 }
 0x2b1   :  { %4286 = vmatprep.mubr.f32.mxu0 %v10504_v19  ;;  %10622 = vst [vmem:[#allocation214_spill] sm:$0xff] %v8254_v62  ;;  %v8291_v62 = vsub.s32 2, %v6908_v0 }
 0x2b3   :  { %5737 = vmatmul.mubr.f32.gmra.mxu1 %v8005_v40 }
 0x2b4   :  { %4287 = vmatmul.mubr.f32.gmra.mxu0 %v7911_v61  ;;  %5739 = vmatprep.mubr.f32.mxu1 %v8031_v7  ;;  %v8257_v61 = vpop.permute.xlu0 %3524 }
 0x2b5   :  { %4292 = vmatprep.mubr.f32.mxu0 %v10504_v19  ;;  %10623 = vst [vmem:[#allocation215_spill] sm:$0xff] %v8257_v61 }
 0x2b7   :  { %5740 = vmatmul.mubr.f32.gmra.mxu1 %v8036_v10 }
 0x2b8   :  { %4293 = vmatmul.mubr.f32.gmra.mxu0 %v7937_v37  ;;  %5742 = vmatprep.mubr.f32.mxu1 %v8053_v31  ;;  %v8263_v37 = vpop.permute.xlu1 %3528  ;;  %v8271_v60 = vpop.permute.xlu0 %3532 }
 0x2b9   :  { %4298 = vmatprep.mubr.f32.mxu0 %v10504_v19  ;;  %10624 = vst [vmem:[#allocation216_spill] sm:$0xff] %v8263_v37  ;;  %10625 = vst [vmem:[#allocation217_spill] sm:$0xff] %v8271_v60  ;;  %v8283_v37 = vsub.s32 3, %v6908_v0 }
 0x2bb   :  { %5743 = vmatmul.mubr.f32.gmra.mxu1 %v8060_v32 }
 0x2bc   :  { %4299 = vmatmul.mubr.f32.gmra.mxu0 %v7940_v22  ;;  %5745 = vmatprep.mubr.f32.mxu1 %v8077_v54  ;;  %v976_v22 = vld [vmem:[%s10333_s7] sm:$0x7]  ;;  %v8278_v55 = vpop.permute.xlu1 %3536  ;;  %v8285_v61 = vpop.permute.xlu0 %3540 }
 0x2bd   :  { %4304 = vmatprep.mubr.f32.mxu0 %v10504_v19  ;;  %10628 = vst [vmem:[#allocation218_spill] sm:$0xff] %v8285_v61  ;;  %v8314_v35 = vrot.slane %v976_v22, %v8291_v62 }
 0x2bf   :  { %5746 = vmatmul.mubr.f32.gmra.mxu1 %v8082_v30  ;;  %10632 = vst [vmem:[#allocation17_spill] sm:$0xff] %v8314_v35 }
 0x2c0   :  { %4305 = vmatmul.mubr.f32.gmra.mxu0 %v7966_v29  ;;  %5748 = vmatprep.mubr.f32.mxu1 %v8099_v24  ;;  %v10626_v29 = vld [vmem:[#allocation47_spill] sm:$0xff]  ;;  %v8322_v56 = vpop.permute.xlu0 %3548 }
 0x2c1   :  { %4310 = vmatprep.mubr.f32.mxu0 %v10504_v19  ;;  %v8276_v21 = vrot.slane %v976_v22, %v10626_v29  ;;  %10627 = vst [vmem:[#allocation47_spill] sm:$0xff] %v8278_v55  ;;  %v8295_v55 = vsub.s32 4, %v6908_v0  ;;  %10633 = vst [vmem:[#allocation50_spill] sm:$0xff] %v8322_v56 }
 0x2c3   :  { %5749 = vmatmul.mubr.f32.gmra.mxu1 %v8104_v36 }
 0x2c4   :  { %4311 = vmatmul.mubr.f32.gmra.mxu0 %v7971_v34  ;;  %5751 = vmatprep.mubr.f32.mxu1 %v8121_v11 }
 0x2c5   :  { %4316 = vmatprep.mubr.f32.mxu0 %v10504_v19 }
 0x2c7   :  { %5752 = vmatmul.mubr.f32.gmra.mxu1 %v8128_v17 }
 0x2c8   :  { %4317 = vmatmul.mubr.f32.gmra.mxu0 %v7998_v13 }
 0x2c9   :  { %4322 = vmatprep.mubr.f32.mxu0 %v10504_v19 }
 0x2ca   :  { %v1059_v34 = vpop.f32.mrf.mxu1 }
 0x2cb   :  { %v8288_v60 = vadd.f32 %v1059_v34, %v8276_v21  ;;  %v8304_v34 = vpop.permute.xlu1 %3544  ;;  %v5628_v48 = vpop.f32.mrf.mxu0 }
 0x2cc   :  { %4323 = vmatmul.mubr.f32.gmra.mxu0 %v8005_v40  ;;  %v1061_v42 = vpop.f32.mrf.mxu1  ;;  %10629 = vst [vmem:[#allocation219_spill] sm:$0xff] %v8304_v34  ;;  %v8347_v56 = vadd.f32 %v5628_v48, %v8314_v35 }
 0x2cd   :  { %v1670_v13 = vrot.slane %v8288_v60, %v10626_v29  ;;  %v1958_v8 = vrot.slane %v8288_v60, %v7675_v63  ;;  %v2278_v61 = vrot.slane %v8288_v60, %v8291_v62  ;;  %4328 = vmatprep.mubr.f32.mxu0 %v10504_v19  ;;  %v2598_v40 = vrot.slane %v8288_v60, %v8283_v37 }
 0x2ce   :  { %v1065_v47 = vpop.f32.mrf.mxu1 }
 0x2cf   :  { %v1795_v45 = vmul.f32 %v1670_v13, %v10630_v52  ;;  %v2083_v49 = vmul.f32 %v1958_v8, %v10631_v58  ;;  %v2403_v2 = vmul.f32 %v2278_v61, %v10634_v50  ;;  %v2918_v52 = vrot.slane %v8288_v60, %v8295_v55 }
 0x2d0   :  { %4329 = vmatmul.mubr.f32.gmra.mxu0 %v8031_v7  ;;  %v8320_v34 = vpop.f32.mrf.mxu1  ;;  %v8328_v58 = vadd.f32 %v1065_v47, %v8276_v21  ;;  %v8332_v8 = vrot.slane %v976_v22, %v7675_v63  ;;  %v8335_v7 = vsub.s32 7, %v6908_v0  ;;  %v2723_v13 = vmul.f32 %v2598_v40, %v7497_v33  ;;  %v8349_v0 = vpop.permute.xlu1 %3552 }
 0x2d1   :  { %v2115_v28 = vadd.f32 %v2083_v49, %v1795_v45  ;;  %4334 = vmatprep.mubr.f32.mxu0 %v10504_v19  ;;  %v3238_v49 = vrot.slane %v8288_v60, %v8307_v9  ;;  %10635 = vst [vmem:[#allocation87_spill] sm:$0xff] %v8349_v0  ;;  %v3558_v33 = vrot.slane %v8288_v60, %v8317_v46 }
 0x2d2   :  { %v1071_v50 = vpop.f32.mrf.mxu1  ;;  %v1674_v61 = vrot.slane %v8328_v58, %v10626_v29  ;;  %v1962_v47 = vrot.slane %v8328_v58, %v7675_v63  ;;  %v2282_v22 = vrot.slane %v8328_v58, %v8291_v62  ;;  %v3043_v25 = vmul.f32 %v2918_v52, %v7616_v27  ;;  %v10638_v52 = vld [vmem:[#allocation93_spill] sm:$0xff] }
 0x2d3   :  { %v2435_v45 = vadd.f32 %v2403_v2, %v2115_v28  ;;  %v2602_v2 = vrot.slane %v8328_v58, %v8283_v37  ;;  %v1062_v0 = vadd.f32 %v1061_v42, %v8332_v8  ;;  %v3363_v20 = vmul.f32 %v3238_v49, %v7776_v26 }
 0x2d4   :  { %4335 = vmatmul.mubr.f32.gmra.mxu0 %v8036_v10  ;;  %v8356_v28 = vpop.f32.mrf.mxu1  ;;  %v1796_v39 = vmul.f32 %v1674_v61, %v10636_v53  ;;  %v2084_v48 = vmul.f32 %v1962_v47, %v10637_v6  ;;  %v3878_v17 = vrot.slane %v8288_v60, %v8335_v7  ;;  %v2922_v10 = vrot.slane %v8328_v58, %v8295_v55 }
 0x2d5   :  { %v2755_v40 = vadd.f32 %v2723_v13, %v2435_v45  ;;  %4340 = vmatprep.mubr.f32.mxu0 %v10504_v19  ;;  %v3749_v13 = vpop.permute.xlu0 %3748  ;;  %v2404_v53 = vmul.f32 %v2282_v22, %v10638_v52  ;;  %v8370_v6 = vadd.f32 %v1071_v50, %v8276_v21  ;;  %v3683_v61 = vmul.f32 %v3558_v33, %v8134_v14  ;;  %v3753_v22 = vpop.permute.xlu1 %3752 }
 0x2d6   :  { %v1077_v41 = vpop.f32.mrf.mxu1  ;;  %v2116_v27 = vadd.f32 %v2084_v48, %v1796_v39  ;;  %v2724_v42 = vmul.f32 %v2602_v2, %v7499_v44  ;;  %v3242_v26 = vrot.slane %v8328_v58, %v8307_v9  ;;  %v3562_v60 = vrot.slane %v8328_v58, %v8317_v46  ;;  %v1316_v39 = vpop.f32.mrf.mxu0  ;;  %v10640_v48 = vld [vmem:[#allocation15_spill] sm:$0xff] }
 0x2d7   :  { %v3075_v45 = vadd.f32 %v3043_v25, %v2755_v40  ;;  %v3882_v50 = vrot.slane %v8328_v58, %v8335_v7  ;;  %v1678_v14 = vrot.slane %v8370_v6, %v10626_v29  ;;  %v4003_v44 = vmul.f32 %v3878_v17, %v3749_v13  ;;  %v10641_v13 = vld [vmem:[#allocation49_spill] sm:$0xff] }
 0x2d8   :  { %4341 = vmatmul.mubr.f32.gmra.mxu0 %v8053_v31  ;;  %v8379_v49 = vpop.f32.mrf.mxu1  ;;  %v2436_v47 = vadd.f32 %v2404_v53, %v2116_v27  ;;  %v1966_v33 = vrot.slane %v8370_v6, %v7675_v63  ;;  %v2286_v31 = vrot.slane %v8370_v6, %v8291_v62  ;;  %v8391_v2 = vadd.f32 %v1077_v41, %v8276_v21 }
 0x2d9   :  { %10639 = vst [vmem:[#allocation19_spill] sm:$0xff] %v8379_v49  ;;  %v3395_v25 = vadd.f32 %v3363_v20, %v3075_v45  ;;  %4346 = vmatprep.mubr.f32.mxu0 %v10504_v19  ;;  %v3044_v58 = vmul.f32 %v2922_v10, %v7618_v12  ;;  %v1797_v45 = vmul.f32 %v1678_v14, %v10640_v48 }
 0x2da   :  { %v2756_v40 = vadd.f32 %v2724_v42, %v2436_v47  ;;  %v1317_v52 = vadd.f32 %v1316_v39, %v8314_v35  ;;  %v3364_v17 = vmul.f32 %v3242_v26, %v7774_v43  ;;  %v2085_v53 = vmul.f32 %v1966_v33, %v10641_v13  ;;  %v10642_v39 = vld [vmem:[#allocation90_spill] sm:$0xff]  ;;  %v10643_v33 = vld [vmem:[#allocation16_spill] sm:$0xff] }
 0x2db   :  { %v3715_v20 = vadd.f32 %v3683_v61, %v3395_v25  ;;  %v1083_v27 = vpop.f32.mrf.mxu1  ;;  %v2606_v49 = vrot.slane %v8370_v6, %v8283_v37  ;;  %v3684_v61 = vmul.f32 %v3562_v60, %v8149_v3  ;;  %v4004_v42 = vmul.f32 %v3882_v50, %v3753_v22  ;;  %v5631_v50 = vpop.f32.mrf.mxu0 }
 0x2dc   :  { %4347 = vmatmul.mubr.f32.gmra.mxu0 %v8060_v32  ;;  %v3076_v11 = vadd.f32 %v3044_v58, %v2756_v40  ;;  %v2117_v10 = vadd.f32 %v2085_v53, %v1797_v45  ;;  %v2405_v25 = vmul.f32 %v2286_v31, %v10642_v39  ;;  %v2926_v43 = vrot.slane %v8370_v6, %v8295_v55  ;;  %v10644_v58 = vld [vmem:[#allocation53_spill] sm:$0xff]  ;;  %v10645_v53 = vld [vmem:[#allocation94_spill] sm:$0xff] }
 0x2dd   :  { %v4035_v41 = vadd.f32 %v4003_v44, %v3715_v20  ;;  %v8402_v12 = vpop.f32.mrf.mxu1  ;;  %4352 = vmatprep.mubr.f32.mxu0 %v10504_v19  ;;  %v1682_v26 = vrot.slane %v8391_v2, %v10626_v29  ;;  %v3246_v14 = vrot.slane %v8370_v6, %v8307_v9  ;;  %v1970_v3 = vrot.slane %v8391_v2, %v7675_v63  ;;  %v1326_v39 = vpop.f32.mrf.mxu0 }
 0x2de   :  { %v3396_v32 = vadd.f32 %v3364_v17, %v3076_v11  ;;  %v2437_v44 = vadd.f32 %v2405_v25, %v2117_v10  ;;  %v2725_v22 = vmul.f32 %v2606_v49, %v7512_v59  ;;  %v2290_v20 = vrot.slane %v8391_v2, %v8291_v62 }
 0x2df   :  { %v4902_v47 = vmul.f32 %v4035_v41, %v1317_v52  ;;  %v8414_v60 = vpop.f32.mrf.mxu1  ;;  %v1798_v31 = vmul.f32 %v1682_v26, %v10643_v33  ;;  %v2086_v48 = vmul.f32 %v1970_v3, %v10644_v58  ;;  %v2610_v45 = vrot.slane %v8391_v2, %v8283_v37 }
 0x2e0   :  { %4353 = vmatmul.mubr.f32.gmra.mxu0 %v8077_v54  ;;  %v3716_v40 = vadd.f32 %v3684_v61, %v3396_v32  ;;  %v1068_v59 = vadd.f32 %v8320_v34, %v8332_v8  ;;  %v2757_v49 = vadd.f32 %v2725_v22, %v2437_v44  ;;  %v3045_v17 = vmul.f32 %v2926_v43, %v7622_v18  ;;  %v3757_v43 = vpop.permute.xlu1 %3756 }
 0x2e1   :  { %v8421_v11 = vadd.f32 %v4902_v47, %v1062_v0  ;;  %v8426_v52 = vpop.f32.mrf.mxu1  ;;  %4358 = vmatprep.mubr.f32.mxu0 %v10504_v19  ;;  %v3566_v54 = vrot.slane %v8370_v6, %v8317_v46  ;;  %v2118_v13 = vadd.f32 %v2086_v48, %v1798_v31  ;;  %v2406_v41 = vmul.f32 %v2290_v20, %v10645_v53 }
 0x2e2   :  { %v4036_v0 = vadd.f32 %v4004_v42, %v3716_v40  ;;  %v2930_v61 = vrot.slane %v8391_v2, %v8295_v55  ;;  %v3077_v25 = vadd.f32 %v3045_v17, %v2757_v49  ;;  %v3365_v26 = vmul.f32 %v3246_v14, %v7790_v38  ;;  %v3761_v49 = vpop.permute.xlu0 %3760  ;;  %v10647_v17 = vld [vmem:[#allocation21_spill] sm:$0xff] }
 0x2e3   :  { %v8437_v10 = vpop.f32.mrf.mxu1  ;;  %v3886_v34 = vrot.slane %v8370_v6, %v8335_v7  ;;  %v3570_v18 = vrot.slane %v8391_v2, %v8317_v46  ;;  %v2438_v47 = vadd.f32 %v2406_v41, %v2118_v13  ;;  %v2726_v32 = vmul.f32 %v2610_v45, %v7509_v4 }
 0x2e4   :  { %4359 = vmatmul.mubr.f32.gmra.mxu0 %v8082_v30  ;;  %v4903_v42 = vmul.f32 %v4036_v0, %v8347_v56  ;;  %v3250_v3 = vrot.slane %v8391_v2, %v8307_v9  ;;  %v3397_v38 = vadd.f32 %v3365_v26, %v3077_v25  ;;  %v3685_v6 = vmul.f32 %v3566_v54, %v8143_v23  ;;  %v10648_v0 = vld [vmem:[#allocation51_spill] sm:$0xff]  ;;  %v10649_v25 = vld [vmem:[#allocation96_spill] sm:$0xff] }
 0x2e5   :  { %v8449_v44 = vpop.f32.mrf.mxu1  ;;  %4364 = vmatprep.mubr.f32.mxu0 %v10504_v19  ;;  %v3686_v14 = vmul.f32 %v3570_v18, %v8154_v5  ;;  %v8455_v30 = vadd.f32 %v1083_v27, %v8276_v21  ;;  %v1327_v22 = vadd.f32 %v1326_v39, %v8314_v35  ;;  %v2758_v4 = vadd.f32 %v2726_v32, %v2438_v47  ;;  %v8500_v32 = vpop.f32.mrf.mxu0 }
 0x2e6   :  { %v8457_v56 = vadd.f32 %v4903_v42, %v1068_v59  ;;  %v3046_v33 = vmul.f32 %v2930_v61, %v7628_v16  ;;  %v3717_v20 = vadd.f32 %v3685_v6, %v3397_v38  ;;  %v4005_v40 = vmul.f32 %v3886_v34, %v3757_v43 }
 0x2e7   :  { %v8461_v31 = vpop.f32.mrf.mxu1  ;;  %v1686_v58 = vrot.slane %v8455_v30, %v10626_v29  ;;  %v1974_v23 = vrot.slane %v8455_v30, %v7675_v63  ;;  %v3366_v27 = vmul.f32 %v3250_v3, %v7796_v51  ;;  %v3890_v48 = vrot.slane %v8391_v2, %v8335_v7 }
 0x2e8   :  { %10646 = vst [vmem:[#allocation46_spill] sm:$0xff] %v8457_v56  ;;  %4365 = vmatmul.mubr.f32.gmra.mxu0 %v8099_v24  ;;  %v3078_v5 = vadd.f32 %v3046_v33, %v2758_v4  ;;  %v2294_v16 = vrot.slane %v8455_v30, %v8291_v62  ;;  %v4037_v59 = vadd.f32 %v4005_v40, %v3717_v20  ;;  %v5338_v6 = vmul.f32 -1.442695, %v8421_v11 }
 0x2e9   :  { %v8473_v45 = vpop.f32.mrf.mxu1  ;;  %4370 = vmatprep.mubr.f32.mxu0 %v10504_v19  ;;  %v1799_v54 = vmul.f32 %v1686_v58, %v10647_v17  ;;  %v2087_v13 = vmul.f32 %v1974_v23, %v10648_v0  ;;  %v2614_v24 = vrot.slane %v8455_v30, %v8283_v37  ;;  %v1332_v51 = vadd.f32 %v5631_v50, %v8314_v35  ;;  %v10651_v58 = vld [vmem:[#allocation105_spill] sm:$0xff]  ;;  %v10652_v23 = vld [vmem:[#allocation19_spill] sm:$0xff]  ;;  %v10654_v17 = vld [vmem:[#allocation188_spill] sm:$0xff] }
 0x2ea   :  { %v1074_v2 = vadd.f32 %v8356_v28, %v8332_v8  ;;  %v3398_v53 = vadd.f32 %v3366_v27, %v3078_v5  ;;  %v4904_v61 = vmul.f32 %v4037_v59, %v1327_v22  ;;  %v2407_v26 = vmul.f32 %v2294_v16, %v10649_v25  ;;  %v10655_v0 = vld [vmem:[#allocation55_spill] sm:$0xff] }
 0x2eb   :  { %v8483_v41 = vpop.f32.mrf.mxu1  ;;  %v2119_v39 = vadd.f32 %v2087_v13, %v1799_v54  ;;  %v2934_v34 = vrot.slane %v8455_v30, %v8295_v55  ;;  %v4006_v42 = vmul.f32 %v3890_v48, %v3761_v49  ;;  %v3574_v50 = vrot.slane %v8455_v30, %v8317_v46  ;;  %v10653_v48 = vld [vmem:[#allocation18_spill] sm:$0xff] }
 0x2ec   :  { %4371 = vmatmul.mubr.f32.gmra.mxu0 %v8104_v36  ;;  %v3718_v18 = vadd.f32 %v3686_v14, %v3398_v53  ;;  %v8493_v28 = vadd.f32 %v8414_v60, %v8276_v21  ;;  %v8498_v47 = vadd.f32 %v4904_v61, %v1074_v2  ;;  %v2727_v36 = vmul.f32 %v2614_v24, %v7525_v15  ;;  %v3765_v2 = vpop.permute.xlu1 %3764 }
 0x2ed   :  { %v8495_v43 = vpop.f32.mrf.mxu1  ;;  %4376 = vmatprep.mubr.f32.mxu0 %v10504_v19  ;;  %v2439_v3 = vadd.f32 %v2407_v26, %v2119_v39  ;;  %v3254_v38 = vrot.slane %v8455_v30, %v8307_v9  ;;  %v3687_v60 = vmul.f32 %v3574_v50, %v8158_v1  ;;  %v3047_v20 = vmul.f32 %v2934_v34, %v7624_v57  ;;  %v1336_v57 = vpop.f32.mrf.mxu0  ;;  %v10657_v39 = vld [vmem:[#allocation97_spill] sm:$0xff]  ;;  %v10658_v34 = vld [vmem:[#allocation119_spill] sm:$0xff] }
 0x2ee   :  { %10650 = vst [vmem:[#allocation93_spill] sm:$0xff] %v8498_v47  ;;  %v4038_v14 = vadd.f32 %v4006_v42, %v3718_v18  ;;  %v1690_v22 = vrot.slane %v8493_v28, %v10626_v29  ;;  %v1978_v40 = vrot.slane %v8493_v28, %v7675_v63  ;;  %v2298_v15 = vrot.slane %v8493_v28, %v8291_v62 }
 0x2ef   :  { %v8509_v4 = vpop.f32.mrf.mxu1  ;;  %v2759_v33 = vadd.f32 %v2727_v36, %v2439_v3  ;;  %v1080_v5 = vadd.f32 %v10652_v23, %v8332_v8  ;;  %v3894_v27 = vrot.slane %v8455_v30, %v8335_v7  ;;  %v3367_v54 = vmul.f32 %v3254_v38, %v10654_v17  ;;  %v8536_v26 = vpop.f32.mrf.mxu0 }
 0x2f0   :  { %4377 = vmatmul.mubr.f32.gmra.mxu0 %v10651_v58  ;;  %v4905_v1 = vmul.f32 %v4038_v14, %v1332_v51  ;;  %v1800_v16 = vmul.f32 %v1690_v22, %v10653_v48  ;;  %v2088_v13 = vmul.f32 %v1978_v40, %v10655_v0  ;;  %v2618_v24 = vrot.slane %v8493_v28, %v8283_v37  ;;  %v10660_v40 = vld [vmem:[#allocation162_spill] sm:$0xff]  ;;  %v10662_v0 = vld [vmem:[#allocation23_spill] sm:$0xff] }
 0x2f1   :  { %v8522_v59 = vpop.f32.mrf.mxu1  ;;  %4382 = vmatprep.mubr.f32.mxu0 %v10504_v19  ;;  %v3079_v49 = vadd.f32 %v3047_v20, %v2759_v33  ;;  %5950 = vpow2.f32 %v5338_v6  ;;  %v2938_v30 = vrot.slane %v8493_v28, %v8295_v55  ;;  %v2408_v25 = vmul.f32 %v2298_v15, %v10657_v39  ;;  %v10659_v6 = vld [vmem:[#allocation134_spill] sm:$0xff] }
 0x2f2   :  { %v8529_v51 = vadd.f32 %v4905_v1, %v1080_v5  ;;  %v2120_v19 = vadd.f32 %v2088_v13, %v1800_v16  ;;  %v3258_v18 = vrot.slane %v8493_v28, %v8307_v9  ;;  %v8543_v42 = vadd.f32 %v8437_v10, %v8276_v21  ;;  %v8557_v5 = vpop.f32.mrf.mxu0 }
 0x2f3   :  { %v8533_v53 = vpop.f32.mrf.mxu1  ;;  %v3399_v61 = vadd.f32 %v3367_v54, %v3079_v49  ;;  %v4007_v36 = vmul.f32 %v3894_v27, %v3765_v2  ;;  %v2728_v14 = vmul.f32 %v2618_v24, %v10659_v6  ;;  %v5339_v22 = vmul.f32 -1.442695, %v8457_v56  ;;  %v10661_v27 = vld [vmem:[#allocation71_spill] sm:$0xff] }
 0x2f4   :  { %10656 = vst [vmem:[#allocation15_spill] sm:$0xff] %v8529_v51  ;;  %4383 = vmatmul.mubr.f32.gmra.mxu0 %v10658_v34  ;;  %v2440_v38 = vadd.f32 %v2408_v25, %v2120_v19  ;;  %v1086_v33 = vadd.f32 %v8402_v12, %v8332_v8  ;;  %v1337_v20 = vadd.f32 %v1336_v57, %v8314_v35  ;;  %v8573_v2 = vpop.f32.mrf.mxu0  ;;  %v10665_v34 = vld [vmem:[#allocation196_spill] sm:$0xff] }
 0x2f5   :  { %v8545_v50 = vpop.f32.mrf.mxu1  ;;  %v3719_v3 = vadd.f32 %v3687_v60, %v3399_v61  ;;  %v3048_v15 = vmul.f32 %v2938_v30, %v10660_v40  ;;  %v3578_v60 = vrot.slane %v8493_v28, %v8317_v46  ;;  %v1694_v1 = vrot.slane %v8543_v42, %v10626_v29  ;;  %v3769_v30 = vpop.permute.xlu0 %3768  ;;  %v10663_v61 = vld [vmem:[#allocation52_spill] sm:$0xff] }
 0x2f6   :  { %v2760_v23 = vadd.f32 %v2728_v14, %v2440_v38  ;;  %v3368_v48 = vmul.f32 %v3258_v18, %v10661_v27  ;;  %v3898_v12 = vrot.slane %v8493_v28, %v8335_v7  ;;  %v1982_v16 = vrot.slane %v8543_v42, %v7675_v63  ;;  %v10666_v38 = vld [vmem:[#allocation100_spill] sm:$0xff]  ;;  %v10668_v27 = vld [vmem:[#allocation197_spill] sm:$0xff] }
 0x2f7   :  { %v8553_v58 = vpop.f32.mrf.mxu1  ;;  %v4039_v10 = vadd.f32 %v4007_v36, %v3719_v3  ;;  %v2302_v57 = vrot.slane %v8543_v42, %v8291_v62  ;;  %v1801_v13 = vmul.f32 %v1694_v1, %v10662_v0  ;;  %v2622_v24 = vrot.slane %v8543_v42, %v8283_v37 }
 0x2f8   :  { %v3080_v54 = vadd.f32 %v3048_v15, %v2760_v23  ;;  %5952 = vpow2.f32 %v5339_v22  ;;  %v5340_v28 = vmul.f32 -1.442695, %v8498_v47  ;;  %v2089_v19 = vmul.f32 %v1982_v16, %v10663_v61  ;;  %v10667_v15 = vld [vmem:[#allocation136_spill] sm:$0xff]  ;;  %v8592_v23 = vpop.f32.mrf.mxu0 }
 0x2f9   :  { %v8568_v49 = vpop.f32.mrf.mxu1  ;;  %v4906_v17 = vmul.f32 %v4039_v10, %v1337_v20  ;;  %v3688_v18 = vmul.f32 %v3578_v60, %v10665_v34  ;;  %v2942_v3 = vrot.slane %v8543_v42, %v8295_v55  ;;  %v2409_v6 = vmul.f32 %v2302_v57, %v10666_v38  ;;  %v10671_v34 = vld [vmem:[#allocation57_spill] sm:$0xff] }
 0x2fa   :  { %v3400_v25 = vadd.f32 %v3368_v48, %v3080_v54  ;;  %v2121_v36 = vadd.f32 %v2089_v19, %v1801_v13  ;;  %v3582_v14 = vrot.slane %v8543_v42, %v8317_v46  ;;  %v8587_v22 = vadd.f32 %v8461_v31, %v8276_v21  ;;  %v8603_v54 = vpop.f32.mrf.mxu0  ;;  %v10669_v13 = vld [vmem:[#allocation161_spill] sm:$0xff] }
 0x2fb   :  { %v8577_v39 = vadd.f32 %v4906_v17, %v1086_v33  ;;  %v8589_v20 = vpop.f32.mrf.mxu1  ;;  %v4008_v40 = vmul.f32 %v3898_v12, %v3769_v30  ;;  %v2729_v10 = vmul.f32 %v2622_v24, %v10667_v15  ;;  %v3262_v1 = vrot.slane %v8543_v42, %v8307_v9  ;;  %v10670_v30 = vld [vmem:[#allocation20_spill] sm:$0xff]  ;;  %v3773_v15 = vpop.permute.xlu1 %3772 }
 0x2fc   :  { %v3720_v33 = vadd.f32 %v3688_v18, %v3400_v25  ;;  %v2441_v60 = vadd.f32 %v2409_v6, %v2121_v36  ;;  %v3689_v48 = vmul.f32 %v3582_v14, %v10668_v27  ;;  %v1698_v16 = vrot.slane %v8587_v22, %v10626_v29  ;;  %v10672_v14 = vld [vmem:[#allocation68_spill] sm:$0xff] }
 0x2fd   :  { %10664 = vst [vmem:[#allocation49_spill] sm:$0xff] %v8577_v39  ;;  %5954 = vpow2.f32 %v5340_v28  ;;  %v1342_v31 = vadd.f32 %v8500_v32, %v8314_v35  ;;  %v1986_v12 = vrot.slane %v8587_v22, %v7675_v63  ;;  %v3049_v24 = vmul.f32 %v2942_v3, %v10669_v13  ;;  %v8609_v25 = vpop.f32.mrf.mxu1 }
 0x2fe   :  { %v5951_v57 = vpop.eup %5950  ;;  %v4040_v17 = vadd.f32 %v4008_v40, %v3720_v33  ;;  %v2761_v0 = vadd.f32 %v2729_v10, %v2441_v60  ;;  %v1802_v61 = vmul.f32 %v1698_v16, %v10670_v30  ;;  %v2306_v19 = vrot.slane %v8587_v22, %v8291_v62  ;;  %v10674_v60 = vld [vmem:[#allocation101_spill] sm:$0xff]  ;;  %v8624_v16 = vpop.f32.mrf.mxu0 }
 0x2ff   :  { %v1092_v28 = vadd.f32 %v8426_v52, %v8332_v8  ;;  %v2090_v18 = vmul.f32 %v1986_v12, %v10671_v34  ;;  %v2626_v36 = vrot.slane %v8587_v22, %v8283_v37  ;;  %v5062_v38 = vadd.f32 1.0, %v5951_v57  ;;  %v10675_v12 = vld [vmem:[#allocation135_spill] sm:$0xff] }
 0x300   :  { %v4907_v32 = vmul.f32 %v4040_v17, %v1342_v31  ;;  %v3081_v6 = vadd.f32 %v3049_v24, %v2761_v0  ;;  %v3369_v3 = vmul.f32 %v3262_v1, %v10672_v14  ;;  %v3902_v33 = vrot.slane %v8543_v42, %v8335_v7  ;;  %v8626_v17 = vpop.f32.mrf.mxu1  ;;  %v8635_v13 = vpop.f32.mrf.mxu0 }
 0x301   :  { %v2122_v10 = vadd.f32 %v2090_v18, %v1802_v61  ;;  %v2410_v27 = vmul.f32 %v2306_v19, %v10674_v60  ;;  %v2946_v52 = vrot.slane %v8587_v22, %v8295_v55  ;;  %v2730_v1 = vmul.f32 %v2626_v36, %v10675_v12 }
 0x302   :  { %v8619_v40 = vadd.f32 %v4907_v32, %v1092_v28  ;;  %v3401_v31 = vadd.f32 %v3369_v3, %v3081_v6  ;;  %v3266_v42 = vrot.slane %v8587_v22, %v8307_v9  ;;  %v8633_v0 = vadd.f32 %v8483_v41, %v8276_v21  ;;  %v10676_v32 = vld [vmem:[#allocation164_spill] sm:$0xff]  ;;  %v10677_v3 = vld [vmem:[#allocation74_spill] sm:$0xff]  ;;  %v8654_v60 = vpop.f32.mrf.mxu0 }
 0x303   :  { %v2442_v57 = vadd.f32 %v2410_v27, %v2122_v10  ;;  %5956 = vrcp.f32 %v5062_v38  ;;  %v4009_v30 = vmul.f32 %v3902_v33, %v3773_v15  ;;  %v5341_v19 = vmul.f32 -1.442695, %v8529_v51  ;;  %v8647_v38 = vpop.f32.mrf.mxu1  ;;  %v10689_v51 = vld [vmem:[#allocation104_spill] sm:$0xff] }
 0x304   :  { %10673 = vst [vmem:[#allocation90_spill] sm:$0xff] %v8619_v40  ;;  %v3721_v24 = vadd.f32 %v3689_v48, %v3401_v31  ;;  %v3050_v34 = vmul.f32 %v2946_v52, %v10676_v32  ;;  %v3586_v18 = vrot.slane %v8587_v22, %v8317_v46  ;;  %v1347_v36 = vadd.f32 %v8557_v5, %v8314_v35  ;;  %v3777_v52 = vpop.permute.xlu0 %3776  ;;  %v10678_v31 = vld [vmem:[#allocation25_spill] sm:$0xff]  ;;  %v8663_v32 = vpop.f32.mrf.mxu0 }
 0x305   :  { %v5953_v61 = vpop.eup %5952  ;;  %v2762_v28 = vadd.f32 %v2730_v1, %v2442_v57  ;;  %v3906_v41 = vrot.slane %v8587_v22, %v8335_v7  ;;  %v1702_v48 = vrot.slane %v8633_v0, %v10626_v29  ;;  %v3370_v33 = vmul.f32 %v3266_v42, %v10677_v3  ;;  %v10679_v1 = vld [vmem:[#allocation198_spill] sm:$0xff]  ;;  %v10682_v3 = vld [vmem:[#allocation103_spill] sm:$0xff] }
 0x306   :  { %v4041_v6 = vadd.f32 %v4009_v30, %v3721_v24  ;;  %v1990_v15 = vrot.slane %v8633_v0, %v7675_v63  ;;  %v2310_v10 = vrot.slane %v8633_v0, %v8291_v62  ;;  %v5063_v5 = vadd.f32 1.0, %v5953_v61  ;;  %v10680_v42 = vld [vmem:[#allocation54_spill] sm:$0xff] }
 0x307   :  { %v3082_v14 = vadd.f32 %v3050_v34, %v2762_v28  ;;  %v1098_v22 = vadd.f32 %v8449_v44, %v8332_v8  ;;  %v1803_v57 = vmul.f32 %v1702_v48, %v10678_v31  ;;  %v3690_v24 = vmul.f32 %v3586_v18, %v10679_v1  ;;  %v10683_v31 = vld [vmem:[#allocation138_spill] sm:$0xff] }
 0x308   :  { %v4908_v27 = vmul.f32 %v4041_v6, %v1347_v36  ;;  %v2091_v30 = vmul.f32 %v1990_v15, %v10680_v42  ;;  %v2630_v28 = vrot.slane %v8633_v0, %v8283_v37  ;;  %5958 = vpow2.f32 %v5341_v19  ;;  %v8671_v6 = vpop.f32.mrf.mxu1 }
 0x309   :  { %v3402_v12 = vadd.f32 %v3370_v33, %v3082_v14  ;;  %v1352_v61 = vadd.f32 %v8536_v26, %v8314_v35  ;;  %v2950_v36 = vrot.slane %v8633_v0, %v8295_v55  ;;  %v4010_v48 = vmul.f32 %v3906_v41, %v3777_v52  ;;  %v8684_v52 = vpop.f32.mrf.mxu0 }
 0x30a   :  { %v5955_v34 = vpop.eup %5954  ;;  %v8667_v44 = vadd.f32 %v4908_v27, %v1098_v22  ;;  %v2123_v14 = vadd.f32 %v2091_v30, %v1803_v57  ;;  %v2411_v33 = vmul.f32 %v2310_v10, %v10682_v3  ;;  %5960 = vrcp.f32 %v5063_v5  ;;  %v10684_v5 = vld [vmem:[#allocation163_spill] sm:$0xff] }
 0x30b   :  { %v3722_v18 = vadd.f32 %v3690_v24, %v3402_v12  ;;  %v5342_v15 = vmul.f32 -1.442695, %v8577_v39  ;;  %v1104_v19 = vadd.f32 %v8473_v45, %v8332_v8  ;;  %v8679_v26 = vadd.f32 %v8509_v4, %v8276_v21  ;;  %v8691_v4 = vpop.f32.mrf.mxu1  ;;  %v3781_v39 = vpop.permute.xlu1 %3780 }
 0x30c   :  { %10681 = vst [vmem:[#allocation16_spill] sm:$0xff] %v8667_v44  ;;  %v2443_v27 = vadd.f32 %v2411_v33, %v2123_v14  ;;  %v2731_v1 = vmul.f32 %v2630_v28, %v10683_v31  ;;  %v3270_v41 = vrot.slane %v8633_v0, %v8307_v9  ;;  %v5064_v10 = vadd.f32 1.0, %v5955_v34  ;;  %v10686_v14 = vld [vmem:[#allocation59_spill] sm:$0xff] }
 0x30d   :  { %v4042_v22 = vadd.f32 %v4010_v48, %v3722_v18  ;;  %v3051_v57 = vmul.f32 %v2950_v36, %v10684_v5  ;;  %v1706_v12 = vrot.slane %v8679_v26, %v10626_v29  ;;  %v1994_v45 = vrot.slane %v8679_v26, %v7675_v63  ;;  %v8697_v18 = vpop.f32.mrf.mxu0  ;;  %v10685_v36 = vld [vmem:[#allocation22_spill] sm:$0xff] }
 0x30e   :  { %v2763_v42 = vadd.f32 %v2731_v1, %v2443_v27  ;;  %v3590_v30 = vrot.slane %v8633_v0, %v8317_v46  ;;  %v2314_v28 = vrot.slane %v8679_v26, %v8291_v62  ;;  %v5343_v34 = vmul.f32 -1.442695, %v8619_v40  ;;  %v10688_v27 = vld [vmem:[#allocation189_spill] sm:$0xff] }
 0x30f   :  { %v4909_v24 = vmul.f32 %v4042_v22, %v1352_v61  ;;  %v1804_v48 = vmul.f32 %v1706_v12, %v10685_v36  ;;  %v2092_v3 = vmul.f32 %v1994_v45, %v10686_v14  ;;  %v2634_v33 = vrot.slane %v8679_v26, %v8283_v37  ;;  %v8714_v36 = vpop.f32.mrf.mxu1 }
 0x310   :  { %v8704_v31 = vpop.eup %5956  ;;  %v3083_v22 = vadd.f32 %v3051_v57, %v2763_v42  ;;  %v3371_v1 = vmul.f32 %v3270_v41, %v10688_v27  ;;  %v3910_v5 = vrot.slane %v8633_v0, %v8335_v7  ;;  %5962 = vpow2.f32 %v5342_v15  ;;  %v8717_v57 = vpop.f32.mrf.mxu0  ;;  %v10691_v42 = vld [vmem:[#allocation137_spill] sm:$0xff] }
 0x311   :  { %v8706_v61 = vadd.f32 %v4909_v24, %v1104_v19  ;;  %v2124_v40 = vadd.f32 %v2092_v3, %v1804_v48  ;;  %v2412_v12 = vmul.f32 %v2314_v28, %v10689_v51  ;;  %v2954_v45 = vrot.slane %v8679_v26, %v8295_v55  ;;  %v10690_v19 = vld [vmem:[#allocation199_spill] sm:$0xff]  ;;  %v10692_v3 = vld [vmem:[#allocation166_spill] sm:$0xff] }
 0x312   :  { %5964 = vrcp.f32 %v5064_v10  ;;  %v3403_v14 = vadd.f32 %v3371_v1, %v3083_v22  ;;  %v3691_v24 = vmul.f32 %v3590_v30, %v10690_v19  ;;  %v2732_v27 = vmul.f32 %v2634_v33, %v10691_v42  ;;  %v8735_v1 = vpop.f32.mrf.mxu1  ;;  %v3785_v42 = vpop.permute.xlu0 %3784 }
 0x313   :  { %10687 = vst [vmem:[#allocation53_spill] sm:$0xff] %v8706_v61  ;;  %v2444_v41 = vadd.f32 %v2412_v12, %v2124_v40  ;;  %v3274_v0 = vrot.slane %v8679_v26, %v8307_v9  ;;  %v8724_v51 = vadd.f32 %v8533_v53, %v8276_v21  ;;  %5966 = vpow2.f32 %v5343_v34  ;;  %v8728_v48 = vpop.f32.mrf.mxu0 }
 0x314   :  { %v1110_v15 = vadd.f32 %v8495_v43, %v8332_v8  ;;  %v3723_v10 = vadd.f32 %v3691_v24, %v3403_v14  ;;  %v4011_v28 = vmul.f32 %v3910_v5, %v3781_v39  ;;  %v1357_v40 = vadd.f32 %v8592_v23, %v8314_v35 }
 0x315   :  { %v2764_v30 = vadd.f32 %v2732_v27, %v2444_v41  ;;  %v3052_v33 = vmul.f32 %v2954_v45, %v10692_v3  ;;  %v3594_v22 = vrot.slane %v8679_v26, %v8317_v46  ;;  %v5959_v53 = vpop.eup %5958  ;;  %v1710_v43 = vrot.slane %v8724_v51, %v10626_v29  ;;  %v10693_v45 = vld [vmem:[#allocation190_spill] sm:$0xff]  ;;  %v10695_v27 = vld [vmem:[#allocation27_spill] sm:$0xff]  ;;  %v8753_v56 = vpop.f32.mrf.mxu0 }
 0x316   :  { %v4043_v34 = vadd.f32 %v4011_v28, %v3723_v10  ;;  %v1998_v39 = vrot.slane %v8724_v51, %v7675_v63  ;;  %v2318_v5 = vrot.slane %v8724_v51, %v8291_v62  ;;  %v5344_v23 = vmul.f32 -1.442695, %v8667_v44  ;;  %v10696_v28 = vld [vmem:[#allocation56_spill] sm:$0xff]  ;;  %10697 = vst [vmem:[#allocation21_spill] sm:$0xff] %v8753_v56 }
 0x317   :  { %v3084_v12 = vadd.f32 %v3052_v33, %v2764_v30  ;;  %v3372_v14 = vmul.f32 %v3274_v0, %v10693_v45  ;;  %v3914_v19 = vrot.slane %v8679_v26, %v8335_v7  ;;  %v8747_v24 = vpop.eup %5960  ;;  %v1805_v10 = vmul.f32 %v1710_v43, %v10695_v27  ;;  %v10698_v33 = vld [vmem:[#allocation200_spill] sm:$0xff]  ;;  %v8758_v45 = vpop.f32.mrf.mxu1  ;;  %v10700_v43 = vld [vmem:[#allocation107_spill] sm:$0xff] }
 0x318   :  { %10694 = vst [vmem:[#allocation94_spill] sm:$0xff] %v8747_v24  ;;  %v4910_v41 = vmul.f32 %v4043_v34, %v1357_v40  ;;  %v2093_v3 = vmul.f32 %v1998_v39, %v10696_v28  ;;  %v2638_v47 = vrot.slane %v8724_v51, %v8283_v37  ;;  %v5065_v44 = vadd.f32 1.0, %v5959_v53 }
 0x319   :  { %v3404_v30 = vadd.f32 %v3372_v14, %v3084_v12  ;;  %v3692_v0 = vmul.f32 %v3594_v22, %v10698_v33  ;;  %v2958_v26 = vrot.slane %v8724_v51, %v8295_v55  ;;  %v2413_v27 = vmul.f32 %v2318_v5, %v10700_v43  ;;  %v10702_v33 = vld [vmem:[#allocation140_spill] sm:$0xff] }
 0x31a   :  { %v8760_v40 = vadd.f32 %v4910_v41, %v1110_v15  ;;  %v2125_v34 = vadd.f32 %v2093_v3, %v1805_v10  ;;  %v3598_v39 = vrot.slane %v8724_v51, %v8317_v46  ;;  %5968 = vpow2.f32 %v5344_v23  ;;  %v10703_v41 = vld [vmem:[#allocation201_spill] sm:$0xff] }
 0x31b   :  { %v3724_v53 = vadd.f32 %v3692_v0, %v3404_v30  ;;  %v4012_v12 = vmul.f32 %v3914_v19, %v3785_v42  ;;  %v8769_v22 = vadd.f32 %v8553_v58, %v8276_v21  ;;  %v2733_v24 = vmul.f32 %v2638_v47, %v10702_v33  ;;  %v8781_v58 = vpop.f32.mrf.mxu1  ;;  %v10704_v47 = vld [vmem:[#allocation165_spill] sm:$0xff]  ;;  %v10708_v33 = vld [vmem:[#allocation78_spill] sm:$0xff] }
 0x31c   :  { %10699 = vst [vmem:[#allocation51_spill] sm:$0xff] %v8760_v40  ;;  %v8765_v28 = vpop.f32.mrf.mxu0  ;;  %v2445_v14 = vadd.f32 %v2413_v27, %v2125_v34  ;;  %v3278_v15 = vrot.slane %v8724_v51, %v8307_v9  ;;  %v3693_v5 = vmul.f32 %v3598_v39, %v10703_v41  ;;  %v1362_v10 = vadd.f32 %v8573_v2, %v8314_v35 }
 0x31d   :  { %10701 = vst [vmem:[#allocation96_spill] sm:$0xff] %v8765_v28  ;;  %v1116_v23 = vadd.f32 %v8522_v59, %v8332_v8  ;;  %v4044_v3 = vadd.f32 %v4012_v12, %v3724_v53  ;;  %v1714_v19 = vrot.slane %v8769_v22, %v10626_v29  ;;  %v5963_v42 = vpop.eup %5962  ;;  %v3053_v0 = vmul.f32 %v2958_v26, %v10704_v47  ;;  %v10707_v12 = vld [vmem:[#allocation24_spill] sm:$0xff]  ;;  %v10709_v47 = vld [vmem:[#allocation61_spill] sm:$0xff] }
 0x31e   :  { %v2765_v30 = vadd.f32 %v2733_v24, %v2445_v14  ;;  %v2002_v34 = vrot.slane %v8769_v22, %v7675_v63  ;;  %v2322_v43 = vrot.slane %v8769_v22, %v8291_v62  ;;  %v8788_v2 = vpop.f32.mrf.mxu0  ;;  %v5345_v59 = vmul.f32 -1.442695, %v8706_v61  ;;  %v3789_v14 = vpop.permute.xlu1 %3788 }
 0x31f   :  { %10705 = vst [vmem:[#allocation105_spill] sm:$0xff] %v8788_v2  ;;  %v8790_v27 = vpop.eup %5964  ;;  %v4911_v39 = vmul.f32 %v4044_v3, %v1362_v10  ;;  %v3918_v53 = vrot.slane %v8724_v51, %v8335_v7  ;;  %v1806_v24 = vmul.f32 %v1714_v19, %v10707_v12  ;;  %v3373_v41 = vmul.f32 %v3278_v15, %v10708_v33  ;;  %v8811_v15 = vpop.f32.mrf.mxu1 }
 0x320   :  { %10706 = vst [vmem:[#allocation19_spill] sm:$0xff] %v8790_v27  ;;  %v3085_v26 = vadd.f32 %v3053_v0, %v2765_v30  ;;  %v2094_v28 = vmul.f32 %v2002_v34, %v10709_v47  ;;  %v2642_v56 = vrot.slane %v8769_v22, %v8283_v37  ;;  %v5967_v27 = vpop.eup %5966  ;;  %v8804_v10 = vmul.f32 %v8704_v31, %v8421_v11  ;;  %v10712_v34 = vld [vmem:[#allocation108_spill] sm:$0xff] }
 0x321   :  { %v5346_v51 = vmul.f32 -1.442695, %v8760_v40  ;;  %v8807_v3 = vadd.f32 %v4911_v39, %v1116_v23  ;;  %v2962_v19 = vrot.slane %v8769_v22, %v8295_v55  ;;  %5970 = vrcp.f32 %v5065_v44 }
 0x322   :  { %10710 = vst [vmem:[#allocation18_spill] sm:$0xff] %v8804_v10  ;;  %v3405_v30 = vadd.f32 %v3373_v41, %v3085_v26  ;;  %v2126_v0 = vadd.f32 %v2094_v28, %v1806_v24  ;;  %v2414_v12 = vmul.f32 %v2322_v43, %v10712_v34  ;;  %v5066_v47 = vadd.f32 1.0, %v5963_v42  ;;  %v10713_v10 = vld [vmem:[#allocation139_spill] sm:$0xff]  ;;  %v10714_v43 = vld [vmem:[#allocation168_spill] sm:$0xff]  ;;  %v10715_v26 = vld [vmem:[#allocation85_spill] sm:$0xff] }
 0x323   :  { %10711 = vst [vmem:[#allocation188_spill] sm:$0xff] %v8807_v3  ;;  %5972 = vpow2.f32 %v5345_v59  ;;  %v4013_v11 = vmul.f32 %v3918_v53, %v3789_v14  ;;  %v3282_v31 = vrot.slane %v8769_v22, %v8307_v9  ;;  %v2734_v40 = vmul.f32 %v2642_v56, %v10713_v10  ;;  %v8828_v53 = vpop.f32.mrf.mxu1 }
 0x324   :  { %v8800_v2 = vpop.f32.mrf.mxu0  ;;  %v3725_v23 = vadd.f32 %v3693_v5, %v3405_v30  ;;  %v2446_v39 = vadd.f32 %v2414_v12, %v2126_v0  ;;  %v8821_v61 = vadd.f32 %v8589_v20, %v8276_v21  ;;  %v5067_v28 = vadd.f32 1.0, %v5967_v27  ;;  %v10716_v0 = vld [vmem:[#allocation29_spill] sm:$0xff] }
 0x325   :  { %5974 = vpow2.f32 %v5346_v51  ;;  %v1367_v42 = vadd.f32 %v8624_v16, %v8314_v35  ;;  %v3054_v59 = vmul.f32 %v2962_v19, %v10714_v43  ;;  %v3602_v56 = vrot.slane %v8769_v22, %v8317_v46  ;;  %v8853_v43 = vpop.f32.mrf.mxu1 }
 0x326   :  { %v8814_v33 = vpop.f32.mrf.mxu0  ;;  %v4045_v24 = vadd.f32 %v4013_v11, %v3725_v23  ;;  %v2766_v5 = vadd.f32 %v2734_v40, %v2446_v39  ;;  %v1718_v20 = vrot.slane %v8821_v61, %v10626_v29  ;;  %v1122_v27 = vadd.f32 %v8545_v50, %v8332_v8  ;;  %v3793_v11 = vpop.permute.xlu0 %3792 }
 0x327   :  { %v3374_v41 = vmul.f32 %v3282_v31, %v10715_v26  ;;  %v2006_v16 = vrot.slane %v8821_v61, %v7675_v63  ;;  %v2326_v10 = vrot.slane %v8821_v61, %v8291_v62  ;;  %v5969_v40 = vpop.eup %5968  ;;  %v3922_v30 = vrot.slane %v8769_v22, %v8335_v7  ;;  %v10717_v31 = vld [vmem:[#allocation58_spill] sm:$0xff] }
 0x328   :  { %v8823_v44 = vpop.f32.mrf.mxu0  ;;  %v4912_v51 = vmul.f32 %v4045_v24, %v1367_v42  ;;  %v3086_v19 = vadd.f32 %v3054_v59, %v2766_v5  ;;  %v1807_v34 = vmul.f32 %v1718_v20, %v10716_v0  ;;  %5976 = vrcp.f32 %v5066_v47  ;;  %v10719_v59 = vld [vmem:[#allocation202_spill] sm:$0xff] }
 0x329   :  { %v1372_v50 = vadd.f32 %v8603_v54, %v8314_v35  ;;  %v2095_v23 = vmul.f32 %v2006_v16, %v10717_v31  ;;  %v2646_v39 = vrot.slane %v8821_v61, %v8283_v37  ;;  %5978 = vrcp.f32 %v5067_v28  ;;  %v10721_v20 = vld [vmem:[#allocation110_spill] sm:$0xff] }
 0x32a   :  { %v8834_v14 = vpop.f32.mrf.mxu0  ;;  %v8855_v42 = vadd.f32 %v4912_v51, %v1122_v27  ;;  %v3406_v22 = vadd.f32 %v3374_v41, %v3086_v19  ;;  %v3694_v24 = vmul.f32 %v3602_v56, %v10719_v59  ;;  %v2415_v26 = vmul.f32 %v2326_v10, %v10721_v20  ;;  %v10723_v19 = vld [vmem:[#allocation142_spill] sm:$0xff] }
 0x32b   :  { %v2127_v47 = vadd.f32 %v2095_v23, %v1807_v34  ;;  %v2966_v54 = vrot.slane %v8821_v61, %v8295_v55  ;;  %v8865_v16 = vadd.f32 %v8626_v17, %v8276_v21  ;;  %v5068_v0 = vadd.f32 1.0, %v5969_v40  ;;  %v8875_v23 = vpop.f32.mrf.mxu1 }
 0x32c   :  { %v8846_v12 = vpop.f32.mrf.mxu0  ;;  %10718 = vst [vmem:[#allocation55_spill] sm:$0xff] %v8855_v42  ;;  %v5347_v28 = vmul.f32 -1.442695, %v8807_v3  ;;  %v3726_v27 = vadd.f32 %v3694_v24, %v3406_v22  ;;  %v4014_v51 = vmul.f32 %v3922_v30, %v3793_v11  ;;  %v2735_v31 = vmul.f32 %v2646_v39, %v10723_v19  ;;  %v10726_v24 = vld [vmem:[#allocation167_spill] sm:$0xff] }
 0x32d   :  { %v2447_v56 = vadd.f32 %v2415_v26, %v2127_v47  ;;  %v3286_v10 = vrot.slane %v8821_v61, %v8307_v9  ;;  %v1722_v34 = vrot.slane %v8865_v16, %v10626_v29  ;;  %v1128_v17 = vadd.f32 %v8568_v49, %v8332_v8  ;;  %v10727_v26 = vld [vmem:[#allocation26_spill] sm:$0xff] }
 0x32e   :  { %v8858_v5 = vpop.f32.mrf.mxu0  ;;  %v4046_v40 = vadd.f32 %v4014_v51, %v3726_v27  ;;  %v2010_v30 = vrot.slane %v8865_v16, %v7675_v63  ;;  %v2330_v11 = vrot.slane %v8865_v16, %v8291_v62  ;;  %v8885_v39 = vpop.eup %5970  ;;  %v3055_v47 = vmul.f32 %v2966_v54, %v10726_v24  ;;  %v10728_v51 = vld [vmem:[#allocation63_spill] sm:$0xff] }
 0x32f   :  { %10720 = vst [vmem:[#allocation97_spill] sm:$0xff] %v8858_v5  ;;  %10725 = vst [vmem:[#allocation162_spill] sm:$0xff] %v8885_v39  ;;  %v2767_v59 = vadd.f32 %v2735_v31, %v2447_v56  ;;  %v3606_v20 = vrot.slane %v8821_v61, %v8317_v46  ;;  %v1808_v19 = vmul.f32 %v1722_v34, %v10727_v26  ;;  %5980 = vrcp.f32 %v5068_v0  ;;  %v10730_v56 = vld [vmem:[#allocation81_spill] sm:$0xff]  ;;  %v8899_v24 = vpop.f32.mrf.mxu1 }
 0x330   :  { %v8868_v41 = vpop.f32.mrf.mxu0  ;;  %v5973_v49 = vpop.eup %5972  ;;  %v4913_v27 = vmul.f32 %v4046_v40, %v1372_v50  ;;  %v2096_v3 = vmul.f32 %v2010_v30, %v10728_v51  ;;  %5982 = vpow2.f32 %v5347_v28  ;;  %v3375_v31 = vmul.f32 %v3286_v10, %v10730_v56  ;;  %v10732_v40 = vld [vmem:[#allocation111_spill] sm:$0xff] }
 0x331   :  { %10722 = vst [vmem:[#allocation119_spill] sm:$0xff] %v8868_v41  ;;  %v2650_v41 = vrot.slane %v8865_v16, %v8283_v37  ;;  %v3087_v39 = vadd.f32 %v3055_v47, %v2767_v59  ;;  %v3926_v54 = vrot.slane %v8821_v61, %v8335_v7  ;;  %v3797_v50 = vpop.permute.xlu1 %3796  ;;  %v2416_v30 = vmul.f32 %v2330_v11, %v10732_v40  ;;  %v10733_v47 = vld [vmem:[#allocation203_spill] sm:$0xff] }
 0x332   :  { %v8883_v22 = vpop.f32.mrf.mxu0  ;;  %v5975_v34 = vpop.eup %5974  ;;  %v8901_v26 = vadd.f32 %v4913_v27, %v1128_v17  ;;  %v2128_v0 = vadd.f32 %v2096_v3, %v1808_v19  ;;  %v2970_v51 = vrot.slane %v8865_v16, %v8295_v55  ;;  %v5069_v28 = vadd.f32 1.0, %v5973_v49  ;;  %v10734_v27 = vld [vmem:[#allocation141_spill] sm:$0xff] }
 0x333   :  { %10724 = vst [vmem:[#allocation134_spill] sm:$0xff] %v8883_v22  ;;  %v5348_v10 = vmul.f32 -1.442695, %v8855_v42  ;;  %v3407_v59 = vadd.f32 %v3375_v31, %v3087_v39  ;;  %v3695_v61 = vmul.f32 %v3606_v20, %v10733_v47  ;;  %v1134_v56 = vadd.f32 %v8609_v25, %v8332_v8  ;;  %v8923_v20 = vpop.f32.mrf.mxu1  ;;  %v10740_v42 = vld [vmem:[#allocation31_spill] sm:$0xff] }
 0x334   :  { %v8894_v5 = vpop.f32.mrf.mxu0  ;;  %10731 = vst [vmem:[#allocation23_spill] sm:$0xff] %v8901_v26  ;;  %v2448_v17 = vadd.f32 %v2416_v30, %v2128_v0  ;;  %v2736_v22 = vmul.f32 %v2650_v41, %v10734_v27  ;;  %v3290_v3 = vrot.slane %v8865_v16, %v8307_v9  ;;  %v1377_v19 = vadd.f32 %v8654_v60, %v8314_v35  ;;  %v10736_v0 = vld [vmem:[#allocation170_spill] sm:$0xff] }
 0x335   :  { %10729 = vst [vmem:[#allocation71_spill] sm:$0xff] %v8894_v5  ;;  %v3727_v49 = vadd.f32 %v3695_v61, %v3407_v59  ;;  %v4015_v40 = vmul.f32 %v3926_v54, %v3797_v50  ;;  %v8921_v39 = vadd.f32 %v8671_v6, %v8276_v21  ;;  %v8925_v25 = vpop.eup %5976  ;;  %v5070_v31 = vadd.f32 1.0, %v5975_v34  ;;  %v10739_v34 = vld [vmem:[#allocation88_spill] sm:$0xff] }
 0x336   :  { %v8906_v5 = vpop.f32.mrf.mxu0  ;;  %10735 = vst [vmem:[#allocation52_spill] sm:$0xff] %v8925_v25  ;;  %v2768_v41 = vadd.f32 %v2736_v22, %v2448_v17  ;;  %v3056_v30 = vmul.f32 %v2970_v51, %v10736_v0  ;;  %v3610_v47 = vrot.slane %v8865_v16, %v8317_v46  ;;  %v8932_v60 = vpop.eup %5978  ;;  %5984 = vpow2.f32 %v5348_v10 }
 0x337   :  { %10738 = vst [vmem:[#allocation100_spill] sm:$0xff] %v8932_v60  ;;  %v4047_v54 = vadd.f32 %v4015_v40, %v3727_v49  ;;  %v1726_v6 = vrot.slane %v8921_v39, %v10626_v29  ;;  %v2014_v50 = vrot.slane %v8921_v39, %v7675_v63  ;;  %v3376_v22 = vmul.f32 %v3290_v3, %v10739_v34  ;;  %v3801_v0 = vpop.permute.xlu0 %3800  ;;  %v10741_v49 = vld [vmem:[#allocation60_spill] sm:$0xff]  ;;  %v8947_v25 = vpop.f32.mrf.mxu1 }
 0x338   :  { %v8915_v11 = vpop.f32.mrf.mxu0  ;;  %v3088_v59 = vadd.f32 %v3056_v30, %v2768_v41  ;;  %v3930_v51 = vrot.slane %v8865_v16, %v8335_v7  ;;  %v2334_v61 = vrot.slane %v8921_v39, %v8291_v62  ;;  %v2654_v60 = vrot.slane %v8921_v39, %v8283_v37  ;;  %v10742_v30 = vld [vmem:[#allocation204_spill] sm:$0xff] }
 0x339   :  { %v4914_v17 = vmul.f32 %v4047_v54, %v1377_v19  ;;  %v1809_v10 = vmul.f32 %v1726_v6, %v10740_v42  ;;  %v2097_v40 = vmul.f32 %v2014_v50, %v10741_v49  ;;  %v1382_v3 = vadd.f32 %v8635_v13, %v8314_v35  ;;  %v10745_v6 = vld [vmem:[#allocation114_spill] sm:$0xff] }
 0x33a   :  { %v8930_v27 = vpop.f32.mrf.mxu0  ;;  %v3408_v41 = vadd.f32 %v3376_v22, %v3088_v59  ;;  %v3696_v16 = vmul.f32 %v3610_v47, %v10742_v30  ;;  %v8954_v34 = vadd.f32 %v8714_v36, %v8276_v21  ;;  %v2417_v50 = vmul.f32 %v2334_v61, %v10745_v6  ;;  %v10747_v30 = vld [vmem:[#allocation144_spill] sm:$0xff] }
 0x33b   :  { %10737 = vst [vmem:[#allocation196_spill] sm:$0xff] %v8930_v27  ;;  %v8958_v42 = vadd.f32 %v4914_v17, %v1134_v56  ;;  %v2129_v54 = vadd.f32 %v2097_v40, %v1809_v10  ;;  %v2974_v49 = vrot.slane %v8921_v39, %v8295_v55  ;;  %5986 = vrcp.f32 %v5069_v28  ;;  %v8970_v17 = vpop.f32.mrf.mxu1  ;;  %v10749_v40 = vld [vmem:[#allocation169_spill] sm:$0xff]  ;;  %v10750_v6 = vld [vmem:[#allocation28_spill] sm:$0xff]  ;;  %v3805_v27 = vpop.permute.xlu1 %3804 }
 0x33c   :  { %v8956_v19 = vpop.f32.mrf.mxu0  ;;  %v1140_v13 = vadd.f32 %v8647_v38, %v8332_v8  ;;  %v3728_v59 = vadd.f32 %v3696_v16, %v3408_v41  ;;  %v4016_v47 = vmul.f32 %v3930_v51, %v3801_v0  ;;  %v8965_v22 = vpop.eup %5980  ;;  %5988 = vrcp.f32 %v5070_v31 }
 0x33d   :  { %10743 = vst [vmem:[#allocation136_spill] sm:$0xff] %v8956_v19  ;;  %10744 = vst [vmem:[#allocation197_spill] sm:$0xff] %v8958_v42  ;;  %v2449_v36 = vadd.f32 %v2417_v50, %v2129_v54  ;;  %v2737_v19 = vmul.f32 %v2654_v60, %v10747_v30  ;;  %v3294_v56 = vrot.slane %v8921_v39, %v8307_v9  ;;  %v5983_v61 = vpop.eup %5982  ;;  %v5349_v10 = vmul.f32 -1.442695, %v8901_v26 }
 0x33e   :  { %10746 = vst [vmem:[#allocation161_spill] sm:$0xff] %v8965_v22  ;;  %v4048_v28 = vadd.f32 %v4016_v47, %v3728_v59  ;;  %v1730_v38 = vrot.slane %v8954_v34, %v10626_v29  ;;  %v2018_v51 = vrot.slane %v8954_v34, %v7675_v63  ;;  %v8977_v0 = vpop.f32.mrf.mxu0  ;;  %v3057_v60 = vmul.f32 %v2974_v49, %v10749_v40  ;;  %v10751_v59 = vld [vmem:[#allocation65_spill] sm:$0xff] }
 0x33f   :  { %10748 = vst [vmem:[#allocation20_spill] sm:$0xff] %v8977_v0  ;;  %v2769_v31 = vadd.f32 %v2737_v19, %v2449_v36  ;;  %v3614_v41 = vrot.slane %v8921_v39, %v8317_v46  ;;  %v2338_v16 = vrot.slane %v8954_v34, %v8291_v62  ;;  %v2658_v30 = vrot.slane %v8954_v34, %v8283_v37  ;;  %v10752_v0 = vld [vmem:[#allocation191_spill] sm:$0xff]  ;;  %v8991_v36 = vpop.f32.mrf.mxu1 }
 0x340   :  { %v4915_v54 = vmul.f32 %v4048_v28, %v1382_v3  ;;  %v1810_v50 = vmul.f32 %v1730_v38, %v10750_v6  ;;  %v2098_v47 = vmul.f32 %v2018_v51, %v10751_v59  ;;  %v5071_v26 = vadd.f32 1.0, %v5983_v61  ;;  %v10754_v28 = vld [vmem:[#allocation115_spill] sm:$0xff]  ;;  %v8998_v6 = vpop.f32.mrf.mxu0 }
 0x341   :  { %v3089_v22 = vadd.f32 %v3057_v60, %v2769_v31  ;;  %v3377_v19 = vmul.f32 %v3294_v56, %v10752_v0  ;;  %v3934_v49 = vrot.slane %v8921_v39, %v8335_v7  ;;  %v2418_v38 = vmul.f32 %v2338_v16, %v10754_v28  ;;  %10755 = vst [vmem:[#allocation68_spill] sm:$0xff] %v8998_v6  ;;  %v10756_v0 = vld [vmem:[#allocation205_spill] sm:$0xff]  ;;  %v10757_v16 = vld [vmem:[#allocation143_spill] sm:$0xff] }
 0x342   :  { %v8993_v40 = vadd.f32 %v4915_v54, %v1140_v13  ;;  %v2130_v3 = vadd.f32 %v2098_v47, %v1810_v50  ;;  %v2978_v51 = vrot.slane %v8954_v34, %v8295_v55  ;;  %v9002_v61 = vadd.f32 %v8663_v32, %v8314_v35  ;;  %v9016_v47 = vpop.f32.mrf.mxu1  ;;  %v9022_v28 = vpop.f32.mrf.mxu0 }
 0x343   :  { %v3409_v56 = vadd.f32 %v3377_v19, %v3089_v22  ;;  %v3697_v39 = vmul.f32 %v3614_v41, %v10756_v0  ;;  %v9007_v13 = vadd.f32 %v8758_v45, %v8276_v21  ;;  %v5985_v31 = vpop.eup %5984  ;;  %5990 = vpow2.f32 %v5349_v10  ;;  %v10758_v10 = vld [vmem:[#allocation172_spill] sm:$0xff]  ;;  %10759 = vst [vmem:[#allocation101_spill] sm:$0xff] %v9022_v28 }
 0x344   :  { %10753 = vst [vmem:[#allocation57_spill] sm:$0xff] %v8993_v40  ;;  %v2450_v60 = vadd.f32 %v2418_v38, %v2130_v3  ;;  %v2738_v54 = vmul.f32 %v2658_v30, %v10757_v16  ;;  %v3298_v50 = vrot.slane %v8954_v34, %v8307_v9  ;;  %v1146_v59 = vadd.f32 %v8691_v4, %v8332_v8 }
 0x345   :  { %v1387_v32 = vadd.f32 %v8684_v52, %v8314_v35  ;;  %v3729_v22 = vadd.f32 %v3697_v39, %v3409_v56  ;;  %v4017_v41 = vmul.f32 %v3934_v49, %v3805_v27  ;;  %v5350_v45 = vmul.f32 -1.442695, %v8958_v42  ;;  %v10760_v49 = vld [vmem:[#allocation95_spill] sm:$0xff] }
 0x346   :  { %v2770_v19 = vadd.f32 %v2738_v54, %v2450_v60  ;;  %v3058_v3 = vmul.f32 %v2978_v51, %v10758_v10  ;;  %v3618_v30 = vrot.slane %v8954_v34, %v8317_v46  ;;  %v5072_v38 = vadd.f32 1.0, %v5985_v31  ;;  %v3809_v31 = vpop.permute.xlu0 %3808  ;;  %v10762_v54 = vld [vmem:[#allocation33_spill] sm:$0xff] }
 0x347   :  { %v4049_v0 = vadd.f32 %v4017_v41, %v3729_v22  ;;  %v1734_v4 = vrot.slane %v9007_v13, %v10626_v29  ;;  %v2022_v52 = vrot.slane %v9007_v13, %v7675_v63  ;;  %v3378_v56 = vmul.f32 %v3298_v50, %v10760_v49  ;;  %v10763_v41 = vld [vmem:[#allocation62_spill] sm:$0xff] }
 0x348   :  { %v3090_v27 = vadd.f32 %v3058_v3, %v2770_v19  ;;  %v3938_v39 = vrot.slane %v8954_v34, %v8335_v7  ;;  %v2342_v51 = vrot.slane %v9007_v13, %v8291_v62  ;;  %v9033_v60 = vpop.eup %5986  ;;  %v2662_v42 = vrot.slane %v9007_v13, %v8283_v37  ;;  %v9039_v19 = vpop.f32.mrf.mxu1  ;;  %v10765_v49 = vld [vmem:[#allocation206_spill] sm:$0xff] }
 0x349   :  { %10761 = vst [vmem:[#allocation135_spill] sm:$0xff] %v9033_v60  ;;  %v4916_v16 = vmul.f32 %v4049_v0, %v1387_v32  ;;  %v1811_v22 = vmul.f32 %v1734_v4, %v10762_v54  ;;  %v2099_v10 = vmul.f32 %v2022_v52, %v10763_v41  ;;  %v9041_v50 = vpop.eup %5988  ;;  %5992 = vpow2.f32 %v5350_v45  ;;  %v9045_v60 = vpop.f32.mrf.mxu0  ;;  %v10767_v4 = vld [vmem:[#allocation117_spill] sm:$0xff] }
 0x34a   :  { %10764 = vst [vmem:[#allocation164_spill] sm:$0xff] %v9041_v50  ;;  %v5351_v34 = vmul.f32 -1.442695, %v8993_v40  ;;  %v3410_v3 = vadd.f32 %v3378_v56, %v3090_v27  ;;  %v3698_v28 = vmul.f32 %v3618_v30, %v10765_v49  ;;  %v2419_v52 = vmul.f32 %v2342_v51, %v10767_v4  ;;  %v10768_v56 = vld [vmem:[#allocation146_spill] sm:$0xff]  ;;  %v9061_v51 = vpop.f32.mrf.mxu1  ;;  %v3817_v50 = vpop.permute.xlu0 %3816 }
 0x34b   :  { %v9047_v32 = vadd.f32 %v4916_v16, %v1146_v59  ;;  %v2131_v0 = vadd.f32 %v2099_v10, %v1811_v22  ;;  %v2982_v54 = vrot.slane %v9007_v13, %v8295_v55  ;;  %v4018_v6 = vmul.f32 %v3938_v39, %v3809_v31  ;;  %v9067_v31 = vpop.f32.mrf.mxu0  ;;  %v10771_v49 = vld [vmem:[#allocation30_spill] sm:$0xff] }
 0x34c   :  { %v3730_v41 = vadd.f32 %v3698_v28, %v3410_v3  ;;  %v3302_v45 = vrot.slane %v9007_v13, %v8307_v9  ;;  %v9056_v27 = vadd.f32 %v8811_v15, %v8276_v21  ;;  %5994 = vrcp.f32 %v5071_v26  ;;  %v10769_v26 = vld [vmem:[#allocation171_spill] sm:$0xff] }
 0x34d   :  { %10766 = vst [vmem:[#allocation74_spill] sm:$0xff] %v9047_v32  ;;  %v1152_v59 = vadd.f32 %v8735_v1, %v8332_v8  ;;  %v2451_v30 = vadd.f32 %v2419_v52, %v2131_v0  ;;  %v2739_v16 = vmul.f32 %v2662_v42, %v10768_v56  ;;  %5996 = vrcp.f32 %v5072_v38  ;;  %v10770_v38 = vld [vmem:[#allocation92_spill] sm:$0xff] }
 0x34e   :  { %v4050_v22 = vadd.f32 %v4018_v6, %v3730_v41  ;;  %v3622_v28 = vrot.slane %v9007_v13, %v8317_v46  ;;  %v1738_v39 = vrot.slane %v9056_v27, %v10626_v29  ;;  %v3059_v10 = vmul.f32 %v2982_v54, %v10769_v26 }
 0x34f   :  { %v2771_v15 = vadd.f32 %v2739_v16, %v2451_v30  ;;  %v2026_v1 = vrot.slane %v9056_v27, %v7675_v63  ;;  %v2346_v42 = vrot.slane %v9056_v27, %v8291_v62  ;;  %5998 = vpow2.f32 %v5351_v34  ;;  %v10772_v30 = vld [vmem:[#allocation67_spill] sm:$0xff]  ;;  %v9082_v16 = vpop.f32.mrf.mxu1 }
 0x350   :  { %v4917_v6 = vmul.f32 %v4050_v22, %v9002_v61  ;;  %v3379_v3 = vmul.f32 %v3302_v45, %v10770_v38  ;;  %v1812_v0 = vmul.f32 %v1738_v39, %v10771_v49  ;;  %v5991_v4 = vpop.eup %5990  ;;  %v3942_v41 = vrot.slane %v9007_v13, %v8335_v7  ;;  %v3813_v61 = vpop.permute.xlu1 %3812  ;;  %v10774_v45 = vld [vmem:[#allocation207_spill] sm:$0xff] }
 0x351   :  { %v3091_v52 = vadd.f32 %v3059_v10, %v2771_v15  ;;  %v2100_v54 = vmul.f32 %v2026_v1, %v10772_v30  ;;  %v2666_v56 = vrot.slane %v9056_v27, %v8283_v37  ;;  %v5352_v34 = vmul.f32 -1.442695, %v9047_v32  ;;  %v9092_v15 = vpop.f32.mrf.mxu0  ;;  %v10776_v1 = vld [vmem:[#allocation118_spill] sm:$0xff] }
 0x352   :  { %v9085_v26 = vadd.f32 %v4917_v6, %v1152_v59  ;;  %v3699_v22 = vmul.f32 %v3622_v28, %v10774_v45  ;;  %v9090_v39 = vadd.f32 %v8853_v43, %v8276_v21  ;;  %10775 = vst [vmem:[#allocation198_spill] sm:$0xff] %v9092_v15  ;;  %v2420_v38 = vmul.f32 %v2346_v42, %v10776_v1  ;;  %v10781_v1 = vld [vmem:[#allocation35_spill] sm:$0xff] }
 0x353   :  { %v3411_v13 = vadd.f32 %v3379_v3, %v3091_v52  ;;  %v2132_v10 = vadd.f32 %v2100_v54, %v1812_v0  ;;  %v2986_v49 = vrot.slane %v9056_v27, %v8295_v55  ;;  %v5073_v30 = vadd.f32 1.0, %v5991_v4  ;;  %v10777_v3 = vld [vmem:[#allocation145_spill] sm:$0xff]  ;;  %v9104_v52 = vpop.f32.mrf.mxu1  ;;  %v9112_v4 = vpop.f32.mrf.mxu0 }
 0x354   :  { %10773 = vst [vmem:[#allocation25_spill] sm:$0xff] %v9085_v26  ;;  %v1402_v59 = vadd.f32 %v8697_v18, %v8314_v35  ;;  %v1158_v28 = vadd.f32 %v8781_v58, %v8332_v8  ;;  %v3306_v43 = vrot.slane %v9056_v27, %v8307_v9  ;;  %v4019_v45 = vmul.f32 %v3942_v41, %v3813_v61  ;;  %v10779_v61 = vld [vmem:[#allocation174_spill] sm:$0xff] }
 0x355   :  { %v3731_v6 = vadd.f32 %v3699_v22, %v3411_v13  ;;  %v2452_v32 = vadd.f32 %v2420_v38, %v2132_v10  ;;  %v2740_v0 = vmul.f32 %v2666_v56, %v10777_v3  ;;  %6000 = vpow2.f32 %v5352_v34  ;;  %10778 = vst [vmem:[#allocation54_spill] sm:$0xff] %v9112_v4  ;;  %v10780_v34 = vld [vmem:[#allocation192_spill] sm:$0xff] }
 0x356   :  { %v1397_v42 = vadd.f32 %v8717_v57, %v8314_v35  ;;  %v3626_v18 = vrot.slane %v9056_v27, %v8317_v46  ;;  %v1742_v58 = vrot.slane %v9090_v39, %v10626_v29  ;;  %v5993_v54 = vpop.eup %5992  ;;  %v3060_v13 = vmul.f32 %v2986_v49, %v10779_v61 }
 0x357   :  { %v4051_v22 = vadd.f32 %v4019_v45, %v3731_v6  ;;  %v2772_v41 = vadd.f32 %v2740_v0, %v2452_v32  ;;  %v2030_v56 = vrot.slane %v9090_v39, %v7675_v63  ;;  %v3380_v10 = vmul.f32 %v3306_v43, %v10780_v34  ;;  %v10782_v6 = vld [vmem:[#allocation64_spill] sm:$0xff]  ;;  %v9126_v45 = vpop.f32.mrf.mxu1  ;;  %v9133_v34 = vpop.f32.mrf.mxu0 }
 0x358   :  { %v3946_v57 = vrot.slane %v9056_v27, %v8335_v7  ;;  %v1813_v38 = vmul.f32 %v1742_v58, %v10781_v1  ;;  %v2350_v3 = vrot.slane %v9090_v39, %v8291_v62  ;;  %v2670_v49 = vrot.slane %v9090_v39, %v8283_v37  ;;  %v10784_v27 = vld [vmem:[#allocation208_spill] sm:$0xff]  ;;  %10785 = vst [vmem:[#allocation138_spill] sm:$0xff] %v9133_v34 }
 0x359   :  { %v4918_v40 = vmul.f32 %v4051_v22, %v1397_v42  ;;  %v3092_v4 = vadd.f32 %v3060_v13, %v2772_v41  ;;  %v2101_v32 = vmul.f32 %v2030_v56, %v10782_v6  ;;  %v9128_v0 = vpop.eup %5994  ;;  %6002 = vrcp.f32 %v5073_v30  ;;  %v10788_v56 = vld [vmem:[#allocation120_spill] sm:$0xff] }
 0x35a   :  { %10783 = vst [vmem:[#allocation103_spill] sm:$0xff] %v9128_v0  ;;  %v5074_v43 = vadd.f32 1.0, %v5993_v54  ;;  %v3700_v61 = vmul.f32 %v3626_v18, %v10784_v27  ;;  %v2990_v58 = vrot.slane %v9090_v39, %v8295_v55  ;;  %v9135_v42 = vpop.eup %5996  ;;  %v2421_v1 = vmul.f32 %v2350_v3, %v10788_v56  ;;  %v10791_v3 = vld [vmem:[#allocation173_spill] sm:$0xff] }
 0x35b   :  { %10786 = vst [vmem:[#allocation163_spill] sm:$0xff] %v9135_v42  ;;  %v9137_v22 = vadd.f32 %v4918_v40, %v1158_v28  ;;  %v3412_v41 = vadd.f32 %v3380_v10, %v3092_v4  ;;  %v2133_v13 = vadd.f32 %v2101_v32, %v1813_v38  ;;  %v5353_v6 = vmul.f32 -1.442695, %v9085_v26  ;;  %v10789_v42 = vld [vmem:[#allocation148_spill] sm:$0xff]  ;;  %v9150_v4 = vpop.f32.mrf.mxu1  ;;  %v10794_v26 = vld [vmem:[#allocation99_spill] sm:$0xff] }
 0x35c   :  { %v1164_v30 = vadd.f32 %v8828_v53, %v8332_v8  ;;  %v4020_v54 = vmul.f32 %v3946_v57, %v3817_v50  ;;  %v9145_v18 = vadd.f32 %v8899_v24, %v8276_v21  ;;  %v5999_v27 = vpop.eup %5998  ;;  %v2741_v40 = vmul.f32 %v2670_v49, %v10789_v42  ;;  %v9158_v50 = vpop.f32.mrf.mxu0  ;;  %v10793_v42 = vld [vmem:[#allocation70_spill] sm:$0xff] }
 0x35d   :  { %10787 = vst [vmem:[#allocation22_spill] sm:$0xff] %v9137_v22  ;;  %v3732_v0 = vadd.f32 %v3700_v61, %v3412_v41  ;;  %v2453_v34 = vadd.f32 %v2421_v1, %v2133_v13  ;;  %v3310_v28 = vrot.slane %v9090_v39, %v8307_v9  ;;  %6004 = vrcp.f32 %v5074_v43  ;;  %10790 = vst [vmem:[#allocation59_spill] sm:$0xff] %v9158_v50  ;;  %v10792_v43 = vld [vmem:[#allocation32_spill] sm:$0xff] }
 0x35e   :  { %v1746_v10 = vrot.slane %v9145_v18, %v10626_v29  ;;  %v2034_v53 = vrot.slane %v9145_v18, %v7675_v63  ;;  %v2354_v24 = vrot.slane %v9145_v18, %v8291_v62  ;;  %v3061_v32 = vmul.f32 %v2990_v58, %v10791_v3 }
 0x35f   :  { %v4052_v57 = vadd.f32 %v4020_v54, %v3732_v0  ;;  %v2773_v38 = vadd.f32 %v2741_v40, %v2453_v34  ;;  %v3630_v49 = vrot.slane %v9090_v39, %v8317_v46  ;;  %6006 = vpow2.f32 %v5353_v6  ;;  %v9170_v34 = vpop.f32.mrf.mxu1  ;;  %v3821_v54 = vpop.permute.xlu1 %3820  ;;  %v10795_v6 = vld [vmem:[#allocation121_spill] sm:$0xff] }
 0x360   :  { %v1814_v61 = vmul.f32 %v1746_v10, %v10792_v43  ;;  %v2102_v41 = vmul.f32 %v2034_v53, %v10793_v42  ;;  %v2674_v13 = vrot.slane %v9145_v18, %v8283_v37  ;;  %v3381_v15 = vmul.f32 %v3310_v28, %v10794_v26  ;;  %v9175_v53 = vpop.f32.mrf.mxu0  ;;  %v10798_v26 = vld [vmem:[#allocation209_spill] sm:$0xff] }
 0x361   :  { %v4919_v56 = vmul.f32 %v4052_v57, %v1402_v59  ;;  %v3093_v1 = vadd.f32 %v3061_v32, %v2773_v38  ;;  %v3950_v0 = vrot.slane %v9090_v39, %v8335_v7  ;;  %v5075_v58 = vadd.f32 1.0, %v5999_v27  ;;  %10796 = vst [vmem:[#allocation189_spill] sm:$0xff] %v9175_v53 }
 0x362   :  { %v2134_v40 = vadd.f32 %v2102_v41, %v1814_v61  ;;  %v2422_v3 = vmul.f32 %v2354_v24, %v10795_v6  ;;  %v2994_v10 = vrot.slane %v9145_v18, %v8295_v55  ;;  %v6001_v43 = vpop.eup %6000  ;;  %v3701_v28 = vmul.f32 %v3630_v49, %v10798_v26  ;;  %v10799_v24 = vld [vmem:[#allocation147_spill] sm:$0xff] }
 0x363   :  { %v9177_v59 = vadd.f32 %v4919_v56, %v1164_v30  ;;  %v3413_v57 = vadd.f32 %v3381_v15, %v3093_v1  ;;  %v9182_v39 = vadd.f32 %v8947_v25, %v8276_v21  ;;  %v1412_v27 = vadd.f32 %v8728_v48, %v8314_v35  ;;  %v10800_v30 = vld [vmem:[#allocation21_spill] sm:$0xff]  ;;  %v9192_v56 = vpop.f32.mrf.mxu1  ;;  %v10801_v1 = vld [vmem:[#allocation176_spill] sm:$0xff] }
 0x364   :  { %v2454_v38 = vadd.f32 %v2422_v3, %v2134_v40  ;;  %v2742_v32 = vmul.f32 %v2674_v13, %v10799_v24  ;;  %v3314_v61 = vrot.slane %v9145_v18, %v8307_v9  ;;  %v5354_v42 = vmul.f32 -1.442695, %v9137_v22  ;;  %v9199_v40 = vpop.f32.mrf.mxu0  ;;  %v3825_v22 = vpop.permute.xlu0 %3824 }
 0x365   :  { %10797 = vst [vmem:[#allocation104_spill] sm:$0xff] %v9177_v59  ;;  %v1407_v15 = vadd.f32 %v10800_v30, %v8314_v35  ;;  %v3733_v41 = vadd.f32 %v3701_v28, %v3413_v57  ;;  %v4021_v49 = vmul.f32 %v3950_v0, %v3821_v54  ;;  %v3062_v6 = vmul.f32 %v2994_v10, %v10801_v1  ;;  %v10804_v10 = vld [vmem:[#allocation106_spill] sm:$0xff] }
 0x366   :  { %v2774_v25 = vadd.f32 %v2742_v32, %v2454_v38  ;;  %v3634_v48 = vrot.slane %v9145_v18, %v8317_v46  ;;  %v1750_v13 = vrot.slane %v9182_v39, %v10626_v29  ;;  %10802 = vst [vmem:[#allocation199_spill] sm:$0xff] %v9199_v40  ;;  %v9201_v3 = vpop.eup %6002  ;;  %v5076_v26 = vadd.f32 1.0, %v6001_v43  ;;  %v10805_v32 = vld [vmem:[#allocation37_spill] sm:$0xff]  ;;  %v10818_v40 = vld [vmem:[#allocation123_spill] sm:$0xff] }
 0x367   :  { %10803 = vst [vmem:[#allocation137_spill] sm:$0xff] %v9201_v3  ;;  %v4053_v24 = vadd.f32 %v4021_v49, %v3733_v41  ;;  %v2038_v0 = vrot.slane %v9182_v39, %v7675_v63  ;;  %v2358_v54 = vrot.slane %v9182_v39, %v8291_v62  ;;  %v3382_v28 = vmul.f32 %v3314_v61, %v10804_v10  ;;  %v10806_v3 = vld [vmem:[#allocation66_spill] sm:$0xff]  ;;  %v9214_v49 = vpop.f32.mrf.mxu1 }
 0x368   :  { %v3094_v57 = vadd.f32 %v3062_v6, %v2774_v25  ;;  %v3954_v38 = vrot.slane %v9145_v18, %v8335_v7  ;;  %v1815_v30 = vmul.f32 %v1750_v13, %v10805_v32  ;;  %6008 = vpow2.f32 %v5354_v42  ;;  %v10807_v6 = vld [vmem:[#allocation210_spill] sm:$0xff]  ;;  %v9219_v18 = vpop.f32.mrf.mxu0 }
 0x369   :  { %v4920_v1 = vmul.f32 %v4053_v24, %v1407_v15  ;;  %v2103_v43 = vmul.f32 %v2038_v0, %v10806_v3  ;;  %v2678_v41 = vrot.slane %v9182_v39, %v8283_v37  ;;  %6010 = vrcp.f32 %v5075_v58  ;;  %10808 = vst [vmem:[#allocation166_spill] sm:$0xff] %v9219_v18  ;;  %v10810_v3 = vld [vmem:[#allocation122_spill] sm:$0xff] }
 0x36a   :  { %v1170_v25 = vadd.f32 %v8875_v23, %v8332_v8  ;;  %v3414_v61 = vadd.f32 %v3382_v28, %v3094_v57  ;;  %v3702_v10 = vmul.f32 %v3634_v48, %v10807_v6  ;;  %v9221_v13 = vpop.eup %6004  ;;  %v1176_v42 = vadd.f32 %v8923_v20, %v8332_v8  ;;  %v10812_v6 = vld [vmem:[#allocation150_spill] sm:$0xff] }
 0x36b   :  { %10809 = vst [vmem:[#allocation190_spill] sm:$0xff] %v9221_v13  ;;  %v2135_v15 = vadd.f32 %v2103_v43, %v1815_v30  ;;  %v2423_v24 = vmul.f32 %v2358_v54, %v10810_v3  ;;  %v2998_v0 = vrot.slane %v9182_v39, %v8295_v55  ;;  %6012 = vrcp.f32 %v5076_v26  ;;  %v9237_v54 = vpop.f32.mrf.mxu1  ;;  %v10814_v43 = vld [vmem:[#allocation175_spill] sm:$0xff] }
 0x36c   :  { %v3734_v58 = vadd.f32 %v3702_v10, %v3414_v61  ;;  %v4022_v32 = vmul.f32 %v3954_v38, %v3825_v22  ;;  %v9230_v23 = vadd.f32 %v8991_v36, %v8276_v21  ;;  %v6007_v48 = vpop.eup %6006  ;;  %v9232_v57 = vadd.f32 %v4920_v1, %v1170_v25  ;;  %v9244_v38 = vpop.f32.mrf.mxu0 }
 0x36d   :  { %v2455_v28 = vadd.f32 %v2423_v24, %v2135_v15  ;;  %v2743_v13 = vmul.f32 %v2678_v41, %v10812_v6  ;;  %v3318_v20 = vrot.slane %v9182_v39, %v8307_v9  ;;  %v5355_v30 = vmul.f32 -1.442695, %v9177_v59  ;;  %10813 = vst [vmem:[#allocation56_spill] sm:$0xff] %v9244_v38  ;;  %v10815_v15 = vld [vmem:[#allocation34_spill] sm:$0xff]  ;;  %v10816_v24 = vld [vmem:[#allocation73_spill] sm:$0xff] }
 0x36e   :  { %10811 = vst [vmem:[#allocation27_spill] sm:$0xff] %v9232_v57  ;;  %v4054_v26 = vadd.f32 %v4022_v32, %v3734_v58  ;;  %v1754_v22 = vrot.slane %v9230_v23, %v10626_v29  ;;  %v2042_v36 = vrot.slane %v9230_v23, %v7675_v63  ;;  %v3063_v25 = vmul.f32 %v2998_v0, %v10814_v43  ;;  %v9257_v43 = vpop.f32.mrf.mxu1 }
 0x36f   :  { %v2775_v1 = vadd.f32 %v2743_v13, %v2455_v28  ;;  %v3638_v41 = vrot.slane %v9182_v39, %v8317_v46  ;;  %v2362_v61 = vrot.slane %v9230_v23, %v8291_v62  ;;  %v2682_v32 = vrot.slane %v9230_v23, %v8283_v37  ;;  %v10817_v28 = vld [vmem:[#allocation102_spill] sm:$0xff] }
 0x370   :  { %v4921_v10 = vmul.f32 %v4054_v26, %v1412_v27  ;;  %v1816_v3 = vmul.f32 %v1754_v22, %v10815_v15  ;;  %v2104_v58 = vmul.f32 %v2042_v36, %v10816_v24  ;;  %v5077_v6 = vadd.f32 1.0, %v6007_v48  ;;  %v9262_v26 = vpop.f32.mrf.mxu0  ;;  %v10822_v15 = vld [vmem:[#allocation149_spill] sm:$0xff]  ;;  %v3829_v24 = vpop.permute.xlu1 %3828 }
 0x371   :  { %v5356_v59 = vmul.f32 -1.442695, %v9232_v57  ;;  %v3095_v13 = vadd.f32 %v3063_v25, %v2775_v1  ;;  %v3383_v0 = vmul.f32 %v3318_v20, %v10817_v28  ;;  %6014 = vpow2.f32 %v5355_v30  ;;  %10819 = vst [vmem:[#allocation200_spill] sm:$0xff] %v9262_v26  ;;  %v10821_v1 = vld [vmem:[#allocation211_spill] sm:$0xff] }
 0x372   :  { %v2136_v38 = vadd.f32 %v2104_v58, %v1816_v3  ;;  %v2424_v18 = vmul.f32 %v2362_v61, %v10818_v40  ;;  %v3002_v27 = vrot.slane %v9230_v23, %v8295_v55  ;;  %v9264_v22 = vadd.f32 %v4921_v10, %v1176_v42  ;;  %v10823_v42 = vld [vmem:[#allocation96_spill] sm:$0xff]  ;;  %v9284_v58 = vpop.f32.mrf.mxu1  ;;  %v9289_v28 = vpop.f32.mrf.mxu0  ;;  %v10830_v57 = vld [vmem:[#allocation39_spill] sm:$0xff] }
 0x373   :  { %v3415_v36 = vadd.f32 %v3383_v0, %v3095_v13  ;;  %v3958_v48 = vrot.slane %v9182_v39, %v8335_v7  ;;  %v9270_v20 = vadd.f32 %v9039_v19, %v8276_v21  ;;  %v3703_v30 = vmul.f32 %v3638_v41, %v10821_v1  ;;  %v10824_v39 = vld [vmem:[#allocation105_spill] sm:$0xff]  ;;  %10826 = vst [vmem:[#allocation140_spill] sm:$0xff] %v9289_v28 }
 0x374   :  { %10820 = vst [vmem:[#allocation107_spill] sm:$0xff] %v9264_v22  ;;  %v2456_v25 = vadd.f32 %v2424_v18, %v2136_v38  ;;  %v2744_v40 = vmul.f32 %v2682_v32, %v10822_v15  ;;  %v3322_v61 = vrot.slane %v9230_v23, %v8307_v9  ;;  %6016 = vpow2.f32 %v5356_v59  ;;  %v10825_v32 = vld [vmem:[#allocation178_spill] sm:$0xff]  ;;  %v10831_v28 = vld [vmem:[#allocation69_spill] sm:$0xff]  ;;  %v9309_v50 = vpop.f32.mrf.mxu1 }
 0x375   :  { %v1422_v10 = vadd.f32 %v10823_v42, %v8314_v35  ;;  %v9280_v3 = vadd.f32 %v8970_v17, %v8332_v8  ;;  %v1417_v19 = vadd.f32 %v10824_v39, %v8314_v35  ;;  %v6009_v18 = vpop.eup %6008  ;;  %v3735_v38 = vadd.f32 %v3703_v30, %v3415_v36 }
 0x376   :  { %v2776_v41 = vadd.f32 %v2744_v40, %v2456_v25  ;;  %v3064_v13 = vmul.f32 %v3002_v27, %v10825_v32  ;;  %v3642_v59 = vrot.slane %v9230_v23, %v8317_v46  ;;  %v9291_v0 = vpop.eup %6010  ;;  %v5357_v17 = vmul.f32 -1.442695, %v9264_v22  ;;  %v10828_v25 = vld [vmem:[#allocation109_spill] sm:$0xff]  ;;  %v3833_v22 = vpop.permute.xlu0 %3832 }
 0x377   :  { %10827 = vst [vmem:[#allocation201_spill] sm:$0xff] %v9291_v0  ;;  %v1758_v1 = vrot.slane %v9270_v20, %v10626_v29  ;;  %v2046_v15 = vrot.slane %v9270_v20, %v7675_v63  ;;  %v2366_v36 = vrot.slane %v9270_v20, %v8291_v62  ;;  %v4023_v30 = vmul.f32 %v3958_v48, %v3829_v24 }
 0x378   :  { %v3096_v27 = vadd.f32 %v3064_v13, %v2776_v41  ;;  %v3384_v40 = vmul.f32 %v3322_v61, %v10828_v25  ;;  %v3962_v42 = vrot.slane %v9230_v23, %v8335_v7  ;;  %v9303_v39 = vpop.eup %6012  ;;  %v5078_v32 = vadd.f32 1.0, %v6009_v18  ;;  %v10832_v61 = vld [vmem:[#allocation212_spill] sm:$0xff]  ;;  %v9312_v13 = vpop.f32.mrf.mxu0 }
 0x379   :  { %10829 = vst [vmem:[#allocation165_spill] sm:$0xff] %v9303_v39  ;;  %v1817_v0 = vmul.f32 %v1758_v1, %v10830_v57  ;;  %v2105_v26 = vmul.f32 %v2046_v15, %v10831_v28  ;;  %v2686_v53 = vrot.slane %v9270_v20, %v8283_v37  ;;  %6018 = vrcp.f32 %v5077_v6  ;;  %v10833_v18 = vld [vmem:[#allocation124_spill] sm:$0xff] }
 0x37a   :  { %v4055_v48 = vadd.f32 %v4023_v30, %v3735_v38  ;;  %v3416_v24 = vadd.f32 %v3384_v40, %v3096_v27  ;;  %v3704_v41 = vmul.f32 %v3642_v59, %v10832_v61  ;;  %6020 = vpow2.f32 %v5357_v17  ;;  %v10834_v59 = vld [vmem:[#allocation152_spill] sm:$0xff] }
 0x37b   :  { %v2137_v23 = vadd.f32 %v2105_v26, %v1817_v0  ;;  %v2425_v25 = vmul.f32 %v2366_v36, %v10833_v18  ;;  %v3006_v57 = vrot.slane %v9270_v20, %v8295_v55  ;;  %v1188_v28 = vadd.f32 %v9016_v47, %v8332_v8  ;;  %v9326_v0 = vpop.f32.mrf.mxu1  ;;  %v10837_v18 = vld [vmem:[#allocation193_spill] sm:$0xff] }
 0x37c   :  { %v3736_v1 = vadd.f32 %v3704_v41, %v3416_v24  ;;  %v4024_v15 = vmul.f32 %v3962_v42, %v3833_v22  ;;  %v9321_v6 = vadd.f32 %v9082_v16, %v8276_v21  ;;  %6022 = vrcp.f32 %v5078_v32  ;;  %v9334_v16 = vpop.f32.mrf.mxu0  ;;  %v10836_v42 = vld [vmem:[#allocation177_spill] sm:$0xff]  ;;  %v3837_v41 = vpop.permute.xlu1 %3836 }
 0x37d   :  { %v2457_v38 = vadd.f32 %v2425_v25, %v2137_v23  ;;  %v2745_v30 = vmul.f32 %v2686_v53, %v10834_v59  ;;  %v3326_v26 = vrot.slane %v9270_v20, %v8307_v9  ;;  %v4922_v17 = vmul.f32 %v4055_v48, %v1417_v19  ;;  %10835 = vst [vmem:[#allocation24_spill] sm:$0xff] %v9334_v16  ;;  %v9350_v59 = vpop.f32.mrf.mxu1 }
 0x37e   :  { %v4056_v36 = vadd.f32 %v4024_v15, %v3736_v1  ;;  %v9330_v47 = vadd.f32 %v8800_v2, %v8314_v35  ;;  %v3646_v22 = vrot.slane %v9270_v20, %v8317_v46  ;;  %v6015_v27 = vpop.eup %6014  ;;  %v3065_v53 = vmul.f32 %v3006_v57, %v10836_v42  ;;  %v10838_v57 = vld [vmem:[#allocation36_spill] sm:$0xff]  ;;  %v10841_v42 = vld [vmem:[#allocation213_spill] sm:$0xff]  ;;  %v9358_v16 = vpop.f32.mrf.mxu0 }
 0x37f   :  { %v2777_v40 = vadd.f32 %v2745_v30, %v2457_v38  ;;  %v1762_v32 = vrot.slane %v9321_v6, %v10626_v29  ;;  %v2050_v19 = vrot.slane %v9321_v6, %v7675_v63  ;;  %v3966_v2 = vrot.slane %v9270_v20, %v8335_v7  ;;  %v10839_v15 = vld [vmem:[#allocation76_spill] sm:$0xff]  ;;  %10842 = vst [vmem:[#allocation61_spill] sm:$0xff] %v9358_v16 }
 0x380   :  { %v4923_v48 = vmul.f32 %v4056_v36, %v1422_v10  ;;  %v2370_v24 = vrot.slane %v9321_v6, %v8291_v62  ;;  %v2690_v61 = vrot.slane %v9321_v6, %v8283_v37  ;;  %v3385_v25 = vmul.f32 %v3326_v26, %v10837_v18 }
 0x381   :  { %v3097_v23 = vadd.f32 %v3065_v53, %v2777_v40  ;;  %v1818_v1 = vmul.f32 %v1762_v32, %v10838_v57  ;;  %v2106_v38 = vmul.f32 %v2050_v19, %v10839_v15  ;;  %v6017_v10 = vpop.eup %6016  ;;  %v5079_v30 = vadd.f32 1.0, %v6015_v27  ;;  %v10843_v53 = vld [vmem:[#allocation125_spill] sm:$0xff]  ;;  %v10845_v27 = vld [vmem:[#allocation151_spill] sm:$0xff] }
 0x382   :  { %v9353_v20 = vadd.f32 %v4922_v17, %v9280_v3  ;;  %v1194_v36 = vadd.f32 %v9061_v51, %v8332_v8  ;;  %v3705_v39 = vmul.f32 %v3646_v22, %v10841_v42  ;;  %v2426_v32 = vmul.f32 %v2370_v24, %v10843_v53  ;;  %v9374_v24 = vpop.f32.mrf.mxu1  ;;  %v10849_v53 = vld [vmem:[#allocation116_spill] sm:$0xff] }
 0x383   :  { %v3417_v40 = vadd.f32 %v3385_v25, %v3097_v23  ;;  %v2138_v26 = vadd.f32 %v2106_v38, %v1818_v1  ;;  %v3010_v19 = vrot.slane %v9321_v6, %v8295_v55  ;;  %v9363_v18 = vadd.f32 %v4923_v48, %v1188_v28  ;;  %v10848_v25 = vld [vmem:[#allocation180_spill] sm:$0xff] }
 0x384   :  { %10840 = vst [vmem:[#allocation78_spill] sm:$0xff] %v9353_v20  ;;  %v1427_v3 = vadd.f32 %v8814_v33, %v8314_v35  ;;  %v4025_v17 = vmul.f32 %v3966_v2, %v3837_v41  ;;  %v2746_v57 = vmul.f32 %v2690_v61, %v10845_v27  ;;  %v3330_v22 = vrot.slane %v9321_v6, %v8307_v9  ;;  %v9381_v2 = vpop.f32.mrf.mxu0 }
 0x385   :  { %10844 = vst [vmem:[#allocation108_spill] sm:$0xff] %v9363_v18  ;;  %v3737_v51 = vadd.f32 %v3705_v39, %v3417_v40  ;;  %v2458_v15 = vadd.f32 %v2426_v32, %v2138_v26  ;;  %v9372_v23 = vadd.f32 %v9126_v45, %v8276_v21  ;;  %6024 = vrcp.f32 %v5079_v30  ;;  %10846 = vst [vmem:[#allocation139_spill] sm:$0xff] %v9381_v2 }
 0x386   :  { %v5080_v28 = vadd.f32 1.0, %v6017_v10  ;;  %v5358_v48 = vmul.f32 -1.442695, %v9353_v20  ;;  %v9379_v33 = vadd.f32 %v8823_v44, %v8314_v35  ;;  %v9383_v39 = vpop.eup %6018  ;;  %v3066_v1 = vmul.f32 %v3010_v19, %v10848_v25  ;;  %v10852_v25 = vld [vmem:[#allocation72_spill] sm:$0xff] }
 0x387   :  { %10847 = vst [vmem:[#allocation168_spill] sm:$0xff] %v9383_v39  ;;  %v4057_v61 = vadd.f32 %v4025_v17, %v3737_v51  ;;  %v2778_v41 = vadd.f32 %v2746_v57, %v2458_v15  ;;  %v3650_v45 = vrot.slane %v9321_v6, %v8317_v46  ;;  %v6021_v38 = vpop.eup %6020  ;;  %v5359_v10 = vmul.f32 -1.442695, %v9363_v18  ;;  %v9398_v17 = vpop.f32.mrf.mxu1  ;;  %v10851_v51 = vld [vmem:[#allocation41_spill] sm:$0xff]  ;;  %v10856_v39 = vld [vmem:[#allocation126_spill] sm:$0xff] }
 0x388   :  { %v1766_v30 = vrot.slane %v9372_v23, %v10626_v29  ;;  %v2054_v44 = vrot.slane %v9372_v23, %v7675_v63  ;;  %v2374_v42 = vrot.slane %v9372_v23, %v8291_v62  ;;  %v3386_v32 = vmul.f32 %v3330_v22, %v10849_v53  ;;  %v3841_v57 = vpop.permute.xlu0 %3840 }
 0x389   :  { %v4924_v40 = vmul.f32 %v4057_v61, %v1427_v3  ;;  %v3098_v26 = vadd.f32 %v3066_v1, %v2778_v41  ;;  %v3970_v19 = vrot.slane %v9321_v6, %v8335_v7  ;;  %v9400_v27 = vpop.eup %6022  ;;  %6026 = vpow2.f32 %v5358_v48  ;;  %v9406_v3 = vpop.f32.mrf.mxu0  ;;  %v10855_v6 = vld [vmem:[#allocation214_spill] sm:$0xff] }
 0x38a   :  { %10850 = vst [vmem:[#allocation85_spill] sm:$0xff] %v9400_v27  ;;  %v1819_v15 = vmul.f32 %v1766_v30, %v10851_v51  ;;  %v2107_v18 = vmul.f32 %v2054_v44, %v10852_v25  ;;  %v2694_v20 = vrot.slane %v9372_v23, %v8283_v37  ;;  %10853 = vst [vmem:[#allocation29_spill] sm:$0xff] %v9406_v3  ;;  %v5081_v61 = vadd.f32 1.0, %v6021_v38 }
 0x38b   :  { %v9408_v22 = vadd.f32 %v4924_v40, %v1194_v36  ;;  %v3418_v41 = vadd.f32 %v3386_v32, %v3098_v26  ;;  %v3706_v1 = vmul.f32 %v3650_v45, %v10855_v6  ;;  %v2427_v27 = vmul.f32 %v2374_v42, %v10856_v39  ;;  %v9418_v44 = vpop.f32.mrf.mxu0  ;;  %v9422_v40 = vpop.f32.mrf.mxu1  ;;  %v10858_v45 = vld [vmem:[#allocation154_spill] sm:$0xff] }
 0x38c   :  { %v2139_v53 = vadd.f32 %v2107_v18, %v1819_v15  ;;  %v3014_v48 = vrot.slane %v9372_v23, %v8295_v55  ;;  %v9416_v30 = vadd.f32 %v9170_v34, %v8276_v21  ;;  %10857 = vst [vmem:[#allocation202_spill] sm:$0xff] %v9418_v44  ;;  %6028 = vpow2.f32 %v5359_v10  ;;  %v10860_v15 = vld [vmem:[#allocation179_spill] sm:$0xff] }
 0x38d   :  { %10854 = vst [vmem:[#allocation58_spill] sm:$0xff] %v9408_v22  ;;  %v3738_v51 = vadd.f32 %v3706_v1, %v3418_v41  ;;  %v4026_v38 = vmul.f32 %v3970_v19, %v3841_v57  ;;  %v3334_v36 = vrot.slane %v9372_v23, %v8307_v9  ;;  %6030 = vrcp.f32 %v5080_v28  ;;  %v9427_v26 = vpop.f32.mrf.mxu0  ;;  %v10862_v41 = vld [vmem:[#allocation113_spill] sm:$0xff]  ;;  %v10863_v1 = vld [vmem:[#allocation38_spill] sm:$0xff] }
 0x38e   :  { %v1200_v18 = vadd.f32 %v9104_v52, %v8332_v8  ;;  %v2459_v39 = vadd.f32 %v2427_v27, %v2139_v53  ;;  %v2747_v42 = vmul.f32 %v2694_v20, %v10858_v45  ;;  %10859 = vst [vmem:[#allocation110_spill] sm:$0xff] %v9427_v26  ;;  %v5360_v34 = vmul.f32 -1.442695, %v9408_v22 }
 0x38f   :  { %v4058_v32 = vadd.f32 %v4026_v38, %v3738_v51  ;;  %v3654_v10 = vrot.slane %v9372_v23, %v8317_v46  ;;  %v1770_v19 = vrot.slane %v9416_v30, %v10626_v29  ;;  %v3067_v28 = vmul.f32 %v3014_v48, %v10860_v15  ;;  %v9439_v27 = vpop.f32.mrf.mxu0  ;;  %v9444_v51 = vpop.f32.mrf.mxu1 }
 0x390   :  { %v2779_v57 = vadd.f32 %v2747_v42, %v2459_v39  ;;  %v2058_v52 = vrot.slane %v9416_v30, %v7675_v63  ;;  %v2378_v20 = vrot.slane %v9416_v30, %v8291_v62  ;;  %10861 = vst [vmem:[#allocation142_spill] sm:$0xff] %v9439_v27  ;;  %6032 = vrcp.f32 %v5081_v61  ;;  %v10864_v39 = vld [vmem:[#allocation80_spill] sm:$0xff] }
 0x391   :  { %v4925_v25 = vmul.f32 %v4058_v32, %v9330_v47  ;;  %v3387_v6 = vmul.f32 %v3334_v36, %v10862_v41  ;;  %v1820_v53 = vmul.f32 %v1770_v19, %v10863_v1  ;;  %v3974_v48 = vrot.slane %v9372_v23, %v8335_v7  ;;  %v9451_v15 = vpop.f32.mrf.mxu0  ;;  %v3845_v36 = vpop.permute.xlu1 %3844  ;;  %v10867_v32 = vld [vmem:[#allocation215_spill] sm:$0xff]  ;;  %v10883_v27 = vld [vmem:[#allocation216_spill] sm:$0xff] }
 0x392   :  { %v3099_v38 = vadd.f32 %v3067_v28, %v2779_v57  ;;  %v2108_v45 = vmul.f32 %v2058_v52, %v10864_v39  ;;  %v2698_v42 = vrot.slane %v9416_v30, %v8283_v37  ;;  %10865 = vst [vmem:[#allocation167_spill] sm:$0xff] %v9451_v15  ;;  %v9453_v61 = vpop.eup %6024  ;;  %6034 = vpow2.f32 %v5360_v34  ;;  %v10868_v52 = vld [vmem:[#allocation127_spill] sm:$0xff] }
 0x393   :  { %10866 = vst [vmem:[#allocation26_spill] sm:$0xff] %v9453_v61  ;;  %v1437_v47 = vadd.f32 %v8834_v14, %v8314_v35  ;;  %v3707_v19 = vmul.f32 %v3654_v10, %v10867_v32  ;;  %v3018_v57 = vrot.slane %v9416_v30, %v8295_v55  ;;  %v2428_v41 = vmul.f32 %v2378_v20, %v10868_v52  ;;  %v9463_v39 = vpop.f32.mrf.mxu0  ;;  %v10875_v61 = vld [vmem:[#allocation182_spill] sm:$0xff] }
 0x394   :  { %v3419_v23 = vadd.f32 %v3387_v6, %v3099_v38  ;;  %v2140_v28 = vadd.f32 %v2108_v45, %v1820_v53  ;;  %v3338_v1 = vrot.slane %v9416_v30, %v8307_v9  ;;  %10869 = vst [vmem:[#allocation63_spill] sm:$0xff] %v9463_v39  ;;  %v9465_v22 = vadd.f32 %v4925_v25, %v1200_v18  ;;  %v9477_v6 = vpop.f32.mrf.mxu1  ;;  %v10872_v45 = vld [vmem:[#allocation153_spill] sm:$0xff] }
 0x395   :  { %v9469_v14 = vadd.f32 %v8846_v12, %v8314_v35  ;;  %v1206_v34 = vadd.f32 %v9150_v4, %v8332_v8  ;;  %v9475_v10 = vadd.f32 %v9214_v49, %v8276_v21  ;;  %10871 = vst [vmem:[#allocation111_spill] sm:$0xff] %v9477_v6  ;;  %v4027_v53 = vmul.f32 %v3974_v48, %v3845_v36  ;;  %v9480_v18 = vpop.f32.mrf.mxu0  ;;  %v10874_v12 = vld [vmem:[#allocation97_spill] sm:$0xff] }
 0x396   :  { %10870 = vst [vmem:[#allocation81_spill] sm:$0xff] %v9465_v22  ;;  %v3739_v20 = vadd.f32 %v3707_v19, %v3419_v23  ;;  %v2460_v38 = vadd.f32 %v2428_v41, %v2140_v28  ;;  %v2748_v32 = vmul.f32 %v2698_v42, %v10872_v45  ;;  %10873 = vst [vmem:[#allocation203_spill] sm:$0xff] %v9480_v18  ;;  %v6027_v25 = vpop.eup %6026  ;;  %v10876_v36 = vld [vmem:[#allocation77_spill] sm:$0xff]  ;;  %v5361_v41 = vmul.f32 -1.442695, %v9465_v22  ;;  %v9502_v18 = vpop.f32.mrf.mxu1 }
 0x397   :  { %v9484_v52 = vadd.f32 %v10874_v12, %v8314_v35  ;;  %v3068_v4 = vmul.f32 %v3018_v57, %v10875_v61  ;;  %v3658_v49 = vrot.slane %v9416_v30, %v8317_v46  ;;  %v1774_v39 = vrot.slane %v9475_v10, %v10626_v29  ;;  %v9494_v28 = vpop.f32.mrf.mxu0  ;;  %v10878_v57 = vld [vmem:[#allocation43_spill] sm:$0xff] }
 0x398   :  { %v4059_v19 = vadd.f32 %v4027_v53, %v3739_v20  ;;  %v2780_v48 = vadd.f32 %v2748_v32, %v2460_v38  ;;  %v3388_v23 = vmul.f32 %v3338_v1, %v10876_v36  ;;  %v2062_v42 = vrot.slane %v9475_v10, %v7675_v63  ;;  %10877 = vst [vmem:[#allocation141_spill] sm:$0xff] %v9494_v28  ;;  %v3849_v1 = vpop.permute.xlu0 %3848  ;;  %v10879_v32 = vld [vmem:[#allocation75_spill] sm:$0xff] }
 0x399   :  { %v3978_v61 = vrot.slane %v9416_v30, %v8335_v7  ;;  %v1821_v45 = vmul.f32 %v1774_v39, %v10878_v57  ;;  %v2382_v12 = vrot.slane %v9475_v10, %v8291_v62  ;;  %v6029_v20 = vpop.eup %6028  ;;  %v2702_v28 = vrot.slane %v9475_v10, %v8283_v37  ;;  %v9507_v22 = vpop.f32.mrf.mxu0  ;;  %v10882_v39 = vld [vmem:[#allocation119_spill] sm:$0xff] }
 0x39a   :  { %v4926_v53 = vmul.f32 %v4059_v19, %v1437_v47  ;;  %v3100_v38 = vadd.f32 %v3068_v4, %v2780_v48  ;;  %v2109_v36 = vmul.f32 %v2062_v42, %v10879_v32  ;;  %10880 = vst [vmem:[#allocation170_spill] sm:$0xff] %v9507_v22  ;;  %v9509_v15 = vpop.eup %6030  ;;  %v5082_v30 = vadd.f32 1.0, %v6027_v25  ;;  %v10885_v42 = vld [vmem:[#allocation128_spill] sm:$0xff] }
 0x39b   :  { %10881 = vst [vmem:[#allocation88_spill] sm:$0xff] %v9509_v15  ;;  %v9513_v57 = vadd.f32 %v10882_v39, %v8314_v35  ;;  %v3708_v26 = vmul.f32 %v3658_v49, %v10883_v27  ;;  %v3022_v47 = vrot.slane %v9475_v10, %v8295_v55  ;;  %v2429_v32 = vmul.f32 %v2382_v12, %v10885_v42  ;;  %v9521_v44 = vpop.f32.mrf.mxu0  ;;  %v9527_v15 = vpop.f32.mrf.mxu1 }
 0x39c   :  { %v9518_v4 = vadd.f32 %v4926_v53, %v1206_v34  ;;  %v3420_v19 = vadd.f32 %v3388_v23, %v3100_v38  ;;  %v2141_v48 = vadd.f32 %v2109_v36, %v1821_v45  ;;  %10886 = vst [vmem:[#allocation60_spill] sm:$0xff] %v9521_v44  ;;  %v5083_v22 = vadd.f32 1.0, %v6029_v20  ;;  %v10888_v53 = vld [vmem:[#allocation156_spill] sm:$0xff]  ;;  %v10891_v20 = vld [vmem:[#allocation181_spill] sm:$0xff] }
 0x39d   :  { %6036 = vpow2.f32 %v5361_v41  ;;  %v4028_v25 = vmul.f32 %v3978_v61, %v3849_v1  ;;  %v9525_v39 = vadd.f32 %v9257_v43, %v8276_v21  ;;  %v9529_v27 = vpop.eup %6032  ;;  %v2749_v23 = vmul.f32 %v2702_v28, %v10888_v53  ;;  %v9534_v12 = vpop.f32.mrf.mxu0  ;;  %v10890_v43 = vld [vmem:[#allocation134_spill] sm:$0xff] }
 0x39e   :  { %10884 = vst [vmem:[#allocation31_spill] sm:$0xff] %v9518_v4  ;;  %10887 = vst [vmem:[#allocation204_spill] sm:$0xff] %v9529_v27  ;;  %v3740_v49 = vadd.f32 %v3708_v26, %v3420_v19  ;;  %v2461_v34 = vadd.f32 %v2429_v32, %v2141_v48  ;;  %v3342_v45 = vrot.slane %v9475_v10, %v8307_v9  ;;  %6038 = vrcp.f32 %v5082_v30  ;;  %v9556_v32 = vpop.f32.mrf.mxu1  ;;  %v10893_v53 = vld [vmem:[#allocation194_spill] sm:$0xff] }
 0x39f   :  { %10889 = vst [vmem:[#allocation114_spill] sm:$0xff] %v9534_v12  ;;  %v1212_v41 = vadd.f32 %v9192_v56, %v8332_v8  ;;  %v9540_v61 = vadd.f32 %v10890_v43, %v8314_v35  ;;  %v3069_v1 = vmul.f32 %v3022_v47, %v10891_v20  ;;  %v6035_v38 = vpop.eup %6034  ;;  %v5362_v26 = vmul.f32 -1.442695, %v9518_v4  ;;  %v9546_v48 = vpop.f32.mrf.mxu0  ;;  %v10894_v43 = vld [vmem:[#allocation40_spill] sm:$0xff]  ;;  %v10895_v4 = vld [vmem:[#allocation83_spill] sm:$0xff] }
 0x3a0   :  { %v4060_v36 = vadd.f32 %v4028_v25, %v3740_v49  ;;  %v2781_v28 = vadd.f32 %v2749_v23, %v2461_v34  ;;  %v3662_v19 = vrot.slane %v9475_v10, %v8317_v46  ;;  %10892 = vst [vmem:[#allocation144_spill] sm:$0xff] %v9546_v48  ;;  %v3982_v30 = vrot.slane %v9475_v10, %v8335_v7  ;;  %v3853_v49 = vpop.permute.xlu1 %3852 }
 0x3a1   :  { %v1778_v56 = vrot.slane %v9525_v39, %v10626_v29  ;;  %v2066_v42 = vrot.slane %v9525_v39, %v7675_v63  ;;  %v2386_v47 = vrot.slane %v9525_v39, %v8291_v62  ;;  %6040 = vrcp.f32 %v5083_v22  ;;  %v10896_v22 = vld [vmem:[#allocation217_spill] sm:$0xff] }
 0x3a2   :  { %v4927_v25 = vmul.f32 %v4060_v36, %v9379_v33  ;;  %v3101_v34 = vadd.f32 %v3069_v1, %v2781_v28  ;;  %v3389_v23 = vmul.f32 %v3342_v45, %v10893_v53  ;;  %v1218_v10 = vadd.f32 %v9237_v54, %v8332_v8  ;;  %v9570_v33 = vld [vmem:[%s10335_s9] sm:$0x7]  ;;  %v9572_v45 = vpop.f32.mrf.mxu0  ;;  %v10898_v36 = vld [vmem:[#allocation129_spill] sm:$0xff]  ;;  %s6398_s9 = smov [#allocation10]  }
 0x3a3   :  { %v1822_v20 = vmul.f32 %v1778_v56, %v10894_v43  ;;  %v2110_v27 = vmul.f32 %v2066_v42, %v10895_v4  ;;  %v2706_v48 = vrot.slane %v9525_v39, %v8283_v37  ;;  %v5084_v12 = vadd.f32 1.0, %v6035_v38  ;;  %10897 = vst [vmem:[#allocation169_spill] sm:$0xff] %v9572_v45  ;;  %v9577_v56 = vpop.f32.mrf.mxu1  ;;  %v10916_v45 = vld [vmem:[#allocation184_spill] sm:$0xff]  ;;  %s5259_s27 = sshll.u32 %s6398_s9, 4  ;;  %s5260_s27 = int_to_ptr.vmem [resolvable:$true] %s5259_s27 }
 0x3a4   :  { %6042 = vpow2.f32 %v5362_v26  ;;  %v3421_v44 = vadd.f32 %v3389_v23, %v3101_v34  ;;  %v3709_v6 = vmul.f32 %v3662_v19, %v10896_v22  ;;  %v4029_v54 = vmul.f32 %v3982_v30, %v3853_v49  ;;  %v10900_v49 = vld [vmem:[#allocation155_spill] sm:$0xff]  ;;  %s6351_s28 = scalar_lea.vmem %s5260_s27, 4096  ;;  %p6356_p7 = scmp.lt.s32.totalorder %s5260_s27, %s5260_s27 }
 0x3a5   :  { %v2142_v1 = vadd.f32 %v2110_v27, %v1822_v20  ;;  %v2430_v28 = vmul.f32 %v2386_v47, %v10898_v36  ;;  %v3026_v4 = vrot.slane %v9525_v39, %v8295_v55  ;;  %v9579_v38 = vadd.f32 %v4927_v25, %v1212_v41  ;;  %v9602_v25 = vpop.f32.mrf.mxu0  ;;  %v10902_v34 = vld [vmem:[#allocation183_spill] sm:$0xff]  ;;  %p6352_p6 = scmp.ne.s32.totalorder %s5260_s27, %s6351_s28  ;;  %p6357_p8 = scmp.lt.s32.totalorder %s6351_s28, %s6351_s28 }
 0x3a6   :  { %v3741_v26 = vadd.f32 %v3709_v6, %v3421_v44  ;;  %v3346_v19 = vrot.slane %v9525_v39, %v8307_v9  ;;  %v9585_v42 = vadd.f32 %v9309_v50, %v8276_v21  ;;  %v9589_v27 = vadd.f32 %v8906_v5, %v8314_v35  ;;  %10901 = vst [vmem:[#allocation65_spill] sm:$0xff] %v9602_v25  ;;  %v10903_v22 = vld [vmem:[#allocation91_spill] sm:$0xff] }
 0x3a7   :  { %10899 = vst [vmem:[#allocation28_spill] sm:$0xff] %v9579_v38  ;;  %v9593_v30 = vrot.slane %v9570_v33, %v10626_v29  ;;  %v2462_v47 = vadd.f32 %v2430_v28, %v2142_v1  ;;  %v2750_v41 = vmul.f32 %v2706_v48, %v10900_v49  ;;  %6044 = vrcp.f32 %v5084_v12  ;;  %v9609_v12 = vpop.f32.mrf.mxu1  ;;  %v10904_v28 = vld [vmem:[#allocation45_spill] sm:$0xff]  ;;  %p6358_p9 = por %p6357_p8, %p6356_p7 }
 0x3a8   :  { %v4061_v44 = vadd.f32 %v4029_v54, %v3741_v26  ;;  %v9598_v6 = vadd.f32 %v9284_v58, %v8332_v8  ;;  %v3666_v50 = vrot.slane %v9525_v39, %v8317_v46  ;;  %v3070_v53 = vmul.f32 %v3026_v4, %v10902_v34  ;;  %v10905_v26 = vld [vmem:[#allocation79_spill] sm:$0xff] }
 0x3a9   :  { %v2782_v5 = vadd.f32 %v2750_v41, %v2462_v47  ;;  %v1782_v23 = vrot.slane %v9585_v42, %v10626_v29  ;;  %v2070_v48 = vrot.slane %v9585_v42, %v7675_v63  ;;  %v5363_v58 = vmul.f32 -1.442695, %v9579_v38  ;;  %p6359_p10 = pnand %p6358_p9, %p6352_p6 }
 0x3aa   :  { %v6037_v43 = vpop.eup %6036  ;;  %v4928_v20 = vmul.f32 %v4061_v44, %v9484_v52  ;;  %v3390_v54 = vmul.f32 %v3346_v19, %v10903_v22  ;;  %v2390_v1 = vrot.slane %v9585_v42, %v8291_v62  ;;  %v2710_v49 = vrot.slane %v9585_v42, %v8283_v37  ;;  %v10908_v19 = vld [vmem:[#allocation47_spill] sm:$0xff] }
 0x3ab   :  { %v3102_v36 = vadd.f32 %v3070_v53, %v2782_v5  ;;  %v1823_v4 = vmul.f32 %v1782_v23, %v10904_v28  ;;  %v2111_v47 = vmul.f32 %v2070_v48, %v10905_v26  ;;  %v9620_v41 = vpop.eup %6038  ;;  %v9626_v52 = vrot.slane %v9570_v33, %v7675_v63  ;;  %v9631_v53 = vpop.f32.mrf.mxu0  ;;  %v10910_v28 = vld [vmem:[#allocation130_spill] sm:$0xff] }
 0x3ac   :  { %10906 = vst [vmem:[#allocation191_spill] sm:$0xff] %v9620_v41  ;;  %v9622_v34 = vadd.f32 %v4928_v20, %v1218_v10  ;;  %v3710_v44 = vmul.f32 %v3666_v50, %v10908_v19  ;;  %v3986_v5 = vrot.slane %v9525_v39, %v8335_v7  ;;  %10909 = vst [vmem:[#allocation205_spill] sm:$0xff] %v9631_v53  ;;  %v3857_v23 = vpop.permute.xlu0 %3856  ;;  %v9636_v20 = vpop.f32.mrf.mxu1  ;;  %v5085_v38 = vadd.f32 1.0, %v6037_v43 }
 0x3ad   :  { %v3422_v48 = vadd.f32 %v3390_v54, %v3102_v36  ;;  %v2143_v22 = vadd.f32 %v2111_v47, %v1823_v4  ;;  %v2431_v26 = vmul.f32 %v2390_v1, %v10910_v28  ;;  %v3030_v10 = vrot.slane %v9585_v42, %v8295_v55  ;;  %v10912_v4 = vld [vmem:[#allocation158_spill] sm:$0xff] }
 0x3ae   :  { %10907 = vst [vmem:[#allocation115_spill] sm:$0xff] %v9622_v34  ;;  %6046 = vpow2.f32 %v5363_v58  ;;  %v3350_v50 = vrot.slane %v9585_v42, %v8307_v9  ;;  %v9642_v39 = vadd.f32 %v9350_v59, %v8276_v21  ;;  %v9644_v19 = vpop.eup %6040  ;;  %v9648_v54 = vadd.f32 %v8915_v11, %v9593_v30  ;;  %v10913_v58 = vld [vmem:[#allocation196_spill] sm:$0xff] }
 0x3af   :  { %10911 = vst [vmem:[#allocation143_spill] sm:$0xff] %v9644_v19  ;;  %v3742_v1 = vadd.f32 %v3710_v44, %v3422_v48  ;;  %v2463_v36 = vadd.f32 %v2431_v26, %v2143_v22  ;;  %v2751_v47 = vmul.f32 %v2710_v49, %v10912_v4  ;;  %v5364_v43 = vmul.f32 -1.442695, %v9622_v34  ;;  %v10914_v59 = vld [vmem:[#allocation136_spill] sm:$0xff]  ;;  %v9660_v19 = vpop.f32.mrf.mxu0  ;;  %v9667_v22 = vpop.f32.mrf.mxu1 }
 0x3b0   :  { %v9654_v28 = vadd.f32 %v10913_v58, %v9626_v52  ;;  %v4030_v41 = vmul.f32 %v3986_v5, %v3857_v23  ;;  %v9658_v53 = vadd.f32 %v10914_v59, %v9593_v30  ;;  %10915 = vst [vmem:[#allocation172_spill] sm:$0xff] %v9660_v19  ;;  %v3071_v44 = vmul.f32 %v3030_v10, %v10916_v45  ;;  %v10917_v5 = vld [vmem:[#allocation84_spill] sm:$0xff]  ;;  %v10918_v10 = vld [vmem:[#allocation42_spill] sm:$0xff]  ;;  %v3861_v34 = vpop.permute.xlu1 %3860 }
 0x3b1   :  { %v6043_v25 = vpop.eup %6042  ;;  %v2783_v11 = vadd.f32 %v2751_v47, %v2463_v36  ;;  %v3670_v49 = vrot.slane %v9585_v42, %v8317_v46  ;;  %v1786_v48 = vrot.slane %v9642_v39, %v10626_v29  ;;  %6048 = vrcp.f32 %v5085_v38  ;;  %v10919_v19 = vld [vmem:[#allocation86_spill] sm:$0xff] }
 0x3b2   :  { %v3391_v23 = vmul.f32 %v3350_v50, %v10917_v5  ;;  %v2074_v26 = vrot.slane %v9642_v39, %v7675_v63  ;;  %v2394_v4 = vrot.slane %v9642_v39, %v8291_v62  ;;  %v4062_v36 = vadd.f32 %v4030_v41, %v3742_v1  ;;  %v9680_v5 = vpop.f32.mrf.mxu0  ;;  %v10922_v1 = vld [vmem:[#allocation20_spill] sm:$0xff] }
 0x3b3   :  { %v3103_v47 = vadd.f32 %v3071_v44, %v2783_v11  ;;  %v3990_v45 = vrot.slane %v9585_v42, %v8335_v7  ;;  %v1824_v58 = vmul.f32 %v1786_v48, %v10918_v10  ;;  %v5086_v59 = vadd.f32 1.0, %v6043_v25  ;;  %10920 = vst [vmem:[#allocation95_spill] sm:$0xff] %v9680_v5  ;;  %v10923_v25 = vld [vmem:[#allocation218_spill] sm:$0xff]  ;;  %v9691_v44 = vpop.f32.mrf.mxu1  ;;  %v10924_v48 = vld [vmem:[#allocation131_spill] sm:$0xff] }
 0x3b4   :  { %6050 = vpow2.f32 %v5364_v43  ;;  %v2112_v38 = vmul.f32 %v2074_v26, %v10919_v19  ;;  %v2714_v50 = vrot.slane %v9642_v39, %v8283_v37  ;;  %v9682_v3 = vpop.eup %6044  ;;  %v1230_v41 = vadd.f32 %v9326_v0, %v8332_v8 }
 0x3b5   :  { %10921 = vst [vmem:[#allocation33_spill] sm:$0xff] %v9682_v3  ;;  %v9688_v42 = vadd.f32 %v10922_v1, %v9626_v52  ;;  %v3423_v11 = vadd.f32 %v3391_v23, %v3103_v47  ;;  %v3711_v43 = vmul.f32 %v3670_v49, %v10923_v25  ;;  %v2432_v26 = vmul.f32 %v2394_v4, %v10924_v48  ;;  %v10925_v23 = vld [vmem:[#allocation68_spill] sm:$0xff]  ;;  %v9708_v25 = vpop.f32.mrf.mxu0 }
 0x3b6   :  { %v2144_v19 = vadd.f32 %v2112_v38, %v1824_v58  ;;  %v3034_v10 = vrot.slane %v9642_v39, %v8295_v55  ;;  %v9698_v3 = vadd.f32 %v9398_v17, %v8276_v21  ;;  %v4929_v0 = vmul.f32 %v4062_v36, %v9469_v14  ;;  %v10926_v58 = vld [vmem:[#allocation157_spill] sm:$0xff]  ;;  %10927 = vst [vmem:[#allocation62_spill] sm:$0xff] %v9708_v25  ;;  %v9718_v36 = vpop.f32.mrf.mxu1 }
 0x3b7   :  { %v3743_v5 = vadd.f32 %v3711_v43, %v3423_v11  ;;  %v4031_v1 = vmul.f32 %v3990_v45, %v3861_v34  ;;  %v9703_v47 = vadd.f32 %v10925_v23, %v9593_v30  ;;  %6052 = vrcp.f32 %v5086_v59  ;;  %v10928_v59 = vld [vmem:[#allocation185_spill] sm:$0xff]  ;;  %v9739_v35 = vpop.f32.mrf.mxu0 }
 0x3b8   :  { %v2464_v49 = vadd.f32 %v2432_v26, %v2144_v19  ;;  %v2752_v38 = vmul.f32 %v2714_v50, %v10926_v58  ;;  %v3354_v4 = vrot.slane %v9642_v39, %v8307_v9  ;;  %v9712_v17 = vadd.f32 %v9374_v24, %v8332_v8  ;;  %v10930_v19 = vld [vmem:[#allocation48_spill] sm:$0xff]  ;;  %10934 = vst [vmem:[#allocation117_spill] sm:$0xff] %v9739_v35  ;;  %v9745_v16 = vpop.f32.mrf.mxu1 }
 0x3b9   :  { %v4063_v48 = vadd.f32 %v4031_v1, %v3743_v5  ;;  %v1790_v14 = vrot.slane %v9698_v3, %v10626_v29  ;;  %v2078_v34 = vrot.slane %v9698_v3, %v7675_v63  ;;  %v3072_v50 = vmul.f32 %v3034_v10, %v10928_v59  ;;  %v10931_v1 = vld [vmem:[#allocation82_spill] sm:$0xff]  ;;  %v10933_v59 = vld [vmem:[#allocation112_spill] sm:$0xff] }
 0x3ba   :  { %v2784_v45 = vadd.f32 %v2752_v38, %v2464_v49  ;;  %v3674_v11 = vrot.slane %v9642_v39, %v8317_v46  ;;  %v2398_v5 = vrot.slane %v9698_v3, %v8291_v62  ;;  %v9726_v24 = vadd.f32 %v4929_v0, %v9598_v6  ;;  %v10932_v49 = vld [vmem:[#allocation101_spill] sm:$0xff]  ;;  %v3865_v0 = vpop.permute.xlu0 %3864 }
 0x3bb   :  { %v6047_v43 = vpop.eup %6046  ;;  %v1825_v26 = vmul.f32 %v1790_v14, %v10930_v19  ;;  %v2113_v23 = vmul.f32 %v2078_v34, %v10931_v1  ;;  %v2718_v58 = vrot.slane %v9698_v3, %v8283_v37  ;;  %v9734_v10 = vadd.f32 %v10932_v49, %v9626_v52  ;;  %v10935_v34 = vld [vmem:[#allocation132_spill] sm:$0xff] }
 0x3bc   :  { %10929 = vst [vmem:[#allocation206_spill] sm:$0xff] %v9726_v24  ;;  %v3104_v38 = vadd.f32 %v3072_v50, %v2784_v45  ;;  %v3392_v25 = vmul.f32 %v3354_v4, %v10933_v59  ;;  %v3994_v2 = vrot.slane %v9642_v39, %v8335_v7  ;;  %v4930_v6 = vmul.f32 %v4063_v48, %v9540_v61  ;;  %v10936_v50 = vld [vmem:[#allocation219_spill] sm:$0xff] }
 0x3bd   :  { %v2145_v14 = vadd.f32 %v2113_v23, %v1825_v26  ;;  %v2433_v19 = vmul.f32 %v2398_v5, %v10935_v34  ;;  %v3038_v1 = vrot.slane %v9698_v3, %v8295_v55  ;;  %v5087_v49 = vadd.f32 1.0, %v6047_v43  ;;  %v10938_v26 = vld [vmem:[#allocation160_spill] sm:$0xff] }
 0x3be   :  { %v3424_v45 = vadd.f32 %v3392_v25, %v3104_v38  ;;  %v3712_v4 = vmul.f32 %v3674_v11, %v10936_v50  ;;  %v9750_v39 = vadd.f32 %v9444_v51, %v8276_v21  ;;  %v9752_v59 = vpop.eup %6048  ;;  %v5365_v61 = vmul.f32 -1.442695, %v9726_v24  ;;  %v9764_v51 = vpop.f32.mrf.mxu0  ;;  %v10940_v50 = vld [vmem:[#allocation186_spill] sm:$0xff] }
 0x3bf   :  { %10937 = vst [vmem:[#allocation146_spill] sm:$0xff] %v9752_v59  ;;  %v4217_v48 = vadd.f32 %v9045_v60, %v9593_v30  ;;  %v2465_v5 = vadd.f32 %v2433_v19, %v2145_v14  ;;  %v2753_v23 = vmul.f32 %v2718_v58, %v10938_v26  ;;  %v4032_v35 = vmul.f32 %v3994_v2, %v3865_v0  ;;  %v9771_v14 = vpop.f32.mrf.mxu1  ;;  %v10943_v26 = vld [vmem:[#allocation89_spill] sm:$0xff] }
 0x3c0   :  { %v3744_v34 = vadd.f32 %v3712_v4, %v3424_v45  ;;  %v9760_v25 = vadd.f32 %v9422_v40, %v8332_v8  ;;  %v3358_v21 = vrot.slane %v9698_v3, %v8307_v9  ;;  %v9766_v43 = vadd.f32 %v4930_v6, %v1230_v41  ;;  %v3869_v4 = vpop.permute.xlu1 %3868 }
 0x3c1   :  { %v6051_v11 = vpop.eup %6050  ;;  %v2785_v38 = vadd.f32 %v2753_v23, %v2465_v5  ;;  %v3073_v60 = vmul.f32 %v3038_v1, %v10940_v50  ;;  %v1794_v58 = vrot.slane %v9750_v39, %v10626_v29  ;;  %6054 = vrcp.f32 %v5087_v49  ;;  %v10941_v1 = vld [vmem:[#allocation44_spill] sm:$0xff]  ;;  %v10942_v5 = vld [vmem:[#allocation98_spill] sm:$0xff] }
 0x3c2   :  { %10939 = vst [vmem:[#allocation171_spill] sm:$0xff] %v9766_v43  ;;  %v3678_v2 = vrot.slane %v9698_v3, %v8317_v46  ;;  %v2082_v40 = vrot.slane %v9750_v39, %v7675_v63  ;;  %v2402_v0 = vrot.slane %v9750_v39, %v8291_v62  ;;  %v4064_v41 = vadd.f32 %v4032_v35, %v3744_v34  ;;  %v9786_v63 = vpop.f32.mrf.mxu0 }
 0x3c3   :  { %v3105_v6 = vadd.f32 %v3073_v60, %v2785_v38  ;;  %v3998_v19 = vrot.slane %v9698_v3, %v8335_v7  ;;  %v1826_v45 = vmul.f32 %v1794_v58, %v10941_v1  ;;  %v5088_v29 = vadd.f32 1.0, %v6051_v11  ;;  %v10945_v38 = vld [vmem:[#allocation50_spill] sm:$0xff]  ;;  %v10946_v58 = vld [vmem:[#allocation133_spill] sm:$0xff] }
 0x3c4   :  { %v3393_v49 = vmul.f32 %v3358_v21, %v10942_v5  ;;  %v2114_v23 = vmul.f32 %v2082_v40, %v10943_v26  ;;  %v2722_v50 = vrot.slane %v9750_v39, %v8283_v37  ;;  %v9788_v24 = vpop.eup %6052  ;;  %6056 = vpow2.f32 %v5365_v61  ;;  %v9797_v21 = vpop.f32.mrf.mxu1 }
 0x3c5   :  { %10944 = vst [vmem:[#allocation92_spill] sm:$0xff] %v9788_v24  ;;  %v9791_v35 = vmul.f32 -1.442695, %v9766_v43  ;;  %v4219_v3 = vadd.f32 %v9067_v31, %v9626_v52  ;;  %v3042_v34 = vrot.slane %v9750_v39, %v8295_v55  ;;  %v3713_v60 = vmul.f32 %v3678_v2, %v10945_v38  ;;  %v10947_v55 = vld [vmem:[#allocation198_spill] sm:$0xff] }
 0x3c6   :  { %v3425_v11 = vadd.f32 %v3393_v49, %v3105_v6  ;;  %v2146_v37 = vadd.f32 %v2114_v23, %v1826_v45  ;;  %v2434_v40 = vmul.f32 %v2402_v0, %v10946_v58  ;;  %v4931_v1 = vmul.f32 %v4064_v41, %v9513_v57  ;;  %v10948_v49 = vld [vmem:[#allocation159_spill] sm:$0xff]  ;;  %v9811_v45 = vpop.f32.mrf.mxu0  ;;  %v10949_v0 = vld [vmem:[#allocation54_spill] sm:$0xff] }
 0x3c7   :  { %v4033_v61 = vmul.f32 %v3998_v19, %v3869_v4  ;;  %v3362_v5 = vrot.slane %v9750_v39, %v8307_v9  ;;  %v9806_v31 = vrot.slane %v9570_v33, %v8291_v62  ;;  %6058 = vrcp.f32 %v5088_v29  ;;  %v10950_v41 = vld [vmem:[#allocation187_spill] sm:$0xff]  ;;  %v9820_v33 = vpop.f32.mrf.mxu1 }
 0x3c8   :  { %v4223_v26 = vadd.f32 %v10947_v55, %v9593_v30  ;;  %v2466_v6 = vadd.f32 %v2434_v40, %v2146_v37  ;;  %v2754_v2 = vmul.f32 %v2722_v50, %v10948_v49  ;;  %v4225_v57 = vadd.f32 %v10949_v0, %v9626_v52 }
 0x3c9   :  { %v3074_v19 = vmul.f32 %v3042_v34, %v10950_v41  ;;  %v4461_v9 = vadd.f32 %v9502_v18, %v9806_v31  ;;  %v4456_v62 = vadd.f32 %v9527_v15, %v9806_v31  ;;  %v3745_v29 = vadd.f32 %v3713_v60, %v3425_v11  ;;  %v10952_v34 = vld [vmem:[#allocation195_spill] sm:$0xff]  ;;  %v10953_v11 = vld [vmem:[#allocation138_spill] sm:$0xff] }
 0x3ca   :  { %v2786_v4 = vadd.f32 %v2754_v2, %v2466_v6  ;;  %v3682_v23 = vrot.slane %v9750_v39, %v8317_v46  ;;  %v4471_v50 = vadd.f32 %v9556_v32, %v9806_v31  ;;  %v9827_v38 = vadd.f32 %v4931_v1, %v9712_v17  ;;  %v9838_v32 = vpop.f32.mrf.mxu0  ;;  %v3873_v17 = vpop.permute.xlu0 %3872 }
 0x3cb   :  { %v3394_v37 = vmul.f32 %v3362_v5, %v10952_v34  ;;  %v4615_v18 = vmul.f32 %v4461_v9, %v9658_v53  ;;  %v4614_v58 = vmul.f32 %v4456_v62, %v9648_v54  ;;  %v4002_v15 = vrot.slane %v9750_v39, %v8335_v7  ;;  %v9848_v54 = vpop.f32.mrf.mxu1 }
 0x3cc   :  { %10951 = vst [vmem:[#allocation30_spill] sm:$0xff] %v9827_v38  ;;  %v4229_v60 = vadd.f32 %v10953_v11, %v9593_v30  ;;  %v4617_v40 = vmul.f32 %v4471_v50, %v4217_v48  ;;  %v4466_v46 = vadd.f32 %v9577_v56, %v9806_v31  ;;  %v3106_v1 = vadd.f32 %v3074_v19, %v2786_v4  ;;  %v10954_v48 = vld [vmem:[#allocation87_spill] sm:$0xff] }
 0x3cd   :  { %v9841_v5 = vadd.f32 %v4615_v18, %v9688_v42  ;;  %v9844_v53 = vadd.f32 %v4614_v58, %v9654_v28  ;;  %v4481_v7 = vadd.f32 %v9609_v12, %v9806_v31  ;;  %v4065_v39 = vadd.f32 %v4033_v61, %v3745_v29  ;;  %v10956_v28 = vld [vmem:[#allocation59_spill] sm:$0xff]  ;;  %v10957_v61 = vld [vmem:[#allocation189_spill] sm:$0xff]  ;;  %v9873_v50 = vpop.f32.mrf.mxu1 }
 0x3ce   :  { %v3714_v55 = vmul.f32 %v3682_v23, %v10954_v48  ;;  %v9851_v6 = vadd.f32 %v4617_v40, %v4219_v3  ;;  %v4616_v56 = vmul.f32 %v4466_v46, %v9703_v47  ;;  %v9854_v49 = vpop.eup %6054  ;;  %v5367_v42 = vmul.f32 -1.442695, %v9827_v38  ;;  %v9866_v47 = vpop.f32.mrf.mxu0  ;;  %v10960_v11 = vld [vmem:[#allocation199_spill] sm:$0xff]  ;;  %v10961_v46 = vld [vmem:[#allocation56_spill] sm:$0xff] }
 0x3cf   :  { %10955 = vst [vmem:[#allocation67_spill] sm:$0xff] %v9854_v49  ;;  %v5307_v2 = vmul.f32 -1.442695, %v9841_v5  ;;  %v4231_v0 = vadd.f32 %v10956_v28, %v9626_v52  ;;  %v4619_v41 = vmul.f32 %v4481_v7, %v4229_v60  ;;  %v4034_v12 = vmul.f32 %v4002_v15, %v3873_v17  ;;  %v10963_v28 = vld [vmem:[#allocation200_spill] sm:$0xff] }
 0x3d0   :  { %v5306_v19 = vmul.f32 -1.442695, %v9844_v53  ;;  %v4235_v9 = vadd.f32 %v10957_v61, %v9593_v30  ;;  %v9864_v3 = vadd.f32 %v4616_v56, %v9734_v10  ;;  %v3426_v62 = vadd.f32 %v3394_v37, %v3106_v1  ;;  %v10959_v10 = vld [vmem:[#allocation166_spill] sm:$0xff]  ;;  %v9890_v7 = vpop.f32.mrf.mxu0  ;;  %v11000_v49 = vld [vmem:[#allocation164_spill] sm:$0xff] }
 0x3d1   :  { %v5309_v29 = vmul.f32 -1.442695, %v9851_v6  ;;  %v9869_v4 = vadd.f32 %v4619_v41, %v4231_v0  ;;  %v4476_v23 = vadd.f32 %v9636_v20, %v9806_v31  ;;  %v9875_v34 = vpop.eup %6056  ;;  %v4932_v18 = vmul.f32 %v4065_v39, %v9589_v27 }
 0x3d2   :  { %10958 = vst [vmem:[#allocation207_spill] sm:$0xff] %v9875_v34  ;;  %v5308_v58 = vmul.f32 -1.442695, %v9864_v3  ;;  %v4241_v15 = vadd.f32 %v10959_v10, %v9593_v30  ;;  %v4491_v37 = vadd.f32 %v9667_v22, %v9806_v31  ;;  %6060 = vpow2.f32 %v5307_v2 }
 0x3d3   :  { %v4237_v60 = vadd.f32 %v10960_v11, %v9626_v52  ;;  %v5311_v20 = vmul.f32 -1.442695, %v9869_v4  ;;  %v4618_v40 = vmul.f32 %v4476_v23, %v4223_v26  ;;  %6062 = vpow2.f32 %v5306_v19  ;;  %v9898_v26 = vpop.f32.mrf.mxu1  ;;  %v10966_v23 = vld [vmem:[#allocation140_spill] sm:$0xff] }
 0x3d4   :  { %v4243_v17 = vadd.f32 %v10961_v46, %v9626_v52  ;;  %v4621_v27 = vmul.f32 %v4491_v37, %v4241_v15  ;;  %v4486_v1 = vadd.f32 %v9691_v44, %v9806_v31  ;;  %v9892_v39 = vpop.eup %6058  ;;  %v3746_v22 = vadd.f32 %v3714_v55, %v3426_v62  ;;  %v10965_v62 = vld [vmem:[#allocation24_spill] sm:$0xff] }
 0x3d5   :  { %10962 = vst [vmem:[#allocation118_spill] sm:$0xff] %v9892_v39  ;;  %6064 = vpow2.f32 %v5309_v29  ;;  %v9894_v48 = vadd.f32 %v4618_v40, %v4225_v57  ;;  %v4501_v56 = vadd.f32 %v9718_v36, %v9806_v31  ;;  %v4247_v0 = vadd.f32 %v10963_v28, %v9593_v30  ;;  %v9921_v15 = vpop.f32.mrf.mxu1  ;;  %v10969_v40 = vld [vmem:[#allocation61_spill] sm:$0xff] }
 0x3d6   :  { %6066 = vpow2.f32 %v5308_v58  ;;  %v9900_v2 = vadd.f32 %v4621_v27, %v4243_v17  ;;  %v4620_v44 = vmul.f32 %v4486_v1, %v4235_v9  ;;  %v4253_v55 = vadd.f32 %v9312_v13, %v9593_v30  ;;  %v9917_v9 = vpop.f32.mrf.mxu0  ;;  %v10970_v17 = vld [vmem:[#allocation17_spill] sm:$0xff]  ;;  %v10971_v27 = vld [vmem:[#allocation71_spill] sm:$0xff] }
 0x3d7   :  { %6068 = vpow2.f32 %v5311_v20  ;;  %v5310_v41 = vmul.f32 -1.442695, %v9894_v48  ;;  %v4496_v57 = vadd.f32 %v9745_v16, %v9806_v31  ;;  %v9910_v36 = vadd.f32 %v4932_v18, %v9760_v25  ;;  %v10967_v16 = vld [vmem:[#allocation46_spill] sm:$0xff] }
 0x3d8   :  { %v5313_v19 = vmul.f32 -1.442695, %v9900_v2  ;;  %v9913_v61 = vadd.f32 %v4620_v44, %v4237_v60  ;;  %v4255_v29 = vadd.f32 %v10965_v62, %v9626_v52  ;;  %v4249_v58 = vadd.f32 %v10966_v23, %v9626_v52  ;;  %v10968_v25 = vld [vmem:[#allocation94_spill] sm:$0xff]  ;;  %v9946_v44 = vpop.f32.mrf.mxu1  ;;  %v10974_v62 = vld [vmem:[#allocation111_spill] sm:$0xff] }
 0x3d9   :  { %10964 = vst [vmem:[#allocation145_spill] sm:$0xff] %v9910_v36  ;;  %6070 = vpow2.f32 %v5310_v41  ;;  %v4623_v13 = vmul.f32 %v4501_v56, %v4253_v55  ;;  %v4622_v10 = vmul.f32 %v4496_v57, %v4247_v0  ;;  %v9925_v18 = vmul.f32 %v10968_v25, %v10967_v16 }
 0x3da   :  { %6072 = vpow2.f32 %v9791_v35  ;;  %v4066_v37 = vadd.f32 %v4034_v12, %v3746_v22  ;;  %v5312_v11 = vmul.f32 -1.442695, %v9913_v61  ;;  %v4259_v46 = vadd.f32 %v10969_v40, %v9593_v30  ;;  %v10972_v35 = vld [vmem:[#allocation139_spill] sm:$0xff]  ;;  %v9941_v22 = vpop.f32.mrf.mxu0 }
 0x3db   :  { %6074 = vpow2.f32 %v5367_v42  ;;  %v9929_v60 = vadd.f32 %v4622_v10, %v4249_v58  ;;  %v9931_v20 = vadd.f32 %v4623_v13, %v4255_v29  ;;  %v1472_v1 = vadd.f32 %v10971_v27, %v10970_v17  ;;  %v10975_v58 = vld [vmem:[#allocation202_spill] sm:$0xff]  ;;  %v10979_v27 = vld [vmem:[#allocation15_spill] sm:$0xff] }
 0x3dc   :  { %6076 = vpow2.f32 %v5313_v19  ;;  %v4506_v56 = vadd.f32 %v9797_v21, %v9806_v31  ;;  %v4261_v12 = vadd.f32 %v10972_v35, %v9626_v52  ;;  %v5368_v42 = vmul.f32 -1.442695, %v9910_v36  ;;  %v10973_v21 = vld [vmem:[#allocation29_spill] sm:$0xff]  ;;  %v9972_v35 = vpop.f32.mrf.mxu1 }
 0x3dd   :  { %6078 = vpow2.f32 %v5312_v11  ;;  %v5314_v28 = vmul.f32 -1.442695, %v9929_v60  ;;  %v5315_v0 = vmul.f32 -1.442695, %v9931_v20  ;;  %v4933_v41 = vmul.f32 %v4066_v37, %v1472_v1  ;;  %v9962_v11 = vpop.f32.mrf.mxu0 }
 0x3de   :  { %v4511_v55 = vadd.f32 %v9771_v14, %v9806_v31  ;;  %v4624_v57 = vmul.f32 %v4506_v56, %v4259_v46  ;;  %v4265_v19 = vadd.f32 %v10973_v21, %v9593_v30  ;;  %v1248_v29 = vadd.f32 %v10974_v62, %v8332_v8  ;;  %v10976_v14 = vld [vmem:[#allocation110_spill] sm:$0xff]  ;;  %v10977_v46 = vld [vmem:[#allocation93_spill] sm:$0xff]  ;;  %v10978_v8 = vld [vmem:[#allocation19_spill] sm:$0xff] }
 0x3df   :  { %6080 = vpow2.f32 %v5314_v28  ;;  %v4516_v23 = vadd.f32 %v9848_v54, %v9806_v31  ;;  %v4267_v13 = vadd.f32 %v10975_v58, %v9626_v52  ;;  %v6061_v10 = vpop.eup %6060  ;;  %v4271_v37 = vadd.f32 %v10976_v14, %v9593_v30  ;;  %v10980_v54 = vld [vmem:[#allocation162_spill] sm:$0xff]  ;;  %v10983_v62 = vld [vmem:[#allocation49_spill] sm:$0xff]  ;;  %v10984_v58 = vld [vmem:[#allocation52_spill] sm:$0xff] }
 0x3e0   :  { %6082 = vpow2.f32 %v5315_v0  ;;  %v9958_v16 = vadd.f32 %v4624_v57, %v4261_v12  ;;  %v4625_v25 = vmul.f32 %v4511_v55, %v4265_v19  ;;  %v6063_v40 = vpop.eup %6062  ;;  %v9966_v17 = vmul.f32 %v10978_v8, %v10977_v46  ;;  %v10982_v57 = vld [vmem:[#allocation142_spill] sm:$0xff] }
 0x3e1   :  { %v9970_v1 = vmul.f32 %v10980_v54, %v10979_v27  ;;  %6084 = vpow2.f32 %v5368_v42  ;;  %v4775_v56 = vadd.f32 1.0, %v6061_v10  ;;  %v9974_v28 = vadd.f32 %v4933_v41, %v1248_v29  ;;  %v10985_v10 = vld [vmem:[#allocation90_spill] sm:$0xff]  ;;  %v10986_v27 = vld [vmem:[#allocation100_spill] sm:$0xff] }
 0x3e2   :  { %v6065_v12 = vpop.eup %6064  ;;  %v4774_v0 = vadd.f32 1.0, %v6063_v40  ;;  %v4626_v55 = vmul.f32 %v4516_v23, %v4271_v37  ;;  %v4273_v21 = vadd.f32 %v10982_v57, %v9626_v52  ;;  %v9980_v14 = vmul.f32 %v10984_v58, %v10983_v62  ;;  %v9989_v23 = vpop.f32.mrf.mxu0 }
 0x3e3   :  { %10981 = vst [vmem:[#allocation174_spill] sm:$0xff] %v9974_v28  ;;  %v6067_v19 = vpop.eup %6066  ;;  %6086 = vrcp.f32 %v4775_v56  ;;  %v4777_v46 = vadd.f32 1.0, %v6065_v12  ;;  %v9982_v8 = vadd.f32 %v4625_v25, %v4267_v13  ;;  %v9986_v54 = vmul.f32 %v10986_v27, %v10985_v10  ;;  %v10987_v56 = vld [vmem:[#allocation167_spill] sm:$0xff]  ;;  %v9995_v25 = vpop.f32.mrf.mxu1  ;;  %v10991_v27 = vld [vmem:[#allocation16_spill] sm:$0xff] }
 0x3e4   :  { %v6069_v42 = vpop.eup %6068  ;;  %6088 = vrcp.f32 %v4774_v0  ;;  %v4776_v41 = vadd.f32 1.0, %v6067_v19  ;;  %v5316_v29 = vmul.f32 -1.442695, %v9958_v16  ;;  %v4521_v40 = vadd.f32 %v9820_v33, %v9806_v31  ;;  %v10988_v19 = vld [vmem:[#allocation63_spill] sm:$0xff] }
 0x3e5   :  { %6090 = vrcp.f32 %v4777_v46  ;;  %v4779_v37 = vadd.f32 1.0, %v6069_v42  ;;  %v4277_v13 = vadd.f32 %v10987_v56, %v9593_v30  ;;  %v5369_v57 = vmul.f32 -1.442695, %v9974_v28  ;;  %v10992_v56 = vld [vmem:[#allocation161_spill] sm:$0xff]  ;;  %v10995_v28 = vld [vmem:[#allocation135_spill] sm:$0xff] }
 0x3e6   :  { %v6071_v12 = vpop.eup %6070  ;;  %6092 = vrcp.f32 %v4776_v41  ;;  %v9998_v0 = vadd.f32 %v4626_v55, %v4273_v21  ;;  %v4279_v62 = vadd.f32 %v10988_v19, %v9626_v52  ;;  %v5317_v33 = vmul.f32 -1.442695, %v9982_v8  ;;  %v10993_v21 = vld [vmem:[#allocation203_spill] sm:$0xff]  ;;  %v10015_v19 = vpop.f32.mrf.mxu0 }
 0x3e7   :  { %v10002_v58 = vpop.eup %6072  ;;  %6094 = vrcp.f32 %v4779_v37  ;;  %v4778_v46 = vadd.f32 1.0, %v6071_v12  ;;  %v4627_v42 = vmul.f32 %v4521_v40, %v4277_v13  ;;  %v10009_v36 = vmul.f32 %v10992_v56, %v10991_v27  ;;  %v10994_v12 = vld [vmem:[#allocation53_spill] sm:$0xff] }
 0x3e8   :  { %10989 = vst [vmem:[#allocation192_spill] sm:$0xff] %v10002_v58  ;;  %v10005_v10 = vpop.eup %6074  ;;  %6096 = vpow2.f32 %v5316_v29  ;;  %v4526_v55 = vadd.f32 %v9898_v26, %v9806_v31  ;;  %v4283_v41 = vadd.f32 %v10993_v21, %v9593_v30  ;;  %v10019_v38 = vmul.f32 %v10995_v28, %v10994_v12  ;;  %v10997_v13 = vld [vmem:[#allocation141_spill] sm:$0xff]  ;;  %v10025_v29 = vpop.f32.mrf.mxu1  ;;  %v10999_v12 = vld [vmem:[#allocation51_spill] sm:$0xff] }
 0x3e9   :  { %10990 = vst [vmem:[#allocation35_spill] sm:$0xff] %v10005_v10  ;;  %v6077_v37 = vpop.eup %6076  ;;  %6098 = vrcp.f32 %v4778_v46  ;;  %v10021_v40 = vadd.f32 %v4627_v42, %v4279_v62  ;;  %v4285_v27 = vadd.f32 %v10997_v13, %v9626_v52  ;;  %v5318_v21 = vmul.f32 -1.442695, %v9998_v0  ;;  %v10998_v46 = vld [vmem:[#allocation170_spill] sm:$0xff] }
 0x3ea   :  { %v6079_v56 = vpop.eup %6078  ;;  %6100 = vpow2.f32 %v5369_v57  ;;  %v4781_v26 = vadd.f32 1.0, %v6077_v37  ;;  %v4628_v43 = vmul.f32 %v4526_v55, %v4283_v41  ;;  %v4531_v28 = vadd.f32 %v9873_v50, %v9806_v31  ;;  %v11002_v57 = vld [vmem:[#allocation60_spill] sm:$0xff]  ;;  %v10040_v55 = vpop.f32.mrf.mxu0 }
 0x3eb   :  { %10996 = vst [vmem:[#allocation64_spill] sm:$0xff] %v10021_v40  ;;  %v4780_v39 = vadd.f32 1.0, %v6079_v56  ;;  %6102 = vpow2.f32 %v5317_v33  ;;  %v4289_v62 = vadd.f32 %v10998_v46, %v9593_v30  ;;  %v10034_v13 = vmul.f32 %v11000_v49, %v10999_v12  ;;  %v10043_v46 = vpop.f32.mrf.mxu1  ;;  %v11004_v12 = vld [vmem:[#allocation188_spill] sm:$0xff] }
 0x3ec   :  { %v6081_v42 = vpop.eup %6080  ;;  %6104 = vrcp.f32 %v4781_v26  ;;  %v10036_v24 = vadd.f32 %v4628_v43, %v4285_v27  ;;  %v4291_v37 = vadd.f32 %v11002_v57, %v9626_v52  ;;  %v5319_v50 = vmul.f32 -1.442695, %v10021_v40  ;;  %v11005_v26 = vld [vmem:[#allocation103_spill] sm:$0xff]  ;;  %v10068_v34 = vpop.f32.mrf.mxu0 }
 0x3ed   :  { %v6083_v33 = vpop.eup %6082  ;;  %6106 = vrcp.f32 %v4780_v39  ;;  %v4782_v41 = vadd.f32 1.0, %v6081_v42  ;;  %v4629_v56 = vmul.f32 %v4531_v28, %v4289_v62  ;;  %v10049_v43 = vmul.f32 %v11005_v26, %v11004_v12  ;;  %v11007_v28 = vld [vmem:[#allocation114_spill] sm:$0xff]  ;;  %v11010_v12 = vld [vmem:[#allocation23_spill] sm:$0xff]  ;;  %v11011_v26 = vld [vmem:[#allocation137_spill] sm:$0xff] }
 0x3ee   :  { %11001 = vst [vmem:[#allocation208_spill] sm:$0xff] %v10036_v24  ;;  %v10045_v59 = vpop.eup %6084  ;;  %v4783_v49 = vadd.f32 1.0, %v6083_v33  ;;  %6108 = vpow2.f32 %v5318_v21  ;;  %v5320_v27 = vmul.f32 -1.442695, %v10036_v24  ;;  %v4536_v39 = vadd.f32 %v9946_v44, %v9806_v31  ;;  %v11009_v33 = vld [vmem:[#allocation163_spill] sm:$0xff] }
 0x3ef   :  { %11003 = vst [vmem:[#allocation120_spill] sm:$0xff] %v10045_v59  ;;  %6110 = vrcp.f32 %v4782_v41  ;;  %v10054_v42 = vadd.f32 %v4629_v56, %v4291_v37  ;;  %v4295_v62 = vadd.f32 %v11007_v28, %v9593_v30  ;;  %v11008_v59 = vld [vmem:[#allocation55_spill] sm:$0xff]  ;;  %v10064_v21 = vmul.f32 %v11011_v26, %v11010_v12  ;;  %v11012_v41 = vld [vmem:[#allocation144_spill] sm:$0xff]  ;;  %v11013_v26 = vld [vmem:[#allocation169_spill] sm:$0xff] }
 0x3f0   :  { %v6087_v57 = vpop.eup %6086  ;;  %6112 = vrcp.f32 %v4783_v49  ;;  %v10060_v10 = vmul.f32 %v11009_v33, %v11008_v59  ;;  %v4297_v58 = vadd.f32 %v11012_v41, %v9626_v52  ;;  %v10072_v49 = vpop.f32.mrf.mxu1  ;;  %v4541_v12 = vadd.f32 %v9921_v15, %v9806_v31  ;;  %v11015_v15 = vld [vmem:[#allocation65_spill] sm:$0xff] }
 0x3f1   :  { %11006 = vst [vmem:[#allocation148_spill] sm:$0xff] %v10054_v42  ;;  %v6089_v44 = vpop.eup %6088  ;;  %v4871_v37 = vmul.f32 %v6087_v57, %v9841_v5  ;;  %6114 = vpow2.f32 %v5319_v50  ;;  %v5321_v56 = vmul.f32 -1.442695, %v10054_v42  ;;  %v4630_v28 = vmul.f32 %v4536_v39, %v4295_v62  ;;  %v11014_v39 = vld [vmem:[#allocation18_spill] sm:$0xff]  ;;  %v10087_v42 = vpop.f32.mrf.mxu0 }
 0x3f2   :  { %v6091_v59 = vpop.eup %6090  ;;  %v4870_v33 = vmul.f32 %v6089_v44, %v9844_v53  ;;  %6116 = vpow2.f32 %v5320_v27  ;;  %v4301_v41 = vadd.f32 %v11013_v26, %v9593_v30  ;;  %v4303_v27 = vadd.f32 %v11015_v15, %v9626_v52 }
 0x3f3   :  { %v6093_v24 = vpop.eup %6092  ;;  %v5191_v40 = vadd.f32 %v9925_v18, %v4871_v37  ;;  %v4873_v5 = vmul.f32 %v6091_v59, %v9851_v6  ;;  %6118 = vpow2.f32 %v5321_v56  ;;  %v10081_v50 = vadd.f32 %v4630_v28, %v4297_v58  ;;  %v11016_v37 = vld [vmem:[#allocation197_spill] sm:$0xff]  ;;  %v11017_v58 = vld [vmem:[#allocation190_spill] sm:$0xff]  ;;  %v10095_v28 = vpop.f32.mrf.mxu1 }
 0x3f4   :  { %v6095_v57 = vpop.eup %6094  ;;  %v5190_v62 = vadd.f32 %v11014_v39, %v4870_v33  ;;  %v4872_v53 = vmul.f32 %v6093_v24, %v9864_v3  ;;  %v4631_v44 = vmul.f32 %v4541_v12, %v4301_v41  ;;  %v10093_v56 = vmul.f32 %v11017_v58, %v11016_v37 }
 0x3f5   :  { %v6097_v26 = vpop.eup %6096  ;;  %5223 = vst [vmem:[#allocation10 + $0x8] sm:$0xff] %v5191_v40  ;;  %v5193_v18 = vadd.f32 %v9970_v1, %v4873_v5  ;;  %v4875_v6 = vmul.f32 %v6095_v57, %v9869_v4  ;;  %v5322_v24 = vmul.f32 -1.442695, %v10081_v50  ;;  %v4546_v40 = vadd.f32 %v9995_v25, %v9806_v31  ;;  %v11018_v5 = vld [vmem:[#allocation205_spill] sm:$0xff] }
 0x3f6   :  { %v6099_v3 = vpop.eup %6098  ;;  %5222 = vst [vmem:[#allocation10] sm:$0xff] %v5190_v62  ;;  %v5192_v59 = vadd.f32 %v9966_v17, %v4872_v53  ;;  %v4784_v33 = vadd.f32 1.0, %v6097_v26  ;;  %v10101_v12 = vadd.f32 %v4631_v44, %v4303_v27  ;;  %v4307_v57 = vadd.f32 %v11018_v5, %v9593_v30  ;;  %v11019_v17 = vld [vmem:[#allocation57_spill] sm:$0xff]  ;;  %v11021_v44 = vld [vmem:[#allocation172_spill] sm:$0xff]  ;;  %v10116_v27 = vpop.f32.mrf.mxu0  ;;  %v11024_v5 = vld [vmem:[#allocation95_spill] sm:$0xff] }
 0x3f7   :  { %v10103_v1 = vpop.eup %6100  ;;  %5225 = vst [vmem:[#allocation10 + $0x18] sm:$0xff] %v5193_v18  ;;  %v5195_v4 = vadd.f32 %v9986_v54, %v4875_v6  ;;  %v4874_v41 = vmul.f32 %v6099_v3, %v9894_v48  ;;  %6120 = vpow2.f32 %v5322_v24  ;;  %v11020_v62 = vld [vmem:[#allocation201_spill] sm:$0xff]  ;;  %v4309_v15 = vadd.f32 %v11021_v44, %v9626_v52  ;;  %v5744_v6 = vpop.f32.mrf.mxu1  ;;  %v11022_v3 = vld [vmem:[#allocation74_spill] sm:$0xff] }
 0x3f8   :  { %v6103_v39 = vpop.eup %6102  ;;  %5224 = vst [vmem:[#allocation10 + $0x10] sm:$0xff] %v5192_v59  ;;  %6122 = vrcp.f32 %v4784_v33  ;;  %v10111_v53 = vmul.f32 %v11020_v62, %v11019_v17  ;;  %v5323_v25 = vmul.f32 -1.442695, %v10101_v12  ;;  %v4551_v18 = vadd.f32 %v9972_v35, %v9806_v31  ;;  %v11023_v59 = vld [vmem:[#allocation165_spill] sm:$0xff]  ;;  %v11025_v62 = vld [vmem:[#allocation62_spill] sm:$0xff]  ;;  %v10136_v44 = vpop.f32.mrf.mxu0 }
 0x3f9   :  { %v6105_v54 = vpop.eup %6104  ;;  %5227 = vst [vmem:[#allocation10 + $0x28] sm:$0xff] %v5195_v4  ;;  %v5194_v48 = vadd.f32 %v9980_v14, %v4874_v41  ;;  %v4785_v26 = vadd.f32 1.0, %v6103_v39  ;;  %v4632_v37 = vmul.f32 %v4546_v40, %v4307_v57  ;;  %v10124_v33 = vmul.f32 %v11023_v59, %v11022_v3 }
 0x3fa   :  { %v6107_v58 = vpop.eup %6106  ;;  %v4877_v24 = vmul.f32 %v6105_v54, %v9900_v2  ;;  %6124 = vpow2.f32 %v5323_v25  ;;  %v4313_v17 = vadd.f32 %v11024_v5, %v9593_v30  ;;  %v4561_v35 = vadd.f32 %v10025_v29, %v9806_v31 }
 0x3fb   :  { %v6109_v4 = vpop.eup %6108  ;;  %5226 = vst [vmem:[#allocation10 + $0x20] sm:$0xff] %v5194_v48  ;;  %v4876_v14 = vmul.f32 %v6107_v58, %v9913_v61  ;;  %6126 = vrcp.f32 %v4785_v26  ;;  %v10131_v40 = vadd.f32 %v4632_v37, %v4309_v15  ;;  %v4315_v25 = vadd.f32 %v11025_v62, %v9626_v52  ;;  %v4575_v15 = vpop.f32.mrf.mxu1  ;;  %v11027_v58 = vld [vmem:[#allocation168_spill] sm:$0xff] }
 0x3fc   :  { %v6111_v41 = vpop.eup %6110  ;;  %v5197_v2 = vadd.f32 %v10019_v38, %v4877_v24  ;;  %v4786_v57 = vadd.f32 1.0, %v6109_v4  ;;  %v4633_v39 = vmul.f32 %v4551_v18, %v4313_v17  ;;  %v4556_v29 = vadd.f32 %v10043_v46, %v9806_v31  ;;  %v11026_v18 = vld [vmem:[#allocation25_spill] sm:$0xff] }
 0x3fd   :  { %v6113_v54 = vpop.eup %6112  ;;  %v5196_v48 = vadd.f32 %v10009_v36, %v4876_v14  ;;  %v4878_v61 = vmul.f32 %v6111_v41, %v9929_v60  ;;  %v5324_v26 = vmul.f32 -1.442695, %v10131_v40  ;;  %v10146_v24 = vmul.f32 %v11027_v58, %v11026_v18  ;;  %v11028_v46 = vld [vmem:[#allocation117_spill] sm:$0xff] }
 0x3fe   :  { %v6115_v37 = vpop.eup %6114  ;;  %5229 = vst [vmem:[#allocation10 + $0x38] sm:$0xff] %v5197_v2  ;;  %v4879_v38 = vmul.f32 %v6113_v54, %v9931_v20  ;;  %6128 = vrcp.f32 %v4786_v57  ;;  %v10148_v3 = vadd.f32 %v4633_v39, %v4315_v25  ;;  %v4319_v5 = vadd.f32 %v11028_v46, %v9593_v30  ;;  %v10157_v2 = vpop.f32.mrf.mxu0  ;;  %v11029_v54 = vld [vmem:[#allocation22_spill] sm:$0xff] }
 0x3ff   :  { %v6117_v36 = vpop.eup %6116  ;;  %5228 = vst [vmem:[#allocation10 + $0x30] sm:$0xff] %v5196_v48  ;;  %v5198_v60 = vadd.f32 %v10034_v13, %v4878_v61  ;;  %v4787_v59 = vadd.f32 1.0, %v6115_v37  ;;  %6130 = vpow2.f32 %v5324_v26  ;;  %v4571_v14 = vadd.f32 %v10072_v49, %v9806_v31  ;;  %v10159_v13 = vpop.f32.mrf.mxu1  ;;  %v11030_v48 = vld [vmem:[#allocation85_spill] sm:$0xff] }
 0x400   :  { %v6119_v17 = vpop.eup %6118  ;;  %v5199_v4 = vadd.f32 %v10049_v43, %v4879_v38  ;;  %v4788_v20 = vadd.f32 1.0, %v6117_v36  ;;  %v5325_v41 = vmul.f32 -1.442695, %v10148_v3  ;;  %v4634_v39 = vmul.f32 %v4556_v29, %v4319_v5  ;;  %v10180_v38 = vpop.f32.mrf.mxu0 }
 0x401   :  { %5230 = vst [vmem:[#allocation10 + $0x40] sm:$0xff] %v5198_v60  ;;  %6132 = vrcp.f32 %v4787_v59  ;;  %v4789_v57 = vadd.f32 1.0, %v6119_v17  ;;  %v4321_v62 = vadd.f32 %v9764_v51, %v9626_v52  ;;  %v4566_v43 = vadd.f32 %v10095_v28, %v9806_v31  ;;  %v4585_v58 = vpop.f32.mrf.mxu1 }
 0x402   :  { %5231 = vst [vmem:[#allocation10 + $0x48] sm:$0xff] %v5199_v4  ;;  %6134 = vrcp.f32 %v4788_v20  ;;  %v4325_v49 = vadd.f32 %v9786_v63, %v9593_v30  ;;  %v4327_v25 = vadd.f32 %v9811_v45, %v9626_v52  ;;  %v10171_v61 = vmul.f32 %v11030_v48, %v11029_v54 }
 0x403   :  { %6136 = vrcp.f32 %v4789_v57  ;;  %v10173_v29 = vadd.f32 %v4634_v39, %v4321_v62  ;;  %v4331_v51 = vadd.f32 %v9838_v32, %v9593_v30  ;;  %v4581_v37 = vadd.f32 %v5744_v6, %v9806_v31 }
 0x404   :  { %v6121_v26 = vpop.eup %6120  ;;  %6138 = vpow2.f32 %v5325_v41  ;;  %v4635_v28 = vmul.f32 %v4561_v35, %v4325_v49  ;;  %v4333_v63 = vadd.f32 %v9866_v47, %v9626_v52  ;;  %v4337_v59 = vadd.f32 %v9890_v7, %v9593_v30 }
 0x405   :  { %v6123_v45 = vpop.eup %6122  ;;  %v4790_v18 = vadd.f32 1.0, %v6121_v26  ;;  %v5326_v36 = vmul.f32 -1.442695, %v10173_v29  ;;  %v4636_v60 = vmul.f32 %v4566_v43, %v4331_v51  ;;  %v4576_v6 = vadd.f32 %v4575_v15, %v9806_v31  ;;  %v10197_v15 = vpop.f32.mrf.mxu0  ;;  %v11032_v43 = vld [vmem:[#allocation26_spill] sm:$0xff] }
 0x406   :  { %v4880_v32 = vmul.f32 %v6123_v45, %v9958_v16  ;;  %v10187_v46 = vadd.f32 %v4635_v28, %v4327_v25  ;;  %v4339_v47 = vadd.f32 %v9917_v9, %v9626_v52  ;;  %v4637_v17 = vmul.f32 %v4571_v14, %v4337_v59  ;;  %v5750_v9 = vpop.f32.mrf.mxu1 }
 0x407   :  { %v6125_v35 = vpop.eup %6124  ;;  %6140 = vrcp.f32 %v4790_v18  ;;  %v10191_v5 = vadd.f32 %v4636_v60, %v4333_v63  ;;  %v4343_v4 = vadd.f32 %v9941_v22, %v9593_v30  ;;  %v11031_v22 = vld [vmem:[#allocation104_spill] sm:$0xff]  ;;  %v4349_v25 = vadd.f32 %v9989_v23, %v9593_v30 }
 0x408   :  { %v6127_v20 = vpop.eup %6126  ;;  %v5200_v7 = vadd.f32 %v10060_v10, %v4880_v32  ;;  %v4791_v41 = vadd.f32 1.0, %v6125_v35  ;;  %6142 = vpow2.f32 %v5326_v36  ;;  %v5327_v16 = vmul.f32 -1.442695, %v10187_v46  ;;  %v4595_v36 = vpop.f32.mrf.mxu1 }
 0x409   :  { %v4881_v57 = vmul.f32 %v6127_v20, %v9982_v8  ;;  %v5328_v39 = vmul.f32 -1.442695, %v10191_v5  ;;  %v10201_v62 = vadd.f32 %v4637_v17, %v4339_v47  ;;  %v4638_v14 = vmul.f32 %v4576_v6, %v4343_v4  ;;  %v11033_v6 = vld [vmem:[#allocation64_spill] sm:$0xff] }
 0x40a   :  { %5232 = vst [vmem:[#allocation10 + $0x50] sm:$0xff] %v5200_v7  ;;  %6144 = vrcp.f32 %v4791_v41  ;;  %v10205_v49 = vmul.f32 %v11032_v43, %v11031_v22  ;;  %v4345_v10 = vadd.f32 %v9962_v11, %v9626_v52  ;;  %v4351_v51 = vadd.f32 %v10015_v19, %v9626_v52  ;;  %v4378_v11 = vpop.f32.mrf.mxu0 }
 0x40b   :  { %v6129_v54 = vpop.eup %6128  ;;  %v5201_v8 = vadd.f32 %v10064_v21, %v4881_v57  ;;  %6146 = vpow2.f32 %v5327_v16  ;;  %v5329_v48 = vmul.f32 -1.442695, %v10201_v62  ;;  %v4639_v45 = vmul.f32 %v4581_v37, %v4349_v25  ;;  %v11035_v16 = vld [vmem:[#allocation148_spill] sm:$0xff] }
 0x40c   :  { %v6131_v26 = vpop.eup %6130  ;;  %v4882_v28 = vmul.f32 %v6129_v54, %v9998_v0  ;;  %6148 = vpow2.f32 %v5328_v39  ;;  %v10216_v63 = vadd.f32 %v4638_v14, %v4345_v10  ;;  %v4586_v23 = vadd.f32 %v4585_v58, %v9806_v31  ;;  %v4380_v7 = vpop.f32.mrf.mxu0 }
 0x40d   :  { %5233 = vst [vmem:[#allocation10 + $0x58] sm:$0xff] %v5201_v8  ;;  %v4792_v18 = vadd.f32 1.0, %v6131_v26  ;;  %6150 = vpow2.f32 %v5329_v48  ;;  %v4355_v21 = vadd.f32 %v10040_v55, %v9593_v30  ;;  %v10223_v0 = vadd.f32 %v4639_v45, %v4351_v51  ;;  %v11034_v55 = vld [vmem:[#allocation208_spill] sm:$0xff]  ;;  %v5753_v39 = vpop.f32.mrf.mxu1 }
 0x40e   :  { %v6133_v60 = vpop.eup %6132  ;;  %v5202_v19 = vadd.f32 %v10093_v56, %v4882_v28  ;;  %v5330_v59 = vmul.f32 -1.442695, %v10216_v63  ;;  %v4357_v37 = vadd.f32 %v10068_v34, %v9626_v52  ;;  %v4591_v58 = vadd.f32 %v10159_v13, %v9806_v31  ;;  %v4384_v51 = vpop.f32.mrf.mxu0 }
 0x40f   :  { %v6135_v32 = vpop.eup %6134  ;;  %v4883_v47 = vmul.f32 %v6133_v60, %v11033_v6  ;;  %6152 = vrcp.f32 %v4792_v18  ;;  %v4640_v35 = vmul.f32 %v4586_v23, %v4355_v21  ;;  %v5331_v56 = vmul.f32 -1.442695, %v10223_v0  ;;  %v4605_v28 = vpop.f32.mrf.mxu1 }
 0x410   :  { %v6137_v17 = vpop.eup %6136  ;;  %5234 = vst [vmem:[#allocation10 + $0x60] sm:$0xff] %v5202_v19  ;;  %v4884_v4 = vmul.f32 %v6135_v32, %v11034_v55  ;;  %6154 = vpow2.f32 %v5330_v59  ;;  %v4361_v20 = vadd.f32 %v10087_v42, %v9593_v30  ;;  %v4363_v14 = vadd.f32 %v10116_v27, %v9626_v52  ;;  %v4386_v6 = vpop.f32.mrf.mxu0 }
 0x411   :  { %v6139_v34 = vpop.eup %6138  ;;  %v5203_v41 = vadd.f32 %v10111_v53, %v4883_v47  ;;  %v4885_v57 = vmul.f32 %v6137_v17, %v11035_v16  ;;  %v10236_v13 = vadd.f32 %v4640_v35, %v4357_v37  ;;  %6156 = vpow2.f32 %v5331_v56 }
 0x412   :  { %v5204_v22 = vadd.f32 %v10124_v33, %v4884_v4  ;;  %v4793_v43 = vadd.f32 1.0, %v6139_v34  ;;  %v4641_v10 = vmul.f32 %v4591_v58, %v4361_v20  ;;  %v4596_v25 = vadd.f32 %v4595_v36, %v9806_v31 }
 0x413   :  { %5235 = vst [vmem:[#allocation10 + $0x68] sm:$0xff] %v5203_v41  ;;  %v5205_v42 = vadd.f32 %v10146_v24, %v4885_v57  ;;  %v5332_v53 = vmul.f32 -1.442695, %v10236_v13  ;;  %v4367_v54 = vadd.f32 %v10136_v44, %v9593_v30  ;;  %v4601_v48 = vadd.f32 %v5750_v9, %v9806_v31  ;;  %v11037_v57 = vld [vmem:[#allocation88_spill] sm:$0xff] }
 0x414   :  { %v6141_v8 = vpop.eup %6140  ;;  %5236 = vst [vmem:[#allocation10 + $0x70] sm:$0xff] %v5204_v22  ;;  %6158 = vrcp.f32 %v4793_v43  ;;  %v10247_v27 = vadd.f32 %v4641_v10, %v4363_v14  ;;  %v4369_v33 = vadd.f32 %v10157_v2, %v9626_v52  ;;  %v4373_v44 = vadd.f32 %v10180_v38, %v9593_v30 }
 0x415   :  { %v6143_v26 = vpop.eup %6142  ;;  %5237 = vst [vmem:[#allocation10 + $0x78] sm:$0xff] %v5205_v42  ;;  %v4886_v24 = vmul.f32 %v6141_v8, %v10081_v50  ;;  %6160 = vpow2.f32 %v5332_v53  ;;  %v4642_v45 = vmul.f32 %v4596_v25, %v4367_v54  ;;  %v4611_v23 = vadd.f32 %v5753_v39, %v9806_v31  ;;  %v11038_v54 = vld [vmem:[#allocation107_spill] sm:$0xff]  ;;  %v11039_v8 = vld [vmem:[#allocation204_spill] sm:$0xff] }
 0x416   :  { %v4794_v9 = vadd.f32 1.0, %v6143_v26  ;;  %v5333_v18 = vmul.f32 -1.442695, %v10247_v27  ;;  %v4375_v36 = vadd.f32 %v10197_v15, %v9626_v52  ;;  %v4643_v50 = vmul.f32 %v4601_v48, %v4373_v44 }
 0x417   :  { %v6145_v2 = vpop.eup %6144  ;;  %v5206_v21 = vadd.f32 %v10171_v61, %v4886_v24  ;;  %v10259_v60 = vadd.f32 %v4642_v45, %v4369_v33  ;;  %v4379_v19 = vadd.f32 %v4378_v11, %v9593_v30  ;;  %v4606_v38 = vadd.f32 %v4605_v28, %v9806_v31  ;;  %v11040_v33 = vld [vmem:[#allocation207_spill] sm:$0xff] }
 0x418   :  { %v6147_v59 = vpop.eup %6146  ;;  %v4887_v37 = vmul.f32 %v6145_v2, %v10101_v12  ;;  %6162 = vrcp.f32 %v4794_v9  ;;  %v4381_v32 = vadd.f32 %v4380_v7, %v9626_v52  ;;  %v10266_v58 = vadd.f32 %v4643_v50, %v4375_v36  ;;  %v11042_v9 = vld [vmem:[#allocation191_spill] sm:$0xff] }
 0x419   :  { %v6149_v47 = vpop.eup %6148  ;;  %5238 = vst [vmem:[#allocation10 + $0x80] sm:$0xff] %v5206_v21  ;;  %v4795_v15 = vadd.f32 1.0, %v6147_v59  ;;  %6164 = vpow2.f32 %v5333_v18  ;;  %v5334_v61 = vmul.f32 -1.442695, %v10259_v60  ;;  %v4644_v55 = vmul.f32 %v4606_v38, %v4379_v19  ;;  %v11044_v50 = vld [vmem:[#allocation35_spill] sm:$0xff]  ;;  %v11045_v38 = vld [vmem:[#allocation120_spill] sm:$0xff] }
 0x41a   :  { %v6151_v35 = vpop.eup %6150  ;;  %v5207_v11 = vadd.f32 %v10205_v49, %v4887_v37  ;;  %v4796_v17 = vadd.f32 1.0, %v6149_v47  ;;  %v4385_v12 = vadd.f32 %v4384_v51, %v9593_v30  ;;  %v5335_v4 = vmul.f32 -1.442695, %v10266_v58  ;;  %v11036_v49 = vld [vmem:[#allocation27_spill] sm:$0xff]  ;;  %v11046_v47 = vld [vmem:[#allocation108_spill] sm:$0xff] }
 0x41b   :  { %6166 = vrcp.f32 %v4795_v15  ;;  %v4797_v31 = vadd.f32 1.0, %v6151_v35  ;;  %v4387_v56 = vadd.f32 %v4386_v6, %v9626_v52  ;;  %v10272_v7 = vadd.f32 %v4644_v55, %v4381_v32  ;;  %v11047_v15 = vld [vmem:[#allocation143_spill] sm:$0xff] }
 0x41c   :  { %v6153_v20 = vpop.eup %6152  ;;  %5239 = vst [vmem:[#allocation10 + $0x88] sm:$0xff] %v5207_v11  ;;  %6168 = vrcp.f32 %v4796_v17  ;;  %v4645_v34 = vmul.f32 %v4611_v23, %v4385_v12  ;;  %v5176_v39 = vmul.f32 %v11037_v57, %v11036_v49  ;;  %v5177_v48 = vmul.f32 %v11039_v8, %v11038_v54  ;;  %v11041_v23 = vld [vmem:[#allocation78_spill] sm:$0xff]  ;;  %v11049_v17 = vld [vmem:[#allocation33_spill] sm:$0xff]  ;;  %v11055_v54 = vld [vmem:[#allocation67_spill] sm:$0xff] }
 0x41d   :  { %v6155_v41 = vpop.eup %6154  ;;  %v4888_v16 = vmul.f32 %v6153_v20, %v10131_v40  ;;  %6170 = vrcp.f32 %v4797_v31  ;;  %v5336_v14 = vmul.f32 -1.442695, %v10272_v7  ;;  %v5089_v51 = vadd.f32 1.0, %v11040_v33  ;;  %v11048_v11 = vld [vmem:[#allocation58_spill] sm:$0xff] }
 0x41e   :  { %v4798_v30 = vadd.f32 1.0, %v6155_v41  ;;  %6172 = vpow2.f32 %v5334_v61  ;;  %v10278_v22 = vadd.f32 %v4645_v34, %v4387_v56  ;;  %v6157_v52 = vpop.eup %6156  ;;  %v5178_v18 = vmul.f32 %v11042_v9, %v11041_v23  ;;  %v11050_v56 = vld [vmem:[#allocation81_spill] sm:$0xff]  ;;  %v11051_v20 = vld [vmem:[#allocation146_spill] sm:$0xff] }
 0x41f   :  { %v5208_v43 = vadd.f32 %v5176_v39, %v4888_v16  ;;  %6174 = vpow2.f32 %v5335_v4  ;;  %v4799_v10 = vadd.f32 1.0, %v6157_v52  ;;  %v5091_v19 = vadd.f32 1.0, %v11044_v50  ;;  %v11052_v52 = vld [vmem:[#allocation31_spill] sm:$0xff]  ;;  %v11058_v9 = vld [vmem:[#allocation206_spill] sm:$0xff] }
 0x420   :  { %6176 = vrcp.f32 %v4798_v30  ;;  %v5337_v42 = vmul.f32 -1.442695, %v10278_v22  ;;  %v5092_v32 = vadd.f32 1.0, %v11045_v38  ;;  %v5179_v61 = vmul.f32 %v11047_v15, %v11046_v47 }
 0x421   :  { %v6159_v25 = vpop.eup %6158  ;;  %5240 = vst [vmem:[#allocation10 + $0x90] sm:$0xff] %v5208_v43  ;;  %6178 = vpow2.f32 %v5336_v14  ;;  %v5180_v55 = vmul.f32 %v11049_v17, %v11048_v11  ;;  %v5181_v34 = vmul.f32 %v11051_v20, %v11050_v56  ;;  %v5093_v41 = vadd.f32 1.0, %v10103_v1 }
 0x422   :  { %v6161_v40 = vpop.eup %6160  ;;  %v4889_v53 = vmul.f32 %v6159_v25, %v10148_v3  ;;  %6180 = vrcp.f32 %v4799_v10  ;;  %v11043_v3 = vld [vmem:[#allocation192_spill] sm:$0xff] }
 0x423   :  { %v4800_v26 = vadd.f32 1.0, %v6161_v40  ;;  %6182 = vpow2.f32 %v5337_v42  ;;  %v5090_v36 = vadd.f32 1.0, %v11043_v3 }
 0x424   :  { %v5209_v24 = vadd.f32 %v5177_v48, %v4889_v53  ;;  %v11054_v53 = vld [vmem:[#allocation28_spill] sm:$0xff] }
 0x425   :  { %v6163_v28 = vpop.eup %6162  ;;  %6184 = vrcp.f32 %v4800_v26  ;;  %v5183_v8 = vmul.f32 %v11055_v54, %v11054_v53  ;;  %v11056_v26 = vld [vmem:[#allocation115_spill] sm:$0xff] }
 0x426   :  { %v6165_v45 = vpop.eup %6164  ;;  %5241 = vst [vmem:[#allocation10 + $0x98] sm:$0xff] %v5209_v24  ;;  %v4890_v44 = vmul.f32 %v6163_v28, %v10173_v29  ;;  %6186 = vrcp.f32 %v5089_v51  ;;  %v11057_v24 = vld [vmem:[#allocation118_spill] sm:$0xff] }
 0x427   :  { %v4801_v2 = vadd.f32 1.0, %v6165_v45  ;;  %v5184_v28 = vmul.f32 %v11057_v24, %v11056_v26 }
 0x428   :  { %v6167_v21 = vpop.eup %6166  ;;  %v5210_v59 = vadd.f32 %v5178_v18, %v4890_v44 }
 0x429   :  { %v6169_v37 = vpop.eup %6168  ;;  %v4891_v6 = vmul.f32 %v6167_v21, %v10187_v46  ;;  %6188 = vrcp.f32 %v4801_v2 }
 0x42a   :  { %v6171_v29 = vpop.eup %6170  ;;  %5242 = vst [vmem:[#allocation10 + $0xa0] sm:$0xff] %v5210_v59  ;;  %v4892_v35 = vmul.f32 %v6169_v37, %v10191_v5  ;;  %6190 = vrcp.f32 %v5090_v36  ;;  %v11059_v59 = vld [vmem:[#allocation171_spill] sm:$0xff] }
 0x42b   :  { %v6173_v12 = vpop.eup %6172  ;;  %v5211_v31 = vadd.f32 %v5179_v61, %v4891_v6  ;;  %v4893_v4 = vmul.f32 %v6171_v29, %v10201_v62  ;;  %6192 = vrcp.f32 %v5091_v19  ;;  %v11053_v62 = vld [vmem:[#allocation92_spill] sm:$0xff]  ;;  %v11060_v6 = vld [vmem:[#allocation30_spill] sm:$0xff] }
 0x42c   :  { %v6175_v46 = vpop.eup %6174  ;;  %v5212_v16 = vadd.f32 %v5180_v55, %v4892_v35  ;;  %v4802_v49 = vadd.f32 1.0, %v6173_v12  ;;  %6194 = vrcp.f32 %v5092_v32  ;;  %v5182_v43 = vmul.f32 %v11053_v62, %v11052_v52  ;;  %v11061_v35 = vld [vmem:[#allocation145_spill] sm:$0xff]  ;;  %v11062_v12 = vld [vmem:[#allocation174_spill] sm:$0xff] }
 0x42d   :  { %v6177_v57 = vpop.eup %6176  ;;  %5243 = vst [vmem:[#allocation10 + $0xa8] sm:$0xff] %v5211_v31  ;;  %v5213_v5 = vadd.f32 %v5181_v34, %v4893_v4  ;;  %v4803_v39 = vadd.f32 1.0, %v6175_v46 }
 0x42e   :  { %v6179_v30 = vpop.eup %6178  ;;  %5244 = vst [vmem:[#allocation10 + $0xb0] sm:$0xff] %v5212_v16  ;;  %v4894_v14 = vmul.f32 %v6177_v57, %v10216_v63  ;;  %6196 = vrcp.f32 %v4802_v49 }
 0x42f   :  { %v6181_v10 = vpop.eup %6180  ;;  %5245 = vst [vmem:[#allocation10 + $0xb8] sm:$0xff] %v5213_v5  ;;  %6198 = vrcp.f32 %v4803_v39  ;;  %v4804_v42 = vadd.f32 1.0, %v6179_v30 }
 0x430   :  { %v6183_v1 = vpop.eup %6182  ;;  %6200 = vrcp.f32 %v5093_v41  ;;  %v5214_v25 = vadd.f32 %v5182_v43, %v4894_v14  ;;  %v4895_v40 = vmul.f32 %v6181_v10, %v10223_v0 }
 0x431   :  { %6202 = vrcp.f32 %v4804_v42  ;;  %v4805_v48 = vadd.f32 1.0, %v6183_v1 }
 0x432   :  { %v6185_v33 = vpop.eup %6184  ;;  %5246 = vst [vmem:[#allocation10 + $0xc0] sm:$0xff] %v5214_v25  ;;  %v5215_v63 = vadd.f32 %v5183_v8, %v4895_v40 }
 0x433   :  { %v4896_v51 = vmul.f32 %v6185_v33, %v10236_v13  ;;  %6204 = vrcp.f32 %v4805_v48  ;;  %v6187_v45 = vpop.eup %6186 }
 0x434   :  { %5247 = vst [vmem:[#allocation10 + $0xc8] sm:$0xff] %v5215_v63  ;;  %v5185_v18 = vmul.f32 %v6187_v45, %v11058_v9 }
 0x435   :  { %v5216_v44 = vadd.f32 %v5184_v28, %v4896_v51 }
 0x436   :  { %v6189_v23 = vpop.eup %6188 }
 0x437   :  { %5248 = vst [vmem:[#allocation10 + $0xd0] sm:$0xff] %v5216_v44  ;;  %v4897_v0 = vmul.f32 %v6189_v23, %v10247_v27  ;;  %v6191_v3 = vpop.eup %6190 }
 0x438   :  { %v6193_v36 = vpop.eup %6192  ;;  %v5186_v37 = vmul.f32 %v6191_v3, %v11059_v59 }
 0x439   :  { %v5217_v2 = vadd.f32 %v5185_v18, %v4897_v0  ;;  %v6195_v21 = vpop.eup %6194  ;;  %v5187_v47 = vmul.f32 %v6193_v36, %v11060_v6 }
 0x43a   :  { %v5188_v11 = vmul.f32 %v6195_v21, %v11061_v35 }
 0x43b   :  { %v6197_v50 = vpop.eup %6196  ;;  %5249 = vst [vmem:[#allocation10 + $0xd8] sm:$0xff] %v5217_v2 }
 0x43c   :  { %v6199_v13 = vpop.eup %6198  ;;  %v4898_v19 = vmul.f32 %v6197_v50, %v10259_v60 }
 0x43d   :  { %v6201_v38 = vpop.eup %6200  ;;  %v4899_v32 = vmul.f32 %v6199_v13, %v10266_v58 }
 0x43e   :  { %v6203_v15 = vpop.eup %6202  ;;  %v5218_v27 = vadd.f32 %v5186_v37, %v4898_v19  ;;  %v5189_v31 = vmul.f32 %v6201_v38, %v11062_v12 }
 0x43f   :  { %v5219_v61 = vadd.f32 %v5187_v47, %v4899_v32  ;;  %v4900_v29 = vmul.f32 %v6203_v15, %v10272_v7 }
 0x440   :  { %v6205_v17 = vpop.eup %6204  ;;  %5250 = vst [vmem:[#allocation10 + $0xe0] sm:$0xff] %v5218_v27 }
 0x441   :  { %5251 = vst [vmem:[#allocation10 + $0xe8] sm:$0xff] %v5219_v61  ;;  %v5220_v60 = vadd.f32 %v5188_v11, %v4900_v29  ;;  %v4901_v55 = vmul.f32 %v6205_v17, %v10278_v22 }
 0x443   :  { %5252 = vst [vmem:[#allocation10 + $0xf0] sm:$0xff] %v5220_v60  ;;  %v5221_v58 = vadd.f32 %v5189_v31, %v4901_v55 }
 0x445   :  { %5253 = vst [vmem:[#allocation10 + $0xf8] sm:$0xff] %v5221_v58 }
 0x446   :  { %6362 = shalt.err (!%p6359_p10)
}
 0x447   :  { %5265 = dma.vmem_to_hbm [thread:$0]  %s5260_s27, 4096, %s10336_s10, [#allocation4], %s6380_s16, %s6380_s16, %s6381_s17  }
 0x448   :  { %6377 = dma.done.wait [#allocation4], 4096  }
 0x449   :  { %6378 = vsyncadd [#allocation4], 4294963200 }
 0x44a   :  { %5269 = vsyncpa [#allocation3], 1 }
 0x44b   :  { %5270 = vsyncpa [#allocation6], 1 }
 0x44c   :  { %5271 = vsyncpa [#allocation9], 1 }
 0x44d   :  { %5272 = vsyncpa [#allocation4], 1 }

</bundles_post_ra>
